<compile_context>
chip_gen: v7x
topology: tpu7x:2x2x1
jax: 0.10.0
libtpu: 0.0.40
codegen_flags: <defaults>
</compile_context>

<pallas_src>
import math
from functools import partial

import jax
import jax.numpy as jnp
from jax.experimental import pallas as pl
from jax.experimental.pallas import tpu as pltpu

_LN_EPS = 1e-5
_INV_SQRT2 = 1.0 / math.sqrt(2.0)


def _erf(z):
    # Abramowitz & Stegun 7.1.26 rational approximation, |err| <= 1.5e-7.
    a1, a2, a3, a4, a5 = (0.254829592, -0.284496736, 1.421413741,
                          -1.453152027, 1.061405429)
    p = 0.3275911
    sgn = jnp.where(z >= 0.0, 1.0, -1.0)
    az = jnp.abs(z)
    t = 1.0 / (1.0 + p * az)
    poly = ((((a5 * t + a4) * t + a3) * t + a2) * t + a1) * t
    return sgn * (1.0 - poly * jnp.exp(-az * az))


def _gelu_exact(v):
    # Matches F.gelu default (erf form): 0.5 * x * (1 + erf(x / sqrt(2))).
    return 0.5 * v * (1.0 + _erf(v * _INV_SQRT2))


def _layer_norm(v, gamma, beta):
    mu = jnp.mean(v, axis=-1, keepdims=True)
    var = jnp.mean((v - mu) * (v - mu), axis=-1, keepdims=True)
    return (v - mu) * jax.lax.rsqrt(var + _LN_EPS) * gamma + beta


def _transformer_block_kernel(*refs, num_heads, head_dim, has_bias):
    it = iter(refs)
    x_ref = next(it)
    bias_ref = next(it) if has_bias else None
    (g1_ref, be1_ref,
     wq_ref, bq_ref, wk_ref, bk_ref, wv_ref, bv_ref, wo_ref, bo_ref,
     g2_ref, be2_ref, w1_ref, b1_ref, w2_ref, b2_ref,
     out_ref, attn_ref) = it

    bt, s_len, embed = x_ref.shape
    rows = bt * s_len
    inv_scale = 1.0 / math.sqrt(head_dim)

    # Flatten (Bt, S, E) -> (Bt*S, E): leading-dim merge only (cheap), fills the
    # MXU M dimension for every projection / FFN matmul.
    x = x_ref[...].reshape(rows, embed)

    # ---------------- x + MHSA(LN1(x)) ----------------
    xn = _layer_norm(x, g1_ref[...], be1_ref[...])
    q = jnp.dot(xn, wq_ref[...], preferred_element_type=jnp.float32) + bq_ref[...]
    k = jnp.dot(xn, wk_ref[...], preferred_element_type=jnp.float32) + bk_ref[...]
    v = jnp.dot(xn, wv_ref[...], preferred_element_type=jnp.float32) + bv_ref[...]

    q3 = q.reshape(bt, s_len, embed)
    k3 = k.reshape(bt, s_len, embed)
    v3 = v.reshape(bt, s_len, embed)

    # Per-head attention (static loop; head_dim is a multiple of 128 in the demo
    # so all slices are lane-aligned). Per-head outputs are written into the
    # VMEM scratch at their column offset; a single full-K Wo matmul follows.
    for h in range(num_heads):
        lo, hi = h * head_dim, (h + 1) * head_dim
        q_h = q3[:, :, lo:hi]
        k_h = k3[:, :, lo:hi]
        v_h = v3[:, :, lo:hi]
        scores = jnp.einsum('bqd,bkd->bqk', q_h, k_h,
                            preferred_element_type=jnp.float32) * inv_scale
        if has_bias:
            scores = scores + bias_ref[...]          # -inf where mask == 0
        m = jnp.max(scores, axis=-1, keepdims=True)
        e = jnp.exp(scores - m)
        probs = e / jnp.sum(e, axis=-1, keepdims=True)
        # TODO(synk): dropout(attn_probs) is identity here (eval/inference).
        o_h = jnp.einsum('bqk,bkd->bqd', probs, v_h,
                         preferred_element_type=jnp.float32)
        attn_ref[:, lo:hi] = o_h.reshape(rows, head_dim)

    attn = jnp.dot(attn_ref[...], wo_ref[...],
                   preferred_element_type=jnp.float32) + bo_ref[...]
    x1 = x + attn                                    # first residual

    # ---------------- x + FFN(LN2(x)) ----------------
    xn2 = _layer_norm(x1, g2_ref[...], be2_ref[...])
    hdn = jnp.dot(xn2, w1_ref[...], preferred_element_type=jnp.float32) + b1_ref[...]
    hdn = _gelu_exact(hdn)
    y = jnp.dot(hdn, w2_ref[...], preferred_element_type=jnp.float32) + b2_ref[...]

    out_ref[...] = (x1 + y).reshape(bt, s_len, embed).astype(out_ref.dtype)


def _auto_batch_tile(B, S, target_rows=256):
    """Largest divisor of B whose tile reaches >= target_rows rows while keeping
    >= 2 grid steps (so both v7x TensorCores get work); otherwise the largest
    divisor that still leaves 2 grid steps."""
    divs = [d for d in range(1, B + 1) if B % d == 0]
    big = [d for d in divs if d * S >= target_rows and B // d >= 2]
    if big:
        return min(big)
    two = [d for d in divs if B // d >= 2]
    return max(two) if two else B


def transformer_block(x, params, *, num_heads, attention_mask=None,
                      batch_tile=None):
    """x: (B, S, E) f32. params: Linear weights pre-transposed to (in, out).

    Dropout is identity (eval mode). attention_mask (optional) must be
    broadcastable to (B, S, S); positions where mask == 0 get -inf scores
    (PyTorch masked_fill semantics)."""
    B, S, E = x.shape
    assert E % num_heads == 0, "embedding_size must be divisible by num_heads"
    head_dim = E // num_heads

    bt = batch_tile if batch_tile is not None else _auto_batch_tile(B, S)
    assert B % bt == 0, "batch_tile must divide batch"

    has_bias = attention_mask is not None

    def full(shape):   # whole-array block, fetched once (constant index_map)
        n = len(shape)
        return pl.BlockSpec(shape, lambda b, _n=n: (0,) * _n)

    p = params
    weight_arrays = (p["ln1_g"], p["ln1_b"],
                     p["wq"], p["bq"], p["wk"], p["bk"],
                     p["wv"], p["bv"], p["wo"], p["bo"],
                     p["ln2_g"], p["ln2_b"],
                     p["w1"], p["b1"], p["w2"], p["b2"])

    inputs = [x]
    in_specs = [pl.BlockSpec((bt, S, E), lambda b: (b, 0, 0))]
    if has_bias:
        mask = jnp.broadcast_to(attention_mask, (B, S, S))
        bias = jnp.where(mask == 0, jnp.float32(-jnp.inf), jnp.float32(0.0))
        inputs.append(bias)
        in_specs.append(pl.BlockSpec((bt, S, S), lambda b: (b, 0, 0)))
    inputs.extend(weight_arrays)
    in_specs.extend(full(tuple(w.shape)) for w in weight_arrays)

    # Explicit VMEM budget: double-buffered weights + I/O blocks + scratch.
    weight_bytes = sum(int(w.size) * w.dtype.itemsize for w in weight_arrays)
    io_bytes = bt * S * E * 4 * 2 + (bt * S * S * 4 if has_bias else 0)
    scratch_bytes = bt * S * E * 4
    vmem_limit = int(min(128 * 1024 * 1024,
                         2 * weight_bytes + 4 * io_bytes + scratch_bytes
                         + (8 << 20)))

    kernel = partial(_transformer_block_kernel,
                     num_heads=num_heads, head_dim=head_dim, has_bias=has_bias)

    return pl.pallas_call(
        kernel,
        out_shape=jax.ShapeDtypeStruct((B, S, E), x.dtype),
        grid_spec=pltpu.PrefetchScalarGridSpec(
            num_scalar_prefetch=0,
            grid=(B // bt,),
            in_specs=in_specs,
            out_specs=pl.BlockSpec((bt, S, E), lambda b: (b, 0, 0)),
            scratch_shapes=[pltpu.VMEM((bt * S, E), jnp.float32)],
        ),
        compiler_params=pltpu.CompilerParams(
            dimension_semantics=("parallel",),
            vmem_limit_bytes=vmem_limit),
    )(*inputs)


def transformer_block_reference(x, p, *, num_heads, attention_mask=None):
    """Plain-JAX reference mirroring the PyTorch module (eval mode)."""
    B, S, E = x.shape
    D = E // num_heads

    xn = _layer_norm(x, p["ln1_g"], p["ln1_b"])
    q = (xn @ p["wq"] + p["bq"]).reshape(B, S, num_heads, D).transpose(0, 2, 1, 3)
    k = (xn @ p["wk"] + p["bk"]).reshape(B, S, num_heads, D).transpose(0, 2, 1, 3)
    v = (xn @ p["wv"] + p["bv"]).reshape(B, S, num_heads, D).transpose(0, 2, 1, 3)
    scores = jnp.einsum("bhqd,bhkd->bhqk", q, k) / math.sqrt(D)
    if attention_mask is not None:
        mask = jnp.broadcast_to(attention_mask, (B, S, S))[:, None]
        scores = jnp.where(mask == 0, -jnp.inf, scores)
    probs = jax.nn.softmax(scores, axis=-1)
    attn = jnp.einsum("bhqk,bhkd->bhqd", probs, v)
    attn = attn.transpose(0, 2, 1, 3).reshape(B, S, E) @ p["wo"] + p["bo"]
    x = x + attn
    xn2 = _layer_norm(x, p["ln2_g"], p["ln2_b"])
    hdn = jax.nn.gelu(xn2 @ p["w1"] + p["b1"], approximate=False)
    return x + (hdn @ p["w2"] + p["b2"])


if __name__ == "__main__":
    # Small but TPU-friendly shapes: E multiple of 128, head_dim = 128.
    B, S, E, H = 4, 8, 256, 2   # batch=4, seq=8, embedding=256, heads=2

    key = jax.random.PRNGKey(0)
    keys = jax.random.split(key, 8)

    def linear_params(k, fan_in, fan_out):
        # PyTorch nn.Linear default init: U(-1/sqrt(fan_in), +1/sqrt(fan_in)).
        bound = 1.0 / math.sqrt(fan_in)
        kw, kb = jax.random.split(k)
        w = jax.random.uniform(kw, (fan_in, fan_out), jnp.float32, -bound, bound)
        b = jax.random.uniform(kb, (1, fan_out), jnp.float32, -bound, bound)
        return w, b

    wq, bq = linear_params(keys[0], E, E)
    wk, bk = linear_params(keys[1], E, E)
    wv, bv = linear_params(keys[2], E, E)
    wo, bo = linear_params(keys[3], E, E)
    w1, b1 = linear_params(keys[4], E, 4 * E)
    w2, b2 = linear_params(keys[5], 4 * E, E)

    params = dict(
        ln1_g=jnp.ones((1, E), jnp.float32), ln1_b=jnp.zeros((1, E), jnp.float32),
        wq=wq, bq=bq, wk=wk, bk=bk, wv=wv, bv=bv, wo=wo, bo=bo,
        ln2_g=jnp.ones((1, E), jnp.float32), ln2_b=jnp.zeros((1, E), jnp.float32),
        w1=w1, b1=b1, w2=w2, b2=b2,
    )

    x = jax.random.normal(keys[6], (B, S, E), dtype=jnp.float32)

    # --- no-mask path (no bias materialized / DMA'd) ---
    out = transformer_block(x, params, num_heads=H, attention_mask=None)
    out = jax.block_until_ready(out)
    ref = transformer_block_reference(x, params, num_heads=H, attention_mask=None)
    assert out.shape == (B, S, E)
    # Both kernel and reference run at default TPU matmul precision (bf16
    # products, f32 accumulation); residual diff is accumulation-order + the
    # erf approximation, well inside 1e-3.
    assert jnp.allclose(out, ref, atol=1e-3, rtol=1e-3), (
        f"mismatch (no mask), max abs diff = {jnp.max(jnp.abs(out - ref))}")

    # --- causal-mask path (exercises the bias input) ---
    causal = jnp.tril(jnp.ones((S, S), jnp.float32))[None]      # (1, S, S)
    out_m = transformer_block(x, params, num_heads=H, attention_mask=causal)
    out_m = jax.block_until_ready(out_m)
    ref_m = transformer_block_reference(x, params, num_heads=H,
                                        attention_mask=causal)
    assert jnp.allclose(out_m, ref_m, atol=1e-3, rtol=1e-3), (
        f"mismatch (causal), max abs diff = {jnp.max(jnp.abs(out_m - ref_m))}")

    print("KERNEL_OK")
</pallas_src>

<mosaic_0001>
module attributes {stable_mosaic.version = 11 : i64} {
  func.func @_transformer_block_kernel(%arg0: i32, %arg1: memref<2x8x256xf32, #tpu.memory_space<vmem>>, %arg2: memref<1x256xf32, #tpu.memory_space<vmem>>, %arg3: memref<1x256xf32, #tpu.memory_space<vmem>>, %arg4: memref<256x256xf32, #tpu.memory_space<vmem>>, %arg5: memref<1x256xf32, #tpu.memory_space<vmem>>, %arg6: memref<256x256xf32, #tpu.memory_space<vmem>>, %arg7: memref<1x256xf32, #tpu.memory_space<vmem>>, %arg8: memref<256x256xf32, #tpu.memory_space<vmem>>, %arg9: memref<1x256xf32, #tpu.memory_space<vmem>>, %arg10: memref<256x256xf32, #tpu.memory_space<vmem>>, %arg11: memref<1x256xf32, #tpu.memory_space<vmem>>, %arg12: memref<1x256xf32, #tpu.memory_space<vmem>>, %arg13: memref<1x256xf32, #tpu.memory_space<vmem>>, %arg14: memref<256x1024xf32, #tpu.memory_space<vmem>>, %arg15: memref<1x1024xf32, #tpu.memory_space<vmem>>, %arg16: memref<1024x256xf32, #tpu.memory_space<vmem>>, %arg17: memref<1x256xf32, #tpu.memory_space<vmem>>, %arg18: memref<2x8x256xf32, #tpu.memory_space<vmem>>, %arg19: memref<16x256xf32, #tpu.memory_space<vmem>>) attributes {dimension_semantics = [#tpu.dimension_semantics<parallel>], iteration_bounds = array<i64: 2>, scalar_prefetch = 0 : i64, scratch_operands = 1 : i64, tpu.core_type = #tpu.core_type<tc>, window_params = [{transform_indices = @transform_0, window_bounds = array<i64: 2, 8, 256>}, {pipeline_mode = #tpu.pipeline_mode<synchronous>, transform_indices = @transform_1, window_bounds = array<i64: 1, 256>}, {pipeline_mode = #tpu.pipeline_mode<synchronous>, transform_indices = @transform_2, window_bounds = array<i64: 1, 256>}, {pipeline_mode = #tpu.pipeline_mode<synchronous>, transform_indices = @transform_3, window_bounds = array<i64: 256, 256>}, {pipeline_mode = #tpu.pipeline_mode<synchronous>, transform_indices = @transform_4, window_bounds = array<i64: 1, 256>}, {pipeline_mode = #tpu.pipeline_mode<synchronous>, transform_indices = @transform_5, window_bounds = array<i64: 256, 256>}, {pipeline_mode = #tpu.pipeline_mode<synchronous>, transform_indices = @transform_6, window_bounds = array<i64: 1, 256>}, {pipeline_mode = #tpu.pipeline_mode<synchronous>, transform_indices = @transform_7, window_bounds = array<i64: 256, 256>}, {pipeline_mode = #tpu.pipeline_mode<synchronous>, transform_indices = @transform_8, window_bounds = array<i64: 1, 256>}, {pipeline_mode = #tpu.pipeline_mode<synchronous>, transform_indices = @transform_9, window_bounds = array<i64: 256, 256>}, {pipeline_mode = #tpu.pipeline_mode<synchronous>, transform_indices = @transform_10, window_bounds = array<i64: 1, 256>}, {pipeline_mode = #tpu.pipeline_mode<synchronous>, transform_indices = @transform_11, window_bounds = array<i64: 1, 256>}, {pipeline_mode = #tpu.pipeline_mode<synchronous>, transform_indices = @transform_12, window_bounds = array<i64: 1, 256>}, {pipeline_mode = #tpu.pipeline_mode<synchronous>, transform_indices = @transform_13, window_bounds = array<i64: 256, 1024>}, {pipeline_mode = #tpu.pipeline_mode<synchronous>, transform_indices = @transform_14, window_bounds = array<i64: 1, 1024>}, {pipeline_mode = #tpu.pipeline_mode<synchronous>, transform_indices = @transform_15, window_bounds = array<i64: 1024, 256>}, {pipeline_mode = #tpu.pipeline_mode<synchronous>, transform_indices = @transform_16, window_bounds = array<i64: 1, 256>}, {transform_indices = @transform_17, window_bounds = array<i64: 2, 8, 256>}]} {
    %c0 = arith.constant 0 : index
    %c0_0 = arith.constant 0 : index
    %c0_1 = arith.constant 0 : index
    %0 = vector.load %arg1[%c0, %c0_0, %c0_1] : memref<2x8x256xf32, #tpu.memory_space<vmem>>, vector<2x8x256xf32>
    %1 = vector.shape_cast %0 : vector<2x8x256xf32> to vector<16x256xf32>
    %c0_2 = arith.constant 0 : index
    %c0_3 = arith.constant 0 : index
    %2 = vector.load %arg2[%c0_2, %c0_3] : memref<1x256xf32, #tpu.memory_space<vmem>>, vector<1x256xf32>
    %c0_4 = arith.constant 0 : index
    %c0_5 = arith.constant 0 : index
    %3 = vector.load %arg3[%c0_4, %c0_5] : memref<1x256xf32, #tpu.memory_space<vmem>>, vector<1x256xf32>
    %cst = arith.constant dense<0.000000e+00> : vector<16xf32>
    %4 = vector.multi_reduction <add>, %1, %cst [1] : vector<16x256xf32> to vector<16xf32>
    %5 = vector.shape_cast %4 : vector<16xf32> to vector<16x1xf32>
    %cst_6 = arith.constant 2.560000e+02 : f32
    %6 = vector.broadcast %cst_6 : f32 to vector<16x1xf32>
    %7 = arith.divf %5, %6 : vector<16x1xf32>
    %8 = vector.broadcast %7 : vector<16x1xf32> to vector<16x256xf32>
    %9 = arith.subf %1, %8 : vector<16x256xf32>
    %10 = vector.broadcast %7 : vector<16x1xf32> to vector<16x256xf32>
    %11 = arith.subf %1, %10 : vector<16x256xf32>
    %12 = arith.mulf %9, %11 : vector<16x256xf32>
    %cst_7 = arith.constant dense<0.000000e+00> : vector<16xf32>
    %13 = vector.multi_reduction <add>, %12, %cst_7 [1] : vector<16x256xf32> to vector<16xf32>
    %14 = vector.shape_cast %13 : vector<16xf32> to vector<16x1xf32>
    %cst_8 = arith.constant 2.560000e+02 : f32
    %15 = vector.broadcast %cst_8 : f32 to vector<16x1xf32>
    %16 = arith.divf %14, %15 : vector<16x1xf32>
    %17 = vector.broadcast %7 : vector<16x1xf32> to vector<16x256xf32>
    %18 = arith.subf %1, %17 : vector<16x256xf32>
    %cst_9 = arith.constant 9.99999974E-6 : f32
    %19 = vector.broadcast %cst_9 : f32 to vector<16x1xf32>
    %20 = arith.addf %16, %19 : vector<16x1xf32>
    %21 = math.rsqrt %20 : vector<16x1xf32>
    %22 = vector.broadcast %21 : vector<16x1xf32> to vector<16x256xf32>
    %23 = arith.mulf %18, %22 : vector<16x256xf32>
    %24 = vector.broadcast %2 : vector<1x256xf32> to vector<16x256xf32>
    %25 = arith.mulf %23, %24 : vector<16x256xf32>
    %26 = vector.broadcast %3 : vector<1x256xf32> to vector<16x256xf32>
    %27 = arith.addf %25, %26 : vector<16x256xf32>
    %c0_10 = arith.constant 0 : index
    %c0_11 = arith.constant 0 : index
    %28 = vector.load %arg4[%c0_10, %c0_11] : memref<256x256xf32, #tpu.memory_space<vmem>>, vector<256x256xf32>
    %cst_12 = arith.constant dense<0.000000e+00> : vector<16x256xf32>
    %29 = tpu.matmul %27, %28, %cst_12 {dimension_numbers = #tpu.dot_dimension_numbers<[1], [0], [0], [1], [0, 0, 1, 1], [], []>} : vector<16x256xf32>, vector<256x256xf32>, vector<16x256xf32> -> vector<16x256xf32>
    %c0_13 = arith.constant 0 : index
    %c0_14 = arith.constant 0 : index
    %30 = vector.load %arg5[%c0_13, %c0_14] : memref<1x256xf32, #tpu.memory_space<vmem>>, vector<1x256xf32>
    %31 = vector.broadcast %30 : vector<1x256xf32> to vector<16x256xf32>
    %32 = arith.addf %29, %31 : vector<16x256xf32>
    %c0_15 = arith.constant 0 : index
    %c0_16 = arith.constant 0 : index
    %33 = vector.load %arg6[%c0_15, %c0_16] : memref<256x256xf32, #tpu.memory_space<vmem>>, vector<256x256xf32>
    %cst_17 = arith.constant dense<0.000000e+00> : vector<16x256xf32>
    %34 = tpu.matmul %27, %33, %cst_17 {dimension_numbers = #tpu.dot_dimension_numbers<[1], [0], [0], [1], [0, 0, 1, 1], [], []>} : vector<16x256xf32>, vector<256x256xf32>, vector<16x256xf32> -> vector<16x256xf32>
    %c0_18 = arith.constant 0 : index
    %c0_19 = arith.constant 0 : index
    %35 = vector.load %arg7[%c0_18, %c0_19] : memref<1x256xf32, #tpu.memory_space<vmem>>, vector<1x256xf32>
    %36 = vector.broadcast %35 : vector<1x256xf32> to vector<16x256xf32>
    %37 = arith.addf %34, %36 : vector<16x256xf32>
    %c0_20 = arith.constant 0 : index
    %c0_21 = arith.constant 0 : index
    %38 = vector.load %arg8[%c0_20, %c0_21] : memref<256x256xf32, #tpu.memory_space<vmem>>, vector<256x256xf32>
    %cst_22 = arith.constant dense<0.000000e+00> : vector<16x256xf32>
    %39 = tpu.matmul %27, %38, %cst_22 {dimension_numbers = #tpu.dot_dimension_numbers<[1], [0], [0], [1], [0, 0, 1, 1], [], []>} : vector<16x256xf32>, vector<256x256xf32>, vector<16x256xf32> -> vector<16x256xf32>
    %c0_23 = arith.constant 0 : index
    %c0_24 = arith.constant 0 : index
    %40 = vector.load %arg9[%c0_23, %c0_24] : memref<1x256xf32, #tpu.memory_space<vmem>>, vector<1x256xf32>
    %41 = vector.broadcast %40 : vector<1x256xf32> to vector<16x256xf32>
    %42 = arith.addf %39, %41 : vector<16x256xf32>
    %43 = vector.shape_cast %32 : vector<16x256xf32> to vector<2x8x256xf32>
    %44 = vector.shape_cast %37 : vector<16x256xf32> to vector<2x8x256xf32>
    %45 = vector.shape_cast %42 : vector<16x256xf32> to vector<2x8x256xf32>
    %46 = vector.extract_strided_slice %43 {offsets = [0, 0, 0], sizes = [2, 8, 128], strides = [1, 1, 1]} : vector<2x8x256xf32> to vector<2x8x128xf32>
    %47 = vector.extract_strided_slice %44 {offsets = [0, 0, 0], sizes = [2, 8, 128], strides = [1, 1, 1]} : vector<2x8x256xf32> to vector<2x8x128xf32>
    %48 = vector.extract_strided_slice %45 {offsets = [0, 0, 0], sizes = [2, 8, 128], strides = [1, 1, 1]} : vector<2x8x256xf32> to vector<2x8x128xf32>
    "tpu.trace_start"() <{level = 10 : i32, message = "bqd,bkd->bqk"}> : () -> ()
    %cst_25 = arith.constant dense<0.000000e+00> : vector<2x8x8xf32>
    %49 = tpu.matmul %46, %47, %cst_25 {dimension_numbers = #tpu.dot_dimension_numbers<[2], [2], [1], [1], [0, 0, 0, 1, 1, 1], [0], [0]>} : vector<2x8x128xf32>, vector<2x8x128xf32>, vector<2x8x8xf32> -> vector<2x8x8xf32>
    "tpu.trace_stop"() : () -> ()
    %cst_26 = arith.constant 0.0883883461 : f32
    %50 = vector.broadcast %cst_26 : f32 to vector<2x8x8xf32>
    %51 = arith.mulf %49, %50 : vector<2x8x8xf32>
    %cst_27 = arith.constant dense<0xFF800000> : vector<2x8xf32>
    %52 = vector.multi_reduction <maximumf>, %51, %cst_27 [2] : vector<2x8x8xf32> to vector<2x8xf32>
    %53 = vector.shape_cast %52 : vector<2x8xf32> to vector<2x8x1xf32>
    %54 = vector.broadcast %53 : vector<2x8x1xf32> to vector<2x8x8xf32>
    %55 = arith.subf %51, %54 : vector<2x8x8xf32>
    %56 = math.exp %55 : vector<2x8x8xf32>
    %cst_28 = arith.constant dense<0.000000e+00> : vector<2x8xf32>
    %57 = vector.multi_reduction <add>, %56, %cst_28 [2] : vector<2x8x8xf32> to vector<2x8xf32>
    %58 = vector.shape_cast %57 : vector<2x8xf32> to vector<2x8x1xf32>
    %59 = vector.broadcast %58 : vector<2x8x1xf32> to vector<2x8x8xf32>
    %60 = arith.divf %56, %59 : vector<2x8x8xf32>
    "tpu.trace_start"() <{level = 10 : i32, message = "bqk,bkd->bqd"}> : () -> ()
    %cst_29 = arith.constant dense<0.000000e+00> : vector<2x8x128xf32>
    %61 = tpu.matmul %60, %48, %cst_29 {dimension_numbers = #tpu.dot_dimension_numbers<[2], [1], [1], [2], [0, 0, 0, 1, 1, 2], [0], [0]>} : vector<2x8x8xf32>, vector<2x8x128xf32>, vector<2x8x128xf32> -> vector<2x8x128xf32>
    "tpu.trace_stop"() : () -> ()
    %62 = vector.shape_cast %61 : vector<2x8x128xf32> to vector<16x128xf32>
    %c0_30 = arith.constant 0 : index
    %c0_31 = arith.constant 0 : index
    %63 = vector.load %arg19[%c0_30, %c0_31] : memref<16x256xf32, #tpu.memory_space<vmem>>, vector<16x128xf32>
    tpu.vector_store %arg19[%c0_30, %c0_31], %62 {strides = array<i32>} : memref<16x256xf32, #tpu.memory_space<vmem>>, vector<16x128xf32>,
    %64 = vector.extract_strided_slice %43 {offsets = [0, 0, 128], sizes = [2, 8, 128], strides = [1, 1, 1]} : vector<2x8x256xf32> to vector<2x8x128xf32>
    %65 = vector.extract_strided_slice %44 {offsets = [0, 0, 128], sizes = [2, 8, 128], strides = [1, 1, 1]} : vector<2x8x256xf32> to vector<2x8x128xf32>
    %66 = vector.extract_strided_slice %45 {offsets = [0, 0, 128], sizes = [2, 8, 128], strides = [1, 1, 1]} : vector<2x8x256xf32> to vector<2x8x128xf32>
    "tpu.trace_start"() <{level = 10 : i32, message = "bqd,bkd->bqk"}> : () -> ()
    %cst_32 = arith.constant dense<0.000000e+00> : vector<2x8x8xf32>
    %67 = tpu.matmul %64, %65, %cst_32 {dimension_numbers = #tpu.dot_dimension_numbers<[2], [2], [1], [1], [0, 0, 0, 1, 1, 1], [0], [0]>} : vector<2x8x128xf32>, vector<2x8x128xf32>, vector<2x8x8xf32> -> vector<2x8x8xf32>
    "tpu.trace_stop"() : () -> ()
    %cst_33 = arith.constant 0.0883883461 : f32
    %68 = vector.broadcast %cst_33 : f32 to vector<2x8x8xf32>
    %69 = arith.mulf %67, %68 : vector<2x8x8xf32>
    %cst_34 = arith.constant dense<0xFF800000> : vector<2x8xf32>
    %70 = vector.multi_reduction <maximumf>, %69, %cst_34 [2] : vector<2x8x8xf32> to vector<2x8xf32>
    %71 = vector.shape_cast %70 : vector<2x8xf32> to vector<2x8x1xf32>
    %72 = vector.broadcast %71 : vector<2x8x1xf32> to vector<2x8x8xf32>
    %73 = arith.subf %69, %72 : vector<2x8x8xf32>
    %74 = math.exp %73 : vector<2x8x8xf32>
    %cst_35 = arith.constant dense<0.000000e+00> : vector<2x8xf32>
    %75 = vector.multi_reduction <add>, %74, %cst_35 [2] : vector<2x8x8xf32> to vector<2x8xf32>
    %76 = vector.shape_cast %75 : vector<2x8xf32> to vector<2x8x1xf32>
    %77 = vector.broadcast %76 : vector<2x8x1xf32> to vector<2x8x8xf32>
    %78 = arith.divf %74, %77 : vector<2x8x8xf32>
    "tpu.trace_start"() <{level = 10 : i32, message = "bqk,bkd->bqd"}> : () -> ()
    %cst_36 = arith.constant dense<0.000000e+00> : vector<2x8x128xf32>
    %79 = tpu.matmul %78, %66, %cst_36 {dimension_numbers = #tpu.dot_dimension_numbers<[2], [1], [1], [2], [0, 0, 0, 1, 1, 2], [0], [0]>} : vector<2x8x8xf32>, vector<2x8x128xf32>, vector<2x8x128xf32> -> vector<2x8x128xf32>
    "tpu.trace_stop"() : () -> ()
    %80 = vector.shape_cast %79 : vector<2x8x128xf32> to vector<16x128xf32>
    %c0_37 = arith.constant 0 : index
    %c128 = arith.constant 128 : index
    %81 = vector.load %arg19[%c0_37, %c128] : memref<16x256xf32, #tpu.memory_space<vmem>>, vector<16x128xf32>
    tpu.vector_store %arg19[%c0_37, %c128], %80 {strides = array<i32>} : memref<16x256xf32, #tpu.memory_space<vmem>>, vector<16x128xf32>,
    %c0_38 = arith.constant 0 : index
    %c0_39 = arith.constant 0 : index
    %82 = vector.load %arg19[%c0_38, %c0_39] : memref<16x256xf32, #tpu.memory_space<vmem>>, vector<16x256xf32>
    %c0_40 = arith.constant 0 : index
    %c0_41 = arith.constant 0 : index
    %83 = vector.load %arg10[%c0_40, %c0_41] : memref<256x256xf32, #tpu.memory_space<vmem>>, vector<256x256xf32>
    %cst_42 = arith.constant dense<0.000000e+00> : vector<16x256xf32>
    %84 = tpu.matmul %82, %83, %cst_42 {dimension_numbers = #tpu.dot_dimension_numbers<[1], [0], [0], [1], [0, 0, 1, 1], [], []>} : vector<16x256xf32>, vector<256x256xf32>, vector<16x256xf32> -> vector<16x256xf32>
    %c0_43 = arith.constant 0 : index
    %c0_44 = arith.constant 0 : index
    %85 = vector.load %arg11[%c0_43, %c0_44] : memref<1x256xf32, #tpu.memory_space<vmem>>, vector<1x256xf32>
    %86 = vector.broadcast %85 : vector<1x256xf32> to vector<16x256xf32>
    %87 = arith.addf %84, %86 : vector<16x256xf32>
    %88 = arith.addf %1, %87 : vector<16x256xf32>
    %c0_45 = arith.constant 0 : index
    %c0_46 = arith.constant 0 : index
    %89 = vector.load %arg12[%c0_45, %c0_46] : memref<1x256xf32, #tpu.memory_space<vmem>>, vector<1x256xf32>
    %c0_47 = arith.constant 0 : index
    %c0_48 = arith.constant 0 : index
    %90 = vector.load %arg13[%c0_47, %c0_48] : memref<1x256xf32, #tpu.memory_space<vmem>>, vector<1x256xf32>
    %cst_49 = arith.constant dense<0.000000e+00> : vector<16xf32>
    %91 = vector.multi_reduction <add>, %88, %cst_49 [1] : vector<16x256xf32> to vector<16xf32>
    %92 = vector.shape_cast %91 : vector<16xf32> to vector<16x1xf32>
    %cst_50 = arith.constant 2.560000e+02 : f32
    %93 = vector.broadcast %cst_50 : f32 to vector<16x1xf32>
    %94 = arith.divf %92, %93 : vector<16x1xf32>
    %95 = vector.broadcast %94 : vector<16x1xf32> to vector<16x256xf32>
    %96 = arith.subf %88, %95 : vector<16x256xf32>
    %97 = vector.broadcast %94 : vector<16x1xf32> to vector<16x256xf32>
    %98 = arith.subf %88, %97 : vector<16x256xf32>
    %99 = arith.mulf %96, %98 : vector<16x256xf32>
    %cst_51 = arith.constant dense<0.000000e+00> : vector<16xf32>
    %100 = vector.multi_reduction <add>, %99, %cst_51 [1] : vector<16x256xf32> to vector<16xf32>
    %101 = vector.shape_cast %100 : vector<16xf32> to vector<16x1xf32>
    %cst_52 = arith.constant 2.560000e+02 : f32
    %102 = vector.broadcast %cst_52 : f32 to vector<16x1xf32>
    %103 = arith.divf %101, %102 : vector<16x1xf32>
    %104 = vector.broadcast %94 : vector<16x1xf32> to vector<16x256xf32>
    %105 = arith.subf %88, %104 : vector<16x256xf32>
    %cst_53 = arith.constant 9.99999974E-6 : f32
    %106 = vector.broadcast %cst_53 : f32 to vector<16x1xf32>
    %107 = arith.addf %103, %106 : vector<16x1xf32>
    %108 = math.rsqrt %107 : vector<16x1xf32>
    %109 = vector.broadcast %108 : vector<16x1xf32> to vector<16x256xf32>
    %110 = arith.mulf %105, %109 : vector<16x256xf32>
    %111 = vector.broadcast %89 : vector<1x256xf32> to vector<16x256xf32>
    %112 = arith.mulf %110, %111 : vector<16x256xf32>
    %113 = vector.broadcast %90 : vector<1x256xf32> to vector<16x256xf32>
    %114 = arith.addf %112, %113 : vector<16x256xf32>
    %c0_54 = arith.constant 0 : index
    %c0_55 = arith.constant 0 : index
    %115 = vector.load %arg14[%c0_54, %c0_55] : memref<256x1024xf32, #tpu.memory_space<vmem>>, vector<256x1024xf32>
    %cst_56 = arith.constant dense<0.000000e+00> : vector<16x1024xf32>
    %116 = tpu.matmul %114, %115, %cst_56 {dimension_numbers = #tpu.dot_dimension_numbers<[1], [0], [0], [1], [0, 0, 1, 1], [], []>} : vector<16x256xf32>, vector<256x1024xf32>, vector<16x1024xf32> -> vector<16x1024xf32>
    %c0_57 = arith.constant 0 : index
    %c0_58 = arith.constant 0 : index
    %117 = vector.load %arg15[%c0_57, %c0_58] : memref<1x1024xf32, #tpu.memory_space<vmem>>, vector<1x1024xf32>
    %118 = vector.broadcast %117 : vector<1x1024xf32> to vector<16x1024xf32>
    %119 = arith.addf %116, %118 : vector<16x1024xf32>
    %cst_59 = arith.constant 5.000000e-01 : f32
    %120 = vector.broadcast %cst_59 : f32 to vector<16x1024xf32>
    %121 = arith.mulf %120, %119 : vector<16x1024xf32>
    %cst_60 = arith.constant 0.707106769 : f32
    %122 = vector.broadcast %cst_60 : f32 to vector<16x1024xf32>
    %123 = arith.mulf %119, %122 : vector<16x1024xf32>
    %cst_61 = arith.constant 0.000000e+00 : f32
    %124 = vector.broadcast %cst_61 : f32 to vector<16x1024xf32>
    %125 = arith.cmpf oge, %123, %124 : vector<16x1024xf32>
    %cst_62 = arith.constant 1.000000e+00 : f32
    %cst_63 = arith.constant -1.000000e+00 : f32
    %126 = vector.broadcast %cst_62 : f32 to vector<16x1024xf32>
    %127 = vector.broadcast %cst_63 : f32 to vector<16x1024xf32>
    %128 = arith.select %125, %126, %127 : vector<16x1024xi1>, vector<16x1024xf32>
    %129 = math.absf %123 : vector<16x1024xf32>
    %cst_64 = arith.constant 0.327591091 : f32
    %130 = vector.broadcast %cst_64 : f32 to vector<16x1024xf32>
    %131 = arith.mulf %130, %129 : vector<16x1024xf32>
    %cst_65 = arith.constant 1.000000e+00 : f32
    %132 = vector.broadcast %cst_65 : f32 to vector<16x1024xf32>
    %133 = arith.addf %132, %131 : vector<16x1024xf32>
    %cst_66 = arith.constant 1.000000e+00 : f32
    %134 = vector.broadcast %cst_66 : f32 to vector<16x1024xf32>
    %135 = arith.divf %134, %133 : vector<16x1024xf32>
    %cst_67 = arith.constant 1.06140542 : f32
    %136 = vector.broadcast %cst_67 : f32 to vector<16x1024xf32>
    %137 = arith.mulf %136, %135 : vector<16x1024xf32>
    %cst_68 = arith.constant -1.45315206 : f32
    %138 = vector.broadcast %cst_68 : f32 to vector<16x1024xf32>
    %139 = arith.addf %137, %138 : vector<16x1024xf32>
    %140 = arith.mulf %139, %135 : vector<16x1024xf32>
    %cst_69 = arith.constant 1.42141378 : f32
    %141 = vector.broadcast %cst_69 : f32 to vector<16x1024xf32>
    %142 = arith.addf %140, %141 : vector<16x1024xf32>
    %143 = arith.mulf %142, %135 : vector<16x1024xf32>
    %cst_70 = arith.constant -0.284496725 : f32
    %144 = vector.broadcast %cst_70 : f32 to vector<16x1024xf32>
    %145 = arith.addf %143, %144 : vector<16x1024xf32>
    %146 = arith.mulf %145, %135 : vector<16x1024xf32>
    %cst_71 = arith.constant 0.254829586 : f32
    %147 = vector.broadcast %cst_71 : f32 to vector<16x1024xf32>
    %148 = arith.addf %146, %147 : vector<16x1024xf32>
    %149 = arith.mulf %148, %135 : vector<16x1024xf32>
    %cst_72 = arith.constant 0.000000e+00 : f32
    %150 = vector.broadcast %cst_72 : f32 to vector<16x1024xf32>
    %151 = arith.subf %150, %129 : vector<16x1024xf32>
    %152 = arith.mulf %151, %129 : vector<16x1024xf32>
    %153 = math.exp %152 : vector<16x1024xf32>
    %154 = arith.mulf %149, %153 : vector<16x1024xf32>
    %cst_73 = arith.constant 1.000000e+00 : f32
    %155 = vector.broadcast %cst_73 : f32 to vector<16x1024xf32>
    %156 = arith.subf %155, %154 : vector<16x1024xf32>
    %157 = arith.mulf %128, %156 : vector<16x1024xf32>
    %cst_74 = arith.constant 1.000000e+00 : f32
    %158 = vector.broadcast %cst_74 : f32 to vector<16x1024xf32>
    %159 = arith.addf %158, %157 : vector<16x1024xf32>
    %160 = arith.mulf %121, %159 : vector<16x1024xf32>
    %c0_75 = arith.constant 0 : index
    %c0_76 = arith.constant 0 : index
    %161 = vector.load %arg16[%c0_75, %c0_76] : memref<1024x256xf32, #tpu.memory_space<vmem>>, vector<1024x256xf32>
    %cst_77 = arith.constant dense<0.000000e+00> : vector<16x256xf32>
    %162 = tpu.matmul %160, %161, %cst_77 {dimension_numbers = #tpu.dot_dimension_numbers<[1], [0], [0], [1], [0, 0, 1, 1], [], []>} : vector<16x1024xf32>, vector<1024x256xf32>, vector<16x256xf32> -> vector<16x256xf32>
    %c0_78 = arith.constant 0 : index
    %c0_79 = arith.constant 0 : index
    %163 = vector.load %arg17[%c0_78, %c0_79] : memref<1x256xf32, #tpu.memory_space<vmem>>, vector<1x256xf32>
    %164 = vector.broadcast %163 : vector<1x256xf32> to vector<16x256xf32>
    %165 = arith.addf %162, %164 : vector<16x256xf32>
    %166 = arith.addf %88, %165 : vector<16x256xf32>
    %167 = vector.shape_cast %166 : vector<16x256xf32> to vector<2x8x256xf32>
    %c0_80 = arith.constant 0 : index
    %c0_81 = arith.constant 0 : index
    %c0_82 = arith.constant 0 : index
    %168 = vector.load %arg18[%c0_80, %c0_81, %c0_82] : memref<2x8x256xf32, #tpu.memory_space<vmem>>, vector<2x8x256xf32>
    tpu.vector_store %arg18[%c0_80, %c0_81, %c0_82], %167 {strides = array<i32>} : memref<2x8x256xf32, #tpu.memory_space<vmem>>, vector<2x8x256xf32>,
    return
  }
  func.func @transform_0(%arg0: i32) -> (i32, i32, i32) {
    %c0_i32 = arith.constant 0 : i32
    %c0_i32_0 = arith.constant 0 : i32
    %c0_i32_1 = arith.constant 0 : i32
    return %arg0, %c0_i32, %c0_i32_0 : i32, i32, i32
  }
  func.func @transform_1(%arg0: i32) -> (i32, i32) {
    %c0_i32 = arith.constant 0 : i32
    %c0_i32_0 = arith.constant 0 : i32
    %c0_i32_1 = arith.constant 0 : i32
    return %c0_i32, %c0_i32_0 : i32, i32
  }
  func.func @transform_2(%arg0: i32) -> (i32, i32) {
    %c0_i32 = arith.constant 0 : i32
    %c0_i32_0 = arith.constant 0 : i32
    %c0_i32_1 = arith.constant 0 : i32
    return %c0_i32, %c0_i32_0 : i32, i32
  }
  func.func @transform_3(%arg0: i32) -> (i32, i32) {
    %c0_i32 = arith.constant 0 : i32
    %c0_i32_0 = arith.constant 0 : i32
    %c0_i32_1 = arith.constant 0 : i32
    return %c0_i32, %c0_i32_0 : i32, i32
  }
  func.func @transform_4(%arg0: i32) -> (i32, i32) {
    %c0_i32 = arith.constant 0 : i32
    %c0_i32_0 = arith.constant 0 : i32
    %c0_i32_1 = arith.constant 0 : i32
    return %c0_i32, %c0_i32_0 : i32, i32
  }
  func.func @transform_5(%arg0: i32) -> (i32, i32) {
    %c0_i32 = arith.constant 0 : i32
    %c0_i32_0 = arith.constant 0 : i32
    %c0_i32_1 = arith.constant 0 : i32
    return %c0_i32, %c0_i32_0 : i32, i32
  }
  func.func @transform_6(%arg0: i32) -> (i32, i32) {
    %c0_i32 = arith.constant 0 : i32
    %c0_i32_0 = arith.constant 0 : i32
    %c0_i32_1 = arith.constant 0 : i32
    return %c0_i32, %c0_i32_0 : i32, i32
  }
  func.func @transform_7(%arg0: i32) -> (i32, i32) {
    %c0_i32 = arith.constant 0 : i32
    %c0_i32_0 = arith.constant 0 : i32
    %c0_i32_1 = arith.constant 0 : i32
    return %c0_i32, %c0_i32_0 : i32, i32
  }
  func.func @transform_8(%arg0: i32) -> (i32, i32) {
    %c0_i32 = arith.constant 0 : i32
    %c0_i32_0 = arith.constant 0 : i32
    %c0_i32_1 = arith.constant 0 : i32
    return %c0_i32, %c0_i32_0 : i32, i32
  }
  func.func @transform_9(%arg0: i32) -> (i32, i32) {
    %c0_i32 = arith.constant 0 : i32
    %c0_i32_0 = arith.constant 0 : i32
    %c0_i32_1 = arith.constant 0 : i32
    return %c0_i32, %c0_i32_0 : i32, i32
  }
  func.func @transform_10(%arg0: i32) -> (i32, i32) {
    %c0_i32 = arith.constant 0 : i32
    %c0_i32_0 = arith.constant 0 : i32
    %c0_i32_1 = arith.constant 0 : i32
    return %c0_i32, %c0_i32_0 : i32, i32
  }
  func.func @transform_11(%arg0: i32) -> (i32, i32) {
    %c0_i32 = arith.constant 0 : i32
    %c0_i32_0 = arith.constant 0 : i32
    %c0_i32_1 = arith.constant 0 : i32
    return %c0_i32, %c0_i32_0 : i32, i32
  }
  func.func @transform_12(%arg0: i32) -> (i32, i32) {
    %c0_i32 = arith.constant 0 : i32
    %c0_i32_0 = arith.constant 0 : i32
    %c0_i32_1 = arith.constant 0 : i32
    return %c0_i32, %c0_i32_0 : i32, i32
  }
  func.func @transform_13(%arg0: i32) -> (i32, i32) {
    %c0_i32 = arith.constant 0 : i32
    %c0_i32_0 = arith.constant 0 : i32
    %c0_i32_1 = arith.constant 0 : i32
    return %c0_i32, %c0_i32_0 : i32, i32
  }
  func.func @transform_14(%arg0: i32) -> (i32, i32) {
    %c0_i32 = arith.constant 0 : i32
    %c0_i32_0 = arith.constant 0 : i32
    %c0_i32_1 = arith.constant 0 : i32
    return %c0_i32, %c0_i32_0 : i32, i32
  }
  func.func @transform_15(%arg0: i32) -> (i32, i32) {
    %c0_i32 = arith.constant 0 : i32
    %c0_i32_0 = arith.constant 0 : i32
    %c0_i32_1 = arith.constant 0 : i32
    return %c0_i32, %c0_i32_0 : i32, i32
  }
  func.func @transform_16(%arg0: i32) -> (i32, i32) {
    %c0_i32 = arith.constant 0 : i32
    %c0_i32_0 = arith.constant 0 : i32
    %c0_i32_1 = arith.constant 0 : i32
    return %c0_i32, %c0_i32_0 : i32, i32
  }
  func.func @transform_17(%arg0: i32) -> (i32, i32, i32) {
    %c0_i32 = arith.constant 0 : i32
    %c0_i32_0 = arith.constant 0 : i32
    %c0_i32_1 = arith.constant 0 : i32
    return %arg0, %c0_i32, %c0_i32_0 : i32, i32, i32
  }
}

</mosaic_0001>

<bundles_post_ra>
// kernel: tpu_custom_call.1
= control target key start
LH: loop header
LB: loop body
LE: loop exit
PB: predicated region body
PF: predicated region fallthrough
CT: control target
= control target key end

     0   :  { %s6209_s0 = inlined_call_operand.hbm [shape: f32[4,8,256], index: 0, kind: input, shape index: {}]   ;;  %s6210_s1 = inlined_call_operand.vmem [shape: f32[1,256], index: 1, kind: input, shape index: {}]   ;;  %s6211_s2 = inlined_call_operand.vmem [shape: f32[1,256], index: 2, kind: input, shape index: {}]   ;;  %s6212_s3 = inlined_call_operand.hbm [shape: f32[256,256], index: 3, kind: input, shape index: {}]   ;;  %s6213_s4 = inlined_call_operand.vmem [shape: f32[1,256], index: 4, kind: input, shape index: {}]   ;;  %s6214_s5 = inlined_call_operand.hbm [shape: f32[256,256], index: 5, kind: input, shape index: {}]   ;;  %s6215_s6 = inlined_call_operand.vmem [shape: f32[1,256], index: 6, kind: input, shape index: {}]   ;;  %s6216_s7 = inlined_call_operand.hbm [shape: f32[256,256], index: 7, kind: input, shape index: {}]   ;;  %s6217_s8 = inlined_call_operand.vmem [shape: f32[1,256], index: 8, kind: input, shape index: {}]   ;;  %s6218_s9 = inlined_call_operand.hbm [shape: f32[256,256], index: 9, kind: input, shape index: {}]   ;;  %s6219_s10 = inlined_call_operand.vmem [shape: f32[1,256], index: 10, kind: input, shape index: {}]   ;;  %s6220_s11 = inlined_call_operand.vmem [shape: f32[1,256], index: 11, kind: input, shape index: {}]   ;;  %s6221_s12 = inlined_call_operand.vmem [shape: f32[1,256], index: 12, kind: input, shape index: {}]   ;;  %s6222_s13 = inlined_call_operand.hbm [shape: f32[256,1024], index: 13, kind: input, shape index: {}]   ;;  %s6223_s14 = inlined_call_operand.vmem [shape: f32[1,1024], index: 14, kind: input, shape index: {}]   ;;  %s6224_s15 = inlined_call_operand.hbm [shape: f32[1024,256], index: 15, kind: input, shape index: {}]   ;;  %s6225_s16 = inlined_call_operand.vmem [shape: f32[1,256], index: 16, kind: input, shape index: {}]   ;;  %s6226_s17 = inlined_call_operand.hbm [shape: f32[4,8,256], index: 17, kind: output, shape index: {}]  }
   0x1   :  { %6237 = sst [smem:[#allocation21_spill]] %s6209_s0 }
   0x2   :  { %6238 = sst [smem:[#allocation22_spill]] %s6210_s1 }
   0x3   :  { %6239 = sst [smem:[#allocation23_spill]] %s6212_s3 }
   0x4   :  { %6240 = sst [smem:[#allocation24_spill]] %s6214_s5 }
   0x5   :  { %6241 = sst [smem:[#allocation25_spill]] %s6216_s7 }
   0x6   :  { %6242 = sst [smem:[#allocation26_spill]] %s6217_s8 }
   0x7   :  { %6243 = sst [smem:[#allocation27_spill]] %s6219_s10 }
   0x8   :  { %6244 = sst [smem:[#allocation28_spill]] %s6220_s11 }
   0x9   :  { %6245 = sst [smem:[#allocation29_spill]] %s6221_s12 }
   0xa   :  { %6246 = sst [smem:[#allocation30_spill]] %s6223_s14 }
   0xb   :  { %6247 = sst [smem:[#allocation31_spill]] %s6225_s16 }
   0xc   :  { %6248 = sst [smem:[#allocation32_spill]] %s6226_s17 }
   0xd   :  { %22 = vsyncpa [#allocation4], 0 }
   0xe   :  { %24 = vsyncpa [#allocation4 + $0x1], 0 }
   0xf   :  { %25 = vsyncpa [#allocation7], 0 }
  0x10   :  { %26 = vsyncpa [#allocation10], 0 }
  0x11   :  { %27 = vsyncpa [#allocation13], 0 }
  0x12   :  { %28 = vsyncpa [#allocation5], 0 }
  0x13   :  { %30 = vsyncpa [#allocation5 + $0x1], 0  ;;  %s5272_s24 = smov 0   ;;  %s5274_s25 = smov 0  }
  0x14   :  { %s5276_s26 = smov 0   ;;  %s5278_s27 = smov 0  }
  0x15 LB: > { %s5165_s28 = smov [#allocation6]   ;;  %s5293_s0 = sadd.s32 4294967295, %s5163_s27   ;;  %s5163_s27 = sphi %s5278_s27, %s6285_s27   ;;  %s5159_s26 = sphi %s5276_s26, %s6284_s26   ;;  %s5155_s25 = sphi %s5274_s25, %s6283_s25   ;;  %s5151_s24 = sphi %s5272_s24, %s6282_s24  }
  0x16   : > { %s447_s29 = sshll.u32 %s5165_s28, 4  ;;  %p3803_p0 = scmp.ge.s32.totalorder %s5163_s27, 1  ;;  %s5298_s29 = int_to_ptr.vmem [resolvable:$true] %s447_s29 }
  0x17   : > { %p6234_p1 = scmp.eq.s32.totalorder %s5293_s0, 0  ;;  %p429_p2 = scmp.lt.s32.totalorder %s5163_s27, 3 }
  0x18   : > { %s5166_s18 = smov [#allocation9]   ;;  %s5167_s20 = smov [#allocation12]  }
  0x19   : > { %p5300_p3 = pnand %p3803_p0, %p429_p2  ;;  %s479_s19 = sshll.u32 %s5166_s18, 4  ;;  %s5313_s19 = int_to_ptr.vmem [resolvable:$true] %s479_s19 }
  0x1a   : > { %s517_s21 = sshll.u32 %s5167_s20, 4  ;;  %s6251_s3 = sld [smem:[#allocation23_spill]]  ;;  %s5315_s21 = int_to_ptr.vmem [resolvable:$true] %s517_s21 }
  0x1b   : > { %s6249_s30 = scalar_select %p5300_p3, 1, 0 }
  0x1c   : > { %p4706_p5 = pneg %p5300_p3 }
  0x1e   : > { %p5309_p6 = pnand %p4706_p5, %p6234_p1 }
  0x20   : > { %s4887_s28 = scalar_lea.hbm %s6251_s3, 8192  ;;  %p5325_p8 = pneg %p5309_p6 }
  0x21   : > { %p4888_p7 = scmp.ne.s32.totalorder %s6251_s3, %s4887_s28  ;;  %p4894_p11 = scmp.lt.u32.totalorder %s4887_s28, %s6251_s3 }
  0x23   : > { %p4890_p9 = pnand %p5325_p8, %p4888_p7 }
  0x25   : > { %p4891_p10 = pneg %p4890_p9 }
  0x27   : > { %p4896_p12 = pnand %p4894_p11, %p4891_p10 }
  0x29   : > { %4899 = shalt.err (!%p4896_p12)
}
  0x2a   : > { %s4900_s16 = scalar_lea.vmem %s5298_s29, 8192  ;;  %p4908_p5 = scmp.lt.s32.totalorder %s5298_s29, %s5298_s29 }
  0x2b   : > { %p4901_p13 = scmp.ne.s32.totalorder %s5298_s29, %s4900_s16  ;;  %p4909_p4 = scmp.lt.s32.totalorder %s4900_s16, %s4900_s16 }
  0x2d   : > { %p4903_p0 = pnand %p4901_p13, %p5325_p8  ;;  %p4910_p7 = por %p4909_p4, %p4908_p5 }
  0x2f   : > { %p4904_p2 = pneg %p4903_p0 }
  0x31   : > { %p4911_p9 = pnand %p4910_p7, %p4904_p2 }
  0x33   : > { %4914 = shalt.err (!%p4911_p9)
}
  0x34   : > { %s6230_s17 = smov 256   ;;  %s6232_s14 = smov 16  }
  0x35   : > { %4709 = dma.hbm_to_vmem [thread:$0]  (!%p5309_p6), %s6251_s3, 8192, %s5298_s29, [#allocation7], %s6230_s17, %s6230_s17, %s6232_s14  }
  0x36   : > { %s6253_s7 = sld [smem:[#allocation25_spill]] }
  0x3c   : > { %s4915_s16 = scalar_lea.hbm %s6253_s7, 8192 }
  0x3d   : > { %p4916_p4 = scmp.ne.s32.totalorder %s6253_s7, %s4915_s16  ;;  %p4922_p12 = scmp.lt.u32.totalorder %s4915_s16, %s6253_s7 }
  0x3f   : > { %p4918_p10 = pnand %p4916_p4, %p5325_p8 }
  0x41   : > { %p4919_p11 = pneg %p4918_p10 }
  0x43   : > { %p4924_p13 = pnand %p4922_p12, %p4919_p11 }
  0x45   : > { %4927 = shalt.err (!%p4924_p13)
}
  0x46   : > { %s4928_s29 = scalar_lea.vmem %s5313_s19, 8192  ;;  %p4936_p7 = scmp.lt.s32.totalorder %s5313_s19, %s5313_s19 }
  0x47   : > { %p4929_p0 = scmp.ne.s32.totalorder %s5313_s19, %s4928_s29  ;;  %p4937_p9 = scmp.lt.s32.totalorder %s4928_s29, %s4928_s29 }
  0x49   : > { %p4931_p2 = pnand %p4929_p0, %p5325_p8  ;;  %p4938_p4 = por %p4937_p9, %p4936_p7 }
  0x4b   : > { %p4932_p5 = pneg %p4931_p2 }
  0x4d   : > { %p4939_p10 = pnand %p4938_p4, %p4932_p5 }
  0x4f   : > { %4942 = shalt.err (!%p4939_p10)
}
  0x50   : > { %4715 = dma.hbm_to_vmem [thread:$0]  (!%p5309_p6), %s6253_s7, 8192, %s5313_s19, [#allocation10], %s6230_s17, %s6230_s17, %s6232_s14  }
  0x51   : > { %s4943_s22 = scalar_lea.hbm %s6222_s13, 32768 }
  0x52   : > { %p4944_p11 = scmp.ne.s32.totalorder %s6222_s13, %s4943_s22  ;;  %p4950_p0 = scmp.lt.u32.totalorder %s4943_s22, %s6222_s13 }
  0x54   : > { %p4946_p12 = pnand %p4944_p11, %p5325_p8 }
  0x56   : > { %p4947_p13 = pneg %p4946_p12 }
  0x58   : > { %p4952_p2 = pnand %p4950_p0, %p4947_p13 }
  0x5a   : > { %4955 = shalt.err (!%p4952_p2)
}
  0x5b   : > { %s4956_s19 = scalar_lea.vmem %s5315_s21, 32768  ;;  %p4964_p4 = scmp.lt.s32.totalorder %s5315_s21, %s5315_s21 }
  0x5c   : > { %p4957_p5 = scmp.ne.s32.totalorder %s5315_s21, %s4956_s19  ;;  %p4965_p10 = scmp.lt.s32.totalorder %s4956_s19, %s4956_s19 }
  0x5e   : > { %p4959_p7 = pnand %p4957_p5, %p5325_p8  ;;  %p4966_p11 = por %p4965_p10, %p4964_p4 }
  0x60   : > { %p4960_p9 = pneg %p4959_p7 }
  0x62   : > { %p4967_p12 = pnand %p4966_p11, %p4960_p9 }
  0x64   : > { %4970 = shalt.err (!%p4967_p12)
}
  0x65   : > { %s5170_s29 = smov 1024   ;;  %s5171_s8 = smov 64  }
  0x66   : > { %4721 = dma.hbm_to_vmem [thread:$0]  (!%p5309_p6), %s6222_s13, 32768, %s5315_s21, [#allocation13], %s5170_s29, %s5170_s29, %s5171_s8  }
  0x67   : > { %s5172_s12 = smov [#allocation8]   ;;  %s5173_s23 = smov [#allocation11]  }
  0x68   : > { %s463_s22 = sshll.u32 %s5172_s12, 4  ;;  %s495_s28 = sshll.u32 %s5173_s23, 4  ;;  %s464_s22 = int_to_ptr.vmem [resolvable:$true] %s463_s22  ;;  %s496_s28 = int_to_ptr.vmem [resolvable:$true] %s495_s28 }
  0x69   : > { %s6254_s5 = sld [smem:[#allocation24_spill]] }
  0x6f   : > { %s4971_s19 = scalar_lea.hbm %s6254_s5, 8192 }
  0x70   : > { %p4972_p13 = scmp.ne.s32.totalorder %s6254_s5, %s4971_s19  ;;  %p4978_p5 = scmp.lt.u32.totalorder %s4971_s19, %s6254_s5 }
  0x72   : > { %p4974_p0 = pnand %p4972_p13, %p5325_p8 }
  0x74   : > { %p4975_p2 = pneg %p4974_p0 }
  0x76   : > { %p4980_p7 = pnand %p4978_p5, %p4975_p2 }
  0x78   : > { %4983 = shalt.err (!%p4980_p7)
}
  0x79   : > { %s4984_s21 = scalar_lea.vmem %s464_s22, 8192  ;;  %p4992_p11 = scmp.lt.s32.totalorder %s464_s22, %s464_s22 }
  0x7a   : > { %p4985_p9 = scmp.ne.s32.totalorder %s464_s22, %s4984_s21  ;;  %p4993_p12 = scmp.lt.s32.totalorder %s4984_s21, %s4984_s21 }
  0x7c   : > { %p4987_p4 = pnand %p4985_p9, %p5325_p8  ;;  %p4994_p1 = por %p4993_p12, %p4992_p11 }
  0x7e   : > { %p4988_p10 = pneg %p4987_p4 }
  0x80   : > { %p4995_p3 = pnand %p4994_p1, %p4988_p10 }
  0x82   : > { %4998 = shalt.err (!%p4995_p3)
}
  0x83   : > { %s6255_s17 = smov 16   ;;  %s6256_s14 = smov 256  }
  0x84   : > { %4712 = dma.hbm_to_vmem [thread:$0]  (!%p5309_p6), %s6254_s5, 8192, %s464_s22, [#allocation7], %s6256_s14, %s6256_s14, %s6255_s17  }
  0x85   : > { %s4999_s10 = scalar_lea.hbm %s6218_s9, 8192 }
  0x86   : > { %p5000_p1 = scmp.ne.s32.totalorder %s6218_s9, %s4999_s10  ;;  %p5006_p0 = scmp.lt.u32.totalorder %s4999_s10, %s6218_s9 }
  0x88   : > { %p5002_p3 = pnand %p5000_p1, %p5325_p8 }
  0x8a   : > { %p5003_p13 = pneg %p5002_p3 }
  0x8c   : > { %p5008_p2 = pnand %p5006_p0, %p5003_p13 }
  0x8e   : > { %5011 = shalt.err (!%p5008_p2)
}
  0x8f   : > { %s5012_s16 = scalar_lea.vmem %s496_s28, 8192  ;;  %p5020_p4 = scmp.lt.s32.totalorder %s496_s28, %s496_s28 }
  0x90   : > { %p5013_p5 = scmp.ne.s32.totalorder %s496_s28, %s5012_s16  ;;  %p5021_p10 = scmp.lt.s32.totalorder %s5012_s16, %s5012_s16 }
  0x92   : > { %p5015_p7 = pnand %p5013_p5, %p5325_p8  ;;  %p5022_p11 = por %p5021_p10, %p5020_p4 }
  0x94   : > { %p5016_p9 = pneg %p5015_p7 }
  0x96   : > { %p5023_p12 = pnand %p5022_p11, %p5016_p9 }
  0x98   : > { %5026 = shalt.err (!%p5023_p12)
}
  0x99   : > { %4718 = dma.hbm_to_vmem [thread:$0]  (!%p5309_p6), %s6218_s9, 8192, %s496_s28, [#allocation10], %s6256_s14, %s6256_s14, %s6255_s17  }
  0x9a   : > { %s5174_s21 = smov [#allocation14]   ;;  %s5027_s8 = scalar_lea.hbm %s6224_s15, 32768 }
  0x9b   : > { %s533_s3 = sshll.u32 %s5174_s21, 4  ;;  %p5028_p1 = scmp.ne.s32.totalorder %s6224_s15, %s5027_s8  ;;  %s534_s3 = int_to_ptr.vmem [resolvable:$true] %s533_s3 }
  0x9c   : > { %p5034_p0 = scmp.lt.u32.totalorder %s5027_s8, %s6224_s15 }
  0x9d   : > { %p5030_p3 = pnand %p5028_p1, %p5325_p8 }
  0x9f   : > { %p5031_p13 = pneg %p5030_p3 }
  0xa1   : > { %p5036_p2 = pnand %p5034_p0, %p5031_p13 }
  0xa3   : > { %5039 = shalt.err (!%p5036_p2)
}
  0xa4   : > { %s5040_s28 = scalar_lea.vmem %s534_s3, 32768  ;;  %p5048_p4 = scmp.lt.s32.totalorder %s534_s3, %s534_s3 }
  0xa5   : > { %p5041_p5 = scmp.ne.s32.totalorder %s534_s3, %s5040_s28  ;;  %p5049_p10 = scmp.lt.s32.totalorder %s5040_s28, %s5040_s28 }
  0xa7   : > { %p5043_p7 = pnand %p5041_p5, %p5325_p8  ;;  %p5050_p11 = por %p5049_p10, %p5048_p4 }
  0xa9   : > { %p5044_p9 = pneg %p5043_p7 }
  0xab   : > { %p5051_p12 = pnand %p5050_p11, %p5044_p9 }
  0xad   : > { %5054 = shalt.err (!%p5051_p12)
}
  0xae   : > { %4724 = dma.hbm_to_vmem [thread:$0]  (!%p5309_p6), %s6224_s15, 32768, %s534_s3, [#allocation13], %s6256_s14, %s6256_s14, %s6255_s17  }
  0xaf   : > { %s3802_s1 = sadd.s32 4294967294, %s5163_s27   ;;  %s5463_s18 = sadd.s32 1, %s5163_s27  }
  0xb0   : > { %s40_s22 = ssub.s32 %s5163_s27, %s5463_s18  ;;  %s43_s19 = sadd.s32 1, %s5159_s26 }
  0xb1   : > { %p41_p8 = scmp.eq.s32.totalorder %s40_s22, 0  ;;  %p50_p1 = scmp.ne.s32.totalorder %s5159_s26, %s5155_s25 }
  0xb2   : > { %p51_p3 = scmp.eq.s32.totalorder %s5163_s27, 0  ;;  %p56_p13 = scmp.ne.s32.totalorder %s5155_s25, %s5151_s24 }
  0xb3   : > { %s5474_s21 = scalar_select %p41_p8, %s5159_s26, %s43_s19  }
  0xb4   : > { %p5476_p0 = por %p51_p3, %p50_p1  ;;  %p6258_p2 = scmp.eq.s32.totalorder %s5293_s0, 0 }
  0xb5   : > { %p416_p5 = scmp.eq.s32.totalorder %s5293_s0, 1  ;;  %p422_p7 = scmp.eq.s32.totalorder %s3802_s1, 1 }
  0xb6   : > { %p5482_p6 = por %p6258_p2, %p56_p13  ;;  %p4739_p9 = scmp.lt.s32.totalorder %s5163_s27, 2 }
  0xb7   : > { %s550_s29 = sand.u32 1, %s5159_s26   ;;  %p5489_p4 = por %p416_p5, %p50_p1 }
  0xb8   : > { %p5493_p10 = por %p422_p7, %p56_p13  ;;  %s3811_s11 = sshll.u32 %s550_s29, 5 }
  0xb9   : > { %s6260_s8 = scalar_select %p5489_p4, 1, 0 }
  0xba   : > { %s6261_s10 = scalar_select %p5493_p10, 1, 0 }
  0xbb   : > { %s3835_s12 = sshll.u32 %s5163_s27, 9  ;;  %s6262_s20 = sld [smem:[#allocation21_spill]] }
  0xbc   : > { %s554_s1 = scalar_lea.vmem [#allocation3], %s3811_s11  ;;  %p5507_p11 = pnand %p4739_p9, %p5476_p0 }
  0xbd   : > { %s562_s22 = sshll.u32 %s554_s1, 4  ;;  %s5511_s5 = scalar_lea.sflag [#allocation4], %s550_s29  ;;  %s5503_s22 = int_to_ptr.vmem [resolvable:$true] %s562_s22 }
  0xbe   : > { %p5057_p8 = pneg %p5507_p11 }
  0xc1   : > { %s5501_s16 = scalar_lea.hbm %s6262_s20, %s3835_s12  ;;  %s5060_s7 = scalar_lea.hbm %s6262_s20, 1024 }
  0xc2   : > { %s5055_s23 = scalar_lea.hbm %s5501_s16, 512  ;;  %p5061_p13 = scmp.lt.u32.totalorder %s5501_s16, %s6262_s20 }
  0xc3   : > { %p5056_p12 = scmp.ne.s32.totalorder %s5501_s16, %s5055_s23  ;;  %p5062_p0 = scmp.lt.u32.totalorder %s5060_s7, %s5055_s23 }
  0xc4   : > { %p5064_p5 = scmp.lt.u32.totalorder %s5055_s23, %s5501_s16 }
  0xc5   : > { %p5058_p1 = pnand %p5057_p8, %p5056_p12  ;;  %p5063_p2 = por %p5062_p0, %p5061_p13 }
  0xc7   : > { %p5059_p3 = pneg %p5058_p1  ;;  %p5065_p7 = por %p5064_p5, %p5063_p2 }
  0xc9   : > { %p5066_p9 = pnand %p5065_p7, %p5059_p3 }
  0xcb   : > { %5069 = shalt.err (!%p5066_p9)
}
  0xcc   : > { %s5070_s29 = scalar_lea.vmem %s5503_s22, 512  ;;  %s5175_s11 = smov [#allocation3]  }
  0xcd   : > { %p5071_p12 = scmp.ne.s32.totalorder %s5503_s22, %s5070_s29  ;;  %s5075_s12 = sshll.u32 %s5175_s11, 4  ;;  %s5076_s12 = int_to_ptr.vmem [resolvable:$false] %s5075_s12 }
  0xce   : > { %s5077_s28 = scalar_lea.vmem %s5076_s12, 1024  ;;  %p5078_p4 = scmp.lt.s32.totalorder %s5503_s22, %s5076_s12 }
  0xcf   : > { %p5073_p1 = pnand %p5071_p12, %p5057_p8  ;;  %p5079_p13 = scmp.lt.s32.totalorder %s5077_s28, %s5070_s29 }
  0xd1   : > { %p5074_p10 = pneg %p5073_p1  ;;  %p5080_p0 = por %p5079_p13, %p5078_p4 }
  0xd3   : > { %p5081_p2 = pnand %p5080_p0, %p5074_p10 }
  0xd5   : > { %5084 = shalt.err (!%p5081_p2)
}
  0xd6   : > { %4728 = dma.hbm_to_vmem [thread:$0]  (!%p5507_p11), %s5501_s16, 512, %s5503_s22, %s5511_s5, %s6256_s14, %s6256_s14, %s6255_s17  }
  0xd7   : > { %p6264_p8 = scmp.ne.s32.totalorder %s6249_s30, 0 }
  0xd8   : > { %s5545_s23 = sand.u32 (!%p6264_p8), 1, %s5155_s25  }
  0xd9   : > { %574 = sbr.rel (%p6264_p8) target bundleno = 2799 (0xaef), region = 88  ;;  %s3816_s7 = sshll.u32 (!%p6264_p8), %s5545_s23, 5 }
  0xda   : > { %s577_s1 = scalar_lea.sflag (!%p6264_p8), [#allocation4], %s5545_s23  ;;  %s5551_s19 = scalar_lea.vmem (!%p6264_p8), [#allocation3], %s3816_s7 }
  0xe0   : > { %5130 = dma.done.wait (%p5482_p6), %s577_s1, 512  }
  0xe1   : > { %5132 = vsyncadd (%p5482_p6), %s577_s1, 4294966784  ;;  %p6265_p4 = scmp.eq.s32.totalorder %s5293_s0, 0 }
  0xe3   : > { %5134 = dma.done.wait (%p6265_p4), [#allocation7], 16384   ;;  %p6266_p10 = pmov %p6265_p4 }
  0xe4   : > { %p6267_p11 = pmov %p6265_p4 }
  0xe5   : > { %5136 = vsyncadd (%p6266_p10), [#allocation7], 4294950912 }
  0xe6   : > { %5138 = dma.done.wait (%p6267_p11), [#allocation10], 16384   ;;  %p6268_p3 = pmov %p6265_p4 }
  0xe8   : > { %5140 = vsyncadd (%p6268_p3), [#allocation10], 4294950912  ;;  %p6269_p5 = pmov %p6268_p3 }
  0xe9   : > { %p6270_p7 = pmov %p6268_p3 }
  0xea   : > { %5142 = dma.done.wait (%p6269_p5), [#allocation13], 65536  }
  0xeb   : > { %5144 = vsyncadd (%p6270_p7), [#allocation13], 4294901760  ;;  %v5570_v0 = vld [vmem:[%s5551_s19] sm:$0xff]  ;;  %v5573_v1 = vld [vmem:[%s5551_s19 + $0x8] sm:$0xff]  ;;  %s6271_s17 = sld [smem:[#allocation22_spill]]  ;;  %vm5177_vm0 = vmmov 0  }
  0xec   : > { %v5576_v2 = vld [vmem:[%s5551_s19 + $0x10] sm:$0xff]  ;;  %v663_v3 = vadd.f32 %v5573_v1, %v5570_v0  ;;  %v5581_v4 = vld [vmem:[%s5551_s19 + $0x18] sm:$0xff]  ;;  %v727_v6 = vld [vmem:[#allocation6 + $0x8] sm:$0xff]  ;;  %s6272_s1 = sld [smem:[#allocation26_spill]]  ;;  %vm1327_vm1 = vcmask 64512   ;;  %s6274_s3 = sld [smem:[#allocation28_spill]] }
  0xed   : > { %v666_v5 = vadd.f32 %v5581_v4, %v5576_v2  ;;  %v729_v7 = vld [vmem:[#allocation6 + $0x18] sm:$0xff]  ;;  %v726_v8 = vld [vmem:[#allocation6] sm:$0xff]  ;;  %v728_v10 = vld [vmem:[#allocation6 + $0x10] sm:$0xff]  ;;  %s6275_s29 = sld [smem:[#allocation29_spill]]  ;;  %s6276_s28 = sld [smem:[#allocation30_spill]] }
  0xee   : > { %664 = vadd.xlane.f32.xlu0 %v663_v3  ;;  %v3894_v9 = vpack.c.bf16 %v729_v7, %v727_v6  ;;  %v731_v11 = vld [vmem:[#allocation6 + $0x28] sm:$0xff]  ;;  %v733_v12 = vld [vmem:[#allocation6 + $0x38] sm:$0xff]  ;;  %v3896_v13 = vpack.c.bf16 %v728_v10, %v726_v8  ;;  %v730_v15 = vld [vmem:[#allocation6 + $0x20] sm:$0xff]  ;;  %s654_s14 = scalar_lea.vmem [#allocation15], %s3816_s7  ;;  %s3837_s16 = sshll.u32 %s5293_s0, 9 }
  0xef   : > { %v3898_v14 = vpack.c.bf16 %v733_v12, %v731_v11  ;;  %v732_v16 = vld [vmem:[#allocation6 + $0x30] sm:$0xff]  ;;  %v735_v17 = vld [vmem:[#allocation6 + $0x48] sm:$0xff]  ;;  %v737_v18 = vld [vmem:[#allocation6 + $0x58] sm:$0xff]  ;;  %s3658_s0 = scalar_lea.sflag [#allocation5], %s5545_s23  ;;  %p6279_p9 = scmp.ne.s32.totalorder %s6260_s8, 0 }
  0xf0   : > { %3895 = vmatprep.subr.bf16.mxu1 %v3894_v9  ;;  %v3900_v19 = vpack.c.bf16 %v732_v16, %v730_v15  ;;  %v3902_v20 = vpack.c.bf16 %v737_v18, %v735_v17  ;;  %v734_v21 = vld [vmem:[#allocation6 + $0x40] sm:$0xff]  ;;  %v736_v22 = vld [vmem:[#allocation6 + $0x50] sm:$0xff]  ;;  %v739_v23 = vld [vmem:[#allocation6 + $0x68] sm:$0xff] }
  0xf1   : > { %3897 = vmatpush1.bf16.msra.mxu1 %v3896_v13  ;;  %v741_v24 = vld [vmem:[#allocation6 + $0x78] sm:$0xff]  ;;  %v3904_v25 = vpack.c.bf16 %v736_v22, %v734_v21  ;;  %v738_v27 = vld [vmem:[#allocation6 + $0x60] sm:$0xff]  ;;  %v740_v28 = vld [vmem:[#allocation6 + $0x70] sm:$0xff] }
  0xf2   : > { %667 = vadd.xlane.f32.xlu0 %v666_v5  ;;  %3899 = vmatprep.subr.bf16.mxu1 %v3898_v14  ;;  %v3906_v26 = vpack.c.bf16 %v741_v24, %v739_v23  ;;  %v743_v29 = vld [vmem:[#allocation6 + $0x88] sm:$0xff]  ;;  %v745_v30 = vld [vmem:[#allocation6 + $0x98] sm:$0xff]  ;;  %v3908_v31 = vpack.c.bf16 %v740_v28, %v738_v27  ;;  %v742_v33 = vld [vmem:[#allocation6 + $0x80] sm:$0xff] }
  0xf3   : > { %v3910_v32 = vpack.c.bf16 %v745_v30, %v743_v29  ;;  %v744_v34 = vld [vmem:[#allocation6 + $0x90] sm:$0xff]  ;;  %v747_v35 = vld [vmem:[#allocation6 + $0xa8] sm:$0xff]  ;;  %v749_v36 = vld [vmem:[#allocation6 + $0xb8] sm:$0xff] }
  0xf4   : > { %v3912_v37 = vpack.c.bf16 %v744_v34, %v742_v33  ;;  %v3914_v38 = vpack.c.bf16 %v749_v36, %v747_v35  ;;  %v746_v39 = vld [vmem:[#allocation6 + $0xa0] sm:$0xff]  ;;  %v748_v40 = vld [vmem:[#allocation6 + $0xb0] sm:$0xff]  ;;  %v751_v41 = vld [vmem:[#allocation6 + $0xc8] sm:$0xff] }
  0xf5   : > { %3901 = vmatpush1.bf16.msra.mxu1 %v3900_v19  ;;  %v753_v42 = vld [vmem:[#allocation6 + $0xd8] sm:$0xff]  ;;  %v3916_v43 = vpack.c.bf16 %v748_v40, %v746_v39  ;;  %v750_v45 = vld [vmem:[#allocation6 + $0xc0] sm:$0xff]  ;;  %v752_v46 = vld [vmem:[#allocation6 + $0xd0] sm:$0xff] }
  0xf6   : > { %3903 = vmatprep.subr.bf16.mxu1 %v3902_v20  ;;  %v3918_v44 = vpack.c.bf16 %v753_v42, %v751_v41  ;;  %v755_v47 = vld [vmem:[#allocation6 + $0xe8] sm:$0xff]  ;;  %v757_v48 = vld [vmem:[#allocation6 + $0xf8] sm:$0xff]  ;;  %v3920_v49 = vpack.c.bf16 %v752_v46, %v750_v45  ;;  %v754_v51 = vld [vmem:[#allocation6 + $0xe0] sm:$0xff] }
  0xf7   : > { %v3922_v50 = vpack.c.bf16 %v757_v48, %v755_v47  ;;  %v756_v52 = vld [vmem:[#allocation6 + $0xf0] sm:$0xff]  ;;  %v759_v53 = vld [vmem:[#allocation6 + $0x108] sm:$0xff]  ;;  %v761_v54 = vld [vmem:[#allocation6 + $0x118] sm:$0xff] }
  0xf8   : > { %v3924_v55 = vpack.c.bf16 %v756_v52, %v754_v51  ;;  %v3926_v56 = vpack.c.bf16 %v761_v54, %v759_v53  ;;  %v758_v57 = vld [vmem:[#allocation6 + $0x100] sm:$0xff]  ;;  %v760_v58 = vld [vmem:[#allocation6 + $0x110] sm:$0xff]  ;;  %v763_v59 = vld [vmem:[#allocation6 + $0x128] sm:$0xff] }
  0xf9   : > { %3905 = vmatpush1.bf16.msra.mxu1 %v3904_v25  ;;  %v765_v60 = vld [vmem:[#allocation6 + $0x138] sm:$0xff]  ;;  %v3928_v61 = vpack.c.bf16 %v760_v58, %v758_v57  ;;  %v762_v63 = vld [vmem:[#allocation6 + $0x120] sm:$0xff]  ;;  %v764_v3 = vld [vmem:[#allocation6 + $0x130] sm:$0xff]  ;;  %v697_v57 = vlaneseq }
  0xfa   : > { %3907 = vmatprep.subr.bf16.mxu1 %v3906_v26  ;;  %v3930_v62 = vpack.c.bf16 %v765_v60, %v763_v59  ;;  %v767_v5 = vld [vmem:[#allocation6 + $0x148] sm:$0xff]  ;;  %v769_v6 = vld [vmem:[#allocation6 + $0x158] sm:$0xff]  ;;  %v3932_v7 = vpack.c.bf16 %v764_v3, %v762_v63  ;;  %v766_v9 = vld [vmem:[#allocation6 + $0x140] sm:$0xff] }
  0xfb   : > { %v3934_v8 = vpack.c.bf16 %v769_v6, %v767_v5  ;;  %v768_v10 = vld [vmem:[#allocation6 + $0x150] sm:$0xff]  ;;  %v771_v24 = vld [vmem:[#allocation6 + $0x168] sm:$0xff]  ;;  %v773_v25 = vld [vmem:[#allocation6 + $0x178] sm:$0xff] }
  0xfc   : > { %v3936_v11 = vpack.c.bf16 %v768_v10, %v766_v9  ;;  %v3938_v26 = vpack.c.bf16 %v773_v25, %v771_v24  ;;  %v770_v27 = vld [vmem:[#allocation6 + $0x160] sm:$0xff]  ;;  %v772_v28 = vld [vmem:[#allocation6 + $0x170] sm:$0xff]  ;;  %v777_v29 = vld [vmem:[#allocation6 + $0x198] sm:$0xff] }
  0xfd   : > { %3909 = vmatpush1.bf16.msra.mxu1 %v3908_v31  ;;  %v774_v31 = vld [vmem:[#allocation6 + $0x180] sm:$0xff]  ;;  %v779_v34 = vld [vmem:[#allocation6 + $0x1a8] sm:$0xff]  ;;  %v781_v35 = vld [vmem:[#allocation6 + $0x1b8] sm:$0xff] }
  0xfe   : > { %3911 = vmatprep.subr.bf16.mxu1 %v3910_v32  ;;  %v776_v32 = vld [vmem:[#allocation6 + $0x190] sm:$0xff]  ;;  %v3946_v36 = vpack.c.bf16 %v781_v35, %v779_v34  ;;  %v783_v40 = vld [vmem:[#allocation6 + $0x1c8] sm:$0xff]  ;;  %v785_v41 = vld [vmem:[#allocation6 + $0x1d8] sm:$0xff] }
  0xff   : > { %v3944_v33 = vpack.c.bf16 %v776_v32, %v774_v31  ;;  %v782_v42 = vld [vmem:[#allocation6 + $0x1c0] sm:$0xff]  ;;  %v787_v45 = vld [vmem:[#allocation6 + $0x1e8] sm:$0xff]  ;;  %v789_v46 = vld [vmem:[#allocation6 + $0x1f8] sm:$0xff] }
 0x100   : > { %v3954_v48 = vpack.c.bf16 %v789_v46, %v787_v45  ;;  %v880_v52 = vld [vmem:[#allocation8 + $0x8] sm:$0xff]  ;;  %v882_v53 = vld [vmem:[#allocation8 + $0x18] sm:$0xff]  ;;  %v661_v5 = vld [vmem:[%s6271_s17] sm:$0x3]  ;;  %s6273_s17 = sld [smem:[#allocation27_spill]] }
 0x101   : > { %3913 = vmatpush1.bf16.msra.mxu1 %v3912_v37  ;;  %v778_v37 = vld [vmem:[#allocation6 + $0x1a0] sm:$0xff]  ;;  %v3958_v54 = vpack.c.bf16 %v882_v53, %v880_v52  ;;  %v889_v34 = vld [vmem:[#allocation8 + $0x50] sm:$0xff]  ;;  %v892_v35 = vld [vmem:[#allocation8 + $0x68] sm:$0xff] }
 0x102   : > { %3915 = vmatprep.subr.bf16.mxu1 %v3914_v38  ;;  %v780_v38 = vld [vmem:[#allocation6 + $0x1b0] sm:$0xff]  ;;  %v662_v6 = vld [vmem:[%s6211_s2] sm:$0x3]  ;;  %v904_v53 = vld [vmem:[#allocation8 + $0xc8] sm:$0xff] }
 0x103   : > { %v3948_v39 = vpack.c.bf16 %v780_v38, %v778_v37  ;;  %v895_v45 = vld [vmem:[#allocation8 + $0x80] sm:$0xff]  ;;  %v897_v46 = vld [vmem:[#allocation8 + $0x90] sm:$0xff] }
 0x104   : > { %v901_v52 = vld [vmem:[#allocation8 + $0xb0] sm:$0xff] }
 0x105   : > { %3917 = vmatpush1.bf16.msra.mxu1 %v3916_v43  ;;  %v3950_v43 = vpack.c.bf16 %v785_v41, %v783_v40  ;;  %v893_v40 = vld [vmem:[#allocation8 + $0x70] sm:$0xff]  ;;  %v896_v41 = vld [vmem:[#allocation8 + $0x88] sm:$0xff] }
 0x106   : > { %3919 = vmatprep.subr.bf16.mxu1 %v3918_v44  ;;  %v784_v44 = vld [vmem:[#allocation6 + $0x1d0] sm:$0xff] }
 0x107   : > { %v3952_v47 = vpack.c.bf16 %v784_v44, %v782_v42  ;;  %v898_v42 = vld [vmem:[#allocation8 + $0x98] sm:$0xff] }
 0x108   : > { %v3974_v44 = vpack.c.bf16 %v898_v42, %v896_v41  ;;  %v931_v42 = vld [vmem:[#allocation8 + $0x1a0] sm:$0xff] }
 0x109   : > { %3921 = vmatpush1.bf16.msra.mxu1 %v3920_v49  ;;  %v786_v49 = vld [vmem:[#allocation6 + $0x1e0] sm:$0xff] }
 0x10a   : > { %3923 = vmatprep.subr.bf16.mxu1 %v3922_v50  ;;  %v788_v50 = vld [vmem:[#allocation6 + $0x1f0] sm:$0xff] }
 0x10b   : > { %v3956_v51 = vpack.c.bf16 %v788_v50, %v786_v49  ;;  %v3976_v49 = vpack.c.bf16 %v897_v46, %v895_v45  ;;  %v938_v45 = vld [vmem:[#allocation8 + $0x1d8] sm:$0xff] }
 0x10d   : > { %3925 = vmatpush1.bf16.msra.mxu1 %v3924_v55 }
 0x10e   : > { %3927 = vmatprep.subr.bf16.mxu1 %v3926_v56 }
 0x111   : > { %3929 = vmatpush1.bf16.msra.mxu1 %v3928_v61  ;;  %v5605_v61 = vshrl.u32 %v697_v57, 7  ;;  %v903_v57 = vld [vmem:[#allocation8 + $0xc0] sm:$0xff] }
 0x112   : > { %3931 = vmatprep.subr.bf16.mxu1 %v3930_v62 }
 0x113   : > { %v5608_v63 = vsub.s32 1, %v5605_v61  ;;  %v5611_v3 = vsub.s32 0, %v5605_v61 }
 0x115   : > { %3933 = vmatpush1.bf16.msra.mxu1 %v3932_v7  ;;  %v704_v7 = vrot.slane %v661_v5, %v5608_v63 }
 0x116   : > { %3935 = vmatprep.subr.bf16.mxu1 %v3934_v8  ;;  %v700_v8 = vrot.slane %v661_v5, %v5611_v3 }
 0x119   : > { %3937 = vmatpush1.bf16.msra.mxu1 %v3936_v11  ;;  %v719_v11 = vrot.slane %v662_v6, %v5608_v63 }
 0x11a   : > { %3939 = vmatprep.subr.bf16.mxu1 %v3938_v26 }
 0x17b   : > { %v665_v12 = vpop.xlane.xlu0 %664 }
 0x17c   : > { %v670_v13 = vmul.f32 0.00390625, %v665_v12 }
 0x17e   : > { %v5586_v14 = vsub.f32 %v5570_v0, %v670_v13  ;;  %v5589_v15 = vsub.f32 %v5573_v1, %v670_v13  ;;  %v715_v13 = vrot.slane %v662_v6, %v5611_v3  ;;  %v907_v6 = vld [vmem:[#allocation8 + $0xe0] sm:$0xff] }
 0x17f   : > { %v668_v16 = vpop.xlane.xlu0 %667 }
 0x180   : > { %v671_v17 = vmul.f32 0.00390625, %v668_v16  ;;  %v676_v18 = vmul.f32 %v5586_v14, %v5586_v14  ;;  %v677_v19 = vmul.f32 %v5589_v15, %v5589_v15  ;;  %v879_v16 = vld [vmem:[#allocation8] sm:$0xff] }
 0x182   : > { %v5596_v20 = vsub.f32 %v5576_v2, %v671_v17  ;;  %v5599_v21 = vsub.f32 %v5581_v4, %v671_v17  ;;  %v680_v22 = vadd.f32 %v677_v19, %v676_v18  ;;  %v3940_v2 = vpack.c.bf16 %v772_v28, %v770_v27  ;;  %v775_v4 = vld [vmem:[#allocation6 + $0x188] sm:$0xff]  ;;  %v881_v17 = vld [vmem:[#allocation8 + $0x10] sm:$0xff] }
 0x183   : > { %v3942_v30 = vpack.c.bf16 %v777_v29, %v775_v4  ;;  %v885_v28 = vld [vmem:[#allocation8 + $0x30] sm:$0xff]  ;;  %v888_v29 = vld [vmem:[#allocation8 + $0x48] sm:$0xff] }
 0x184   : > { %681 = vadd.xlane.f32.xlu1 %v680_v22  ;;  %v678_v0 = vmul.f32 %v5596_v20, %v5596_v20  ;;  %v679_v1 = vmul.f32 %v5599_v21, %v5599_v21  ;;  %3941 = vmatpush1.bf16.msra.mxu1 %v3940_v2  ;;  %v884_v22 = vld [vmem:[#allocation8 + $0x28] sm:$0xff] }
 0x185   : > { %3943 = vmatprep.subr.bf16.mxu1 %v3942_v30  ;;  %v890_v30 = vld [vmem:[#allocation8 + $0x58] sm:$0xff] }
 0x186   : > { %v683_v23 = vadd.f32 %v679_v1, %v678_v0  ;;  %v886_v0 = vld [vmem:[#allocation8 + $0x38] sm:$0xff] }
 0x187   : > { %v3962_v27 = vpack.c.bf16 %v886_v0, %v884_v22  ;;  %v915_v22 = vld [vmem:[#allocation8 + $0x120] sm:$0xff]  ;;  %v917_v0 = vld [vmem:[#allocation8 + $0x130] sm:$0xff] }
 0x188   : > { %684 = vadd.xlane.f32.xlu1 %v683_v23  ;;  %3945 = vmatpush1.bf16.msra.mxu1 %v3944_v33  ;;  %v3960_v23 = vpack.c.bf16 %v881_v17, %v879_v16  ;;  %v916_v16 = vld [vmem:[#allocation8 + $0x128] sm:$0xff]  ;;  %v918_v17 = vld [vmem:[#allocation8 + $0x138] sm:$0xff] }
 0x189   : > { %3947 = vmatprep.subr.bf16.mxu1 %v3946_v36  ;;  %v894_v36 = vld [vmem:[#allocation8 + $0x78] sm:$0xff] }
 0x18a   : > { %v3970_v38 = vpack.c.bf16 %v894_v36, %v892_v35  ;;  %v927_v36 = vld [vmem:[#allocation8 + $0x180] sm:$0xff] }
 0x18c   : > { %3949 = vmatpush1.bf16.msra.mxu1 %v3948_v39  ;;  %v891_v39 = vld [vmem:[#allocation8 + $0x60] sm:$0xff] }
 0x18d   : > { %3951 = vmatprep.subr.bf16.mxu1 %v3950_v43  ;;  %v3972_v43 = vpack.c.bf16 %v893_v40, %v891_v39  ;;  %v934_v39 = vld [vmem:[#allocation8 + $0x1b8] sm:$0xff] }
 0x190   : > { %3953 = vmatpush1.bf16.msra.mxu1 %v3952_v47  ;;  %v900_v47 = vld [vmem:[#allocation8 + $0xa8] sm:$0xff] }
 0x191   : > { %3955 = vmatprep.subr.bf16.mxu1 %v3954_v48  ;;  %v902_v48 = vld [vmem:[#allocation8 + $0xb8] sm:$0xff] }
 0x192   : > { %v3978_v50 = vpack.c.bf16 %v902_v48, %v900_v47  ;;  %v935_v48 = vld [vmem:[#allocation8 + $0x1c0] sm:$0xff] }
 0x194   : > { %3957 = vmatpush1.bf16.msra.mxu1 %v3956_v51  ;;  %v899_v51 = vld [vmem:[#allocation8 + $0xa0] sm:$0xff] }
 0x195   : > { %3959 = vmatprep.subr.bf16.mxu1 %v3958_v54  ;;  %v906_v54 = vld [vmem:[#allocation8 + $0xd8] sm:$0xff] }
 0x211   : > { %v682_v55 = vpop.xlane.xlu1 %681 }
 0x212   : > { %v686_v56 = vmul.f32 0.00390625, %v682_v55  ;;  %v3980_v55 = vpack.c.bf16 %v901_v52, %v899_v51  ;;  %v942_v51 = vld [vmem:[#allocation8 + $0x1f8] sm:$0xff] }
 0x214   : > { %v688_v58 = vadd.f32 1e-05, %v686_v56  ;;  %v3982_v56 = vpack.c.bf16 %v906_v54, %v904_v53  ;;  %v939_v54 = vld [vmem:[#allocation8 + $0x1e0] sm:$0xff] }
 0x215   : > { %v685_v59 = vpop.xlane.xlu1 %684 }
 0x216   : > { %4794 = vrsqrt.f32 %v688_v58  ;;  %v687_v60 = vmul.f32 0.00390625, %v685_v59  ;;  %v905_v58 = vld [vmem:[#allocation8 + $0xd0] sm:$0xff]  ;;  %v908_v59 = vld [vmem:[#allocation8 + $0xe8] sm:$0xff] }
 0x218   : > { %v689_v62 = vadd.f32 1e-05, %v687_v60  ;;  %v910_v60 = vld [vmem:[#allocation8 + $0xf8] sm:$0xff] }
 0x219   : > { %v3986_v5 = vpack.c.bf16 %v910_v60, %v908_v59  ;;  %v1032_v60 = vld [vmem:[#allocation9] sm:$0xff] }
 0x21a   : > { %4796 = vrsqrt.f32 %v689_v62  ;;  %v3984_v62 = vpack.c.bf16 %v905_v58, %v903_v57  ;;  %v1035_v57 = vld [vmem:[#allocation9 + $0x18] sm:$0xff] }
 0x220   : > { %v4795_v9 = vpop.eup %4794 }
 0x221   : > { %v693_v10 = vmul.f32 %v4795_v9, %v5589_v15  ;;  %v692_v12 = vmul.f32 %v4795_v9, %v5586_v14  ;;  %v883_v14 = vld [vmem:[#allocation8 + $0x20] sm:$0xff]  ;;  %v914_v9 = vld [vmem:[#allocation8 + $0x118] sm:$0xff] }
 0x222   : > { %v3964_v33 = vpack.c.bf16 %v885_v28, %v883_v14  ;;  %v921_v14 = vld [vmem:[#allocation8 + $0x150] sm:$0xff]  ;;  %v924_v28 = vld [vmem:[#allocation8 + $0x168] sm:$0xff] }
 0x223   : > { %v708_v18 = vmul.f32 %v704_v7, %v693_v10  ;;  %v707_v19 = vmul.f32 %v700_v8, %v692_v12  ;;  %v911_v12 = vld [vmem:[#allocation8 + $0x100] sm:$0xff] }
 0x224   : > { %v4797_v1 = vpop.eup %4796 }
 0x225   : > { %v5625_v24 = vadd.f32 %v719_v11, %v708_v18  ;;  %v5627_v25 = vadd.f32 %v715_v13, %v707_v19  ;;  %v695_v15 = vmul.f32 %v4797_v1, %v5599_v21  ;;  %v694_v26 = vmul.f32 %v4797_v1, %v5596_v20  ;;  %v887_v20 = vld [vmem:[#allocation8 + $0x40] sm:$0xff]  ;;  %v920_v1 = vld [vmem:[#allocation8 + $0x148] sm:$0xff] }
 0x226   : > { %v3966_v21 = vpack.c.bf16 %v890_v30, %v888_v29  ;;  %v3968_v37 = vpack.c.bf16 %v889_v34, %v887_v20  ;;  %v3994_v19 = vpack.c.bf16 %v918_v17, %v916_v16  ;;  %v923_v30 = vld [vmem:[#allocation8 + $0x160] sm:$0xff]  ;;  %v930_v20 = vld [vmem:[#allocation8 + $0x198] sm:$0xff] }
 0x227   : > { %866 = vmatprep.mubr.f32.mxu1 %v5625_v24  ;;  %v710_v2 = vmul.f32 %v704_v7, %v695_v15  ;;  %v709_v4 = vmul.f32 %v700_v8, %v694_v26  ;;  %v909_v7 = vld [vmem:[#allocation8 + $0xf0] sm:$0xff]  ;;  %v912_v8 = vld [vmem:[#allocation8 + $0x108] sm:$0xff]  ;;  %v3996_v15 = vpack.c.bf16 %v917_v0, %v915_v22  ;;  %v1040_v17 = vld [vmem:[#allocation9 + $0x40] sm:$0xff] }
 0x228   : > { %867 = vmatmul.mubr.f32.vlgmr.msra.gmra.mrb[0].mxu1 %v5627_v25  ;;  %v3988_v10 = vpack.c.bf16 %v909_v7, %v907_v6  ;;  %v1039_v6 = vld [vmem:[#allocation9 + $0x38] sm:$0xff] }
 0x229   : > { %3961 = vmatpush1.bf16.msra.mxu1 %v3960_v23  ;;  %v5633_v31 = vadd.f32 %v719_v11, %v710_v2  ;;  %v5635_v32 = vadd.f32 %v715_v13, %v709_v4  ;;  %v3990_v11 = vpack.c.bf16 %v914_v9, %v912_v8  ;;  %v913_v13 = vld [vmem:[#allocation8 + $0x110] sm:$0xff]  ;;  %v922_v23 = vld [vmem:[#allocation8 + $0x158] sm:$0xff]  ;;  %v1036_v9 = vld [vmem:[#allocation9 + $0x20] sm:$0xff] }
 0x22a   : > { %3963 = vmatprep.subr.bf16.mxu1 %v3962_v27  ;;  %v3992_v18 = vpack.c.bf16 %v913_v13, %v911_v12  ;;  %v3998_v26 = vpack.c.bf16 %v922_v23, %v920_v1  ;;  %v919_v27 = vld [vmem:[#allocation8 + $0x140] sm:$0xff]  ;;  %v926_v2 = vld [vmem:[#allocation8 + $0x178] sm:$0xff] }
 0x22b   : > { %872 = vmatprep.mubr.f32.mxu1 %v5633_v31  ;;  %v4000_v4 = vpack.c.bf16 %v921_v14, %v919_v27  ;;  %v4002_v29 = vpack.c.bf16 %v926_v2, %v924_v28  ;;  %v1043_v12 = vld [vmem:[#allocation9 + $0x58] sm:$0xff]  ;;  %v1044_v23 = vld [vmem:[#allocation9 + $0x60] sm:$0xff] }
 0x22c   : > { %873 = vmatmul.mubr.f32.gmra.mrb[2].mxu1 %v5635_v32  ;;  %v1047_v22 = vld [vmem:[#allocation9 + $0x78] sm:$0xff]  ;;  %v1048_v2 = vld [vmem:[#allocation9 + $0x80] sm:$0xff] }
 0x22d   : > { %3965 = vmatpush1.bf16.msra.mxu1 %v3964_v33  ;;  %1019 = vmatprep.mubr.f32.mxu1 %v5625_v24  ;;  %v925_v33 = vld [vmem:[#allocation8 + $0x170] sm:$0xff]  ;;  %v1051_v27 = vld [vmem:[#allocation9 + $0x98] sm:$0xff] }
 0x22e   : > { %3967 = vmatprep.subr.bf16.mxu1 %v3966_v21  ;;  %v928_v21 = vld [vmem:[#allocation8 + $0x188] sm:$0xff]  ;;  %v4004_v34 = vpack.c.bf16 %v925_v33, %v923_v30  ;;  %v1055_v30 = vld [vmem:[#allocation9 + $0xb8] sm:$0xff] }
 0x22f   : > { %v4006_v35 = vpack.c.bf16 %v930_v20, %v928_v21  ;;  %v1054_v20 = vld [vmem:[#allocation9 + $0xb0] sm:$0xff] }
 0x231   : > { %3969 = vmatpush1.bf16.msra.mxu1 %v3968_v37  ;;  %v929_v37 = vld [vmem:[#allocation8 + $0x190] sm:$0xff] }
 0x232   : > { %3971 = vmatprep.subr.bf16.mxu1 %v3970_v38  ;;  %v932_v38 = vld [vmem:[#allocation8 + $0x1a8] sm:$0xff]  ;;  %v4008_v40 = vpack.c.bf16 %v929_v37, %v927_v36 }
 0x233   : > { %v4010_v41 = vpack.c.bf16 %v934_v39, %v932_v38  ;;  %v1056_v38 = vld [vmem:[#allocation9 + $0xc0] sm:$0xff]  ;;  %v1058_v39 = vld [vmem:[#allocation9 + $0xd0] sm:$0xff] }
 0x235   : > { %3973 = vmatpush1.bf16.msra.mxu1 %v3972_v43  ;;  %v933_v43 = vld [vmem:[#allocation8 + $0x1b0] sm:$0xff] }
 0x236   : > { %3975 = vmatprep.subr.bf16.mxu1 %v3974_v44  ;;  %v936_v44 = vld [vmem:[#allocation8 + $0x1c8] sm:$0xff]  ;;  %v4012_v46 = vpack.c.bf16 %v933_v43, %v931_v42  ;;  %v4048_v42 = vpack.c.bf16 %v1058_v39, %v1056_v38 }
 0x237   : > { %v4014_v47 = vpack.c.bf16 %v938_v45, %v936_v44  ;;  %v1060_v44 = vld [vmem:[#allocation9 + $0xe0] sm:$0xff]  ;;  %v1062_v45 = vld [vmem:[#allocation9 + $0xf0] sm:$0xff] }
 0x239   : > { %3977 = vmatpush1.bf16.msra.mxu1 %v3976_v49  ;;  %v937_v49 = vld [vmem:[#allocation8 + $0x1d0] sm:$0xff] }
 0x23a   : > { %3979 = vmatprep.subr.bf16.mxu1 %v3978_v50  ;;  %v940_v50 = vld [vmem:[#allocation8 + $0x1e8] sm:$0xff]  ;;  %v4016_v52 = vpack.c.bf16 %v937_v49, %v935_v48  ;;  %v4052_v48 = vpack.c.bf16 %v1062_v45, %v1060_v44 }
 0x23b   : > { %v4018_v53 = vpack.c.bf16 %v942_v51, %v940_v50  ;;  %v1064_v50 = vld [vmem:[#allocation9 + $0x100] sm:$0xff]  ;;  %v1066_v51 = vld [vmem:[#allocation9 + $0x110] sm:$0xff] }
 0x23d   : > { %3981 = vmatpush1.bf16.msra.mxu1 %v3980_v55  ;;  %v941_v55 = vld [vmem:[#allocation8 + $0x1f0] sm:$0xff] }
 0x23e   : > { %3983 = vmatprep.subr.bf16.mxu1 %v3982_v56  ;;  %v1033_v56 = vld [vmem:[#allocation9 + $0x8] sm:$0xff]  ;;  %v4020_v58 = vpack.c.bf16 %v941_v55, %v939_v54  ;;  %v4056_v54 = vpack.c.bf16 %v1066_v51, %v1064_v50 }
 0x23f   : > { %v4022_v59 = vpack.c.bf16 %v1035_v57, %v1033_v56  ;;  %v1068_v56 = vld [vmem:[#allocation9 + $0x120] sm:$0xff]  ;;  %v1070_v57 = vld [vmem:[#allocation9 + $0x130] sm:$0xff] }
 0x241   : > { %3985 = vmatpush1.bf16.msra.mxu1 %v3984_v62  ;;  %v1034_v62 = vld [vmem:[#allocation9 + $0x10] sm:$0xff] }
 0x242   : > { %3987 = vmatprep.subr.bf16.mxu1 %v3986_v5  ;;  %v1037_v5 = vld [vmem:[#allocation9 + $0x28] sm:$0xff]  ;;  %v4024_v7 = vpack.c.bf16 %v1034_v62, %v1032_v60  ;;  %v4060_v60 = vpack.c.bf16 %v1070_v57, %v1068_v56  ;;  %v1096_v57 = vld [vmem:[%s6272_s1] sm:$0x3]  ;;  %s5179_s1 = smov [#allocation15]  }
 0x243   : > { %v4026_v8 = vpack.c.bf16 %v1039_v6, %v1037_v5  ;;  %v1072_v5 = vld [vmem:[#allocation9 + $0x140] sm:$0xff]  ;;  %v1074_v6 = vld [vmem:[#allocation9 + $0x150] sm:$0xff]  ;;  %s5089_s5 = sshll.u32 %s5179_s1, 4  ;;  %s5090_s5 = int_to_ptr.vmem [resolvable:$false] %s5089_s5 }
 0x244   : > { %s5091_s30 = scalar_lea.vmem %s5090_s5, 1024 }
 0x245   : > { %3989 = vmatpush1.bf16.msra.mxu1 %v3988_v10  ;;  %v1038_v10 = vld [vmem:[#allocation9 + $0x30] sm:$0xff] }
 0x246   : > { %3991 = vmatprep.subr.bf16.mxu1 %v3990_v11  ;;  %v1041_v11 = vld [vmem:[#allocation9 + $0x48] sm:$0xff]  ;;  %v4028_v13 = vpack.c.bf16 %v1038_v10, %v1036_v9  ;;  %v4064_v9 = vpack.c.bf16 %v1074_v6, %v1072_v5 }
 0x247   : > { %v4030_v16 = vpack.c.bf16 %v1043_v12, %v1041_v11  ;;  %v1076_v11 = vld [vmem:[#allocation9 + $0x160] sm:$0xff]  ;;  %v1078_v12 = vld [vmem:[#allocation9 + $0x170] sm:$0xff] }
 0x249   : > { %3993 = vmatpush1.bf16.msra.mxu1 %v3992_v18  ;;  %v1042_v18 = vld [vmem:[#allocation9 + $0x50] sm:$0xff] }
 0x24a   : > { %3995 = vmatprep.subr.bf16.mxu1 %v3994_v19  ;;  %v1045_v19 = vld [vmem:[#allocation9 + $0x68] sm:$0xff]  ;;  %v4032_v0 = vpack.c.bf16 %v1042_v18, %v1040_v17  ;;  %v4068_v17 = vpack.c.bf16 %v1078_v12, %v1076_v11 }
 0x24b   : > { %v4034_v1 = vpack.c.bf16 %v1047_v22, %v1045_v19  ;;  %v1080_v19 = vld [vmem:[#allocation9 + $0x180] sm:$0xff]  ;;  %v1082_v22 = vld [vmem:[#allocation9 + $0x190] sm:$0xff] }
 0x24d   : > { %3997 = vmatpush1.bf16.msra.mxu1 %v3996_v15  ;;  %v1046_v15 = vld [vmem:[#allocation9 + $0x70] sm:$0xff] }
 0x24e   : > { %3999 = vmatprep.subr.bf16.mxu1 %v3998_v26  ;;  %v1049_v26 = vld [vmem:[#allocation9 + $0x88] sm:$0xff]  ;;  %v4036_v14 = vpack.c.bf16 %v1046_v15, %v1044_v23  ;;  %v4072_v23 = vpack.c.bf16 %v1082_v22, %v1080_v19 }
 0x24f   : > { %v4038_v28 = vpack.c.bf16 %v1051_v27, %v1049_v26  ;;  %v1084_v26 = vld [vmem:[#allocation9 + $0x1a0] sm:$0xff]  ;;  %v1086_v27 = vld [vmem:[#allocation9 + $0x1b0] sm:$0xff] }
 0x251   : > { %4001 = vmatpush1.bf16.msra.mxu1 %v4000_v4  ;;  %v1050_v4 = vld [vmem:[#allocation9 + $0x90] sm:$0xff] }
 0x252   : > { %4003 = vmatprep.subr.bf16.mxu1 %v4002_v29  ;;  %v1053_v29 = vld [vmem:[#allocation9 + $0xa8] sm:$0xff]  ;;  %v4040_v33 = vpack.c.bf16 %v1050_v4, %v1048_v2  ;;  %v4076_v2 = vpack.c.bf16 %v1086_v27, %v1084_v26 }
 0x253   : > { %v4042_v21 = vpack.c.bf16 %v1055_v30, %v1053_v29  ;;  %v1088_v29 = vld [vmem:[#allocation9 + $0x1c0] sm:$0xff]  ;;  %v1090_v30 = vld [vmem:[#allocation9 + $0x1d0] sm:$0xff] }
 0x255   : > { %4005 = vmatpush1.bf16.msra.mxu1 %v4004_v34  ;;  %v1057_v34 = vld [vmem:[#allocation9 + $0xc8] sm:$0xff] }
 0x256   : > { %4007 = vmatprep.subr.bf16.mxu1 %v4006_v35  ;;  %v1059_v35 = vld [vmem:[#allocation9 + $0xd8] sm:$0xff] }
 0x257   : > { %v4046_v37 = vpack.c.bf16 %v1059_v35, %v1057_v34  ;;  %v1092_v34 = vld [vmem:[#allocation9 + $0x1e0] sm:$0xff]  ;;  %v1094_v35 = vld [vmem:[#allocation9 + $0x1f0] sm:$0xff] }
 0x259   : > { %4009 = vmatpush1.bf16.msra.mxu1 %v4008_v40  ;;  %v1061_v40 = vld [vmem:[#allocation9 + $0xe8] sm:$0xff] }
 0x25a   : > { %4011 = vmatprep.subr.bf16.mxu1 %v4010_v41  ;;  %v1063_v41 = vld [vmem:[#allocation9 + $0xf8] sm:$0xff] }
 0x25b   : > { %v4050_v43 = vpack.c.bf16 %v1063_v41, %v1061_v40 }
 0x25d   : > { %4013 = vmatpush1.bf16.msra.mxu1 %v4012_v46  ;;  %v1065_v46 = vld [vmem:[#allocation9 + $0x108] sm:$0xff] }
 0x25e   : > { %4015 = vmatprep.subr.bf16.mxu1 %v4014_v47  ;;  %v1067_v47 = vld [vmem:[#allocation9 + $0x118] sm:$0xff] }
 0x25f   : > { %v4054_v49 = vpack.c.bf16 %v1067_v47, %v1065_v46 }
 0x261   : > { %4017 = vmatpush1.bf16.msra.mxu1 %v4016_v52  ;;  %v1069_v52 = vld [vmem:[#allocation9 + $0x128] sm:$0xff] }
 0x262   : > { %4019 = vmatprep.subr.bf16.mxu1 %v4018_v53  ;;  %v1071_v53 = vld [vmem:[#allocation9 + $0x138] sm:$0xff] }
 0x263   : > { %v4058_v55 = vpack.c.bf16 %v1071_v53, %v1069_v52 }
 0x265   : > { %4021 = vmatpush1.bf16.msra.mxu1 %v4020_v58  ;;  %v1073_v58 = vld [vmem:[#allocation9 + $0x148] sm:$0xff] }
 0x266   : > { %4023 = vmatprep.subr.bf16.mxu1 %v4022_v59  ;;  %v1075_v59 = vld [vmem:[#allocation9 + $0x158] sm:$0xff] }
 0x267   : > { %v4062_v62 = vpack.c.bf16 %v1075_v59, %v1073_v58  ;;  %v1101_v58 = vrot.slane %v1096_v57, %v5611_v3  ;;  %v1105_v59 = vrot.slane %v1096_v57, %v5608_v63  ;;  %v1819_v57 = vld [vmem:[#allocation11 + $0x28] sm:$0xff] }
 0x268   : > { %1020 = vmatmul.mubr.f32.vlgmr.msra.gmra.mrb[4].mxu1 %v5627_v25 }
 0x269   : > { %1025 = vmatprep.mubr.f32.mxu1 %v5633_v31  ;;  %4025 = vmatpush1.bf16.msra.mxu1 %v4024_v7  ;;  %v1077_v7 = vld [vmem:[#allocation9 + $0x168] sm:$0xff] }
 0x26a   : > { %4027 = vmatprep.subr.bf16.mxu1 %v4026_v8  ;;  %v1079_v8 = vld [vmem:[#allocation9 + $0x178] sm:$0xff] }
 0x26b   : > { %v4066_v10 = vpack.c.bf16 %v1079_v8, %v1077_v7 }
 0x26c   : > { %1026 = vmatmul.mubr.f32.gmra.mrb[6].mxu1 %v5635_v32 }
 0x26d   : > { %4029 = vmatpush1.bf16.msra.mxu1 %v4028_v13  ;;  %1172 = vmatprep.mubr.f32.mxu1 %v5625_v24  ;;  %v1052_v24 = vld [vmem:[#allocation9 + $0xa0] sm:$0xff]  ;;  %v1081_v13 = vld [vmem:[#allocation9 + $0x188] sm:$0xff] }
 0x26e   : > { %4031 = vmatprep.subr.bf16.mxu1 %v4030_v16  ;;  %v4044_v36 = vpack.c.bf16 %v1054_v20, %v1052_v24  ;;  %v1083_v16 = vld [vmem:[#allocation9 + $0x198] sm:$0xff]  ;;  %v4080_v24 = vpack.c.bf16 %v1090_v30, %v1088_v29 }
 0x26f   : > { %v4070_v18 = vpack.c.bf16 %v1083_v16, %v1081_v13 }
 0x271   : > { %4033 = vmatpush1.bf16.msra.mxu1 %v4032_v0  ;;  %v1085_v0 = vld [vmem:[#allocation9 + $0x1a8] sm:$0xff] }
 0x272   : > { %4035 = vmatprep.subr.bf16.mxu1 %v4034_v1  ;;  %v1087_v1 = vld [vmem:[#allocation9 + $0x1b8] sm:$0xff] }
 0x273   : > { %v4074_v15 = vpack.c.bf16 %v1087_v1, %v1085_v0 }
 0x275   : > { %4037 = vmatpush1.bf16.msra.mxu1 %v4036_v14  ;;  %v1089_v14 = vld [vmem:[#allocation9 + $0x1c8] sm:$0xff] }
 0x276   : > { %4039 = vmatprep.subr.bf16.mxu1 %v4038_v28  ;;  %v1091_v28 = vld [vmem:[#allocation9 + $0x1d8] sm:$0xff] }
 0x277   : > { %v4078_v4 = vpack.c.bf16 %v1091_v28, %v1089_v14 }
 0x279   : > { %4041 = vmatpush1.bf16.msra.mxu1 %v4040_v33  ;;  %v1093_v33 = vld [vmem:[#allocation9 + $0x1e8] sm:$0xff] }
 0x27a   : > { %4043 = vmatprep.subr.bf16.mxu1 %v4042_v21  ;;  %v1095_v21 = vld [vmem:[#allocation9 + $0x1f8] sm:$0xff] }
 0x27b   : > { %v4082_v20 = vpack.c.bf16 %v1095_v21, %v1093_v33 }
 0x27d   : > { %4045 = vmatpush1.bf16.msra.mxu1 %v4044_v36  ;;  %v4084_v36 = vpack.c.bf16 %v1094_v35, %v1092_v34 }
 0x27e   : > { %4047 = vmatprep.subr.bf16.mxu1 %v4046_v37  ;;  %v5176_v37 = vmov 0.0  }
 0x27f   : > { %3854 = vmatprep.subr.mxu0 %v5176_v37  ;;  %3856 = vmatprep.mubr.msk.f32.mxu0 %vm5177_vm0, %v5176_v37 }
 0x281   : > { %4049 = vmatpush1.bf16.msra.mxu1 %v4048_v42 }
 0x282   : > { %4051 = vmatprep.subr.bf16.mxu1 %v4050_v43 }
 0x285   : > { %4053 = vmatpush1.bf16.msra.mxu1 %v4052_v48 }
 0x286   : > { %4055 = vmatprep.subr.bf16.mxu1 %v4054_v49 }
 0x289   : > { %4057 = vmatpush1.bf16.msra.mxu1 %v4056_v54 }
 0x28a   : > { %4059 = vmatprep.subr.bf16.mxu1 %v4058_v55 }
 0x28d   : > { %4061 = vmatpush1.bf16.msra.mxu1 %v4060_v60 }
 0x28e   : > { %4063 = vmatprep.subr.bf16.mxu1 %v4062_v62 }
 0x291   : > { %4065 = vmatpush1.bf16.msra.mxu1 %v4064_v9 }
 0x292   : > { %4067 = vmatprep.subr.bf16.mxu1 %v4066_v10 }
 0x295   : > { %4069 = vmatpush1.bf16.msra.mxu1 %v4068_v17 }
 0x296   : > { %4071 = vmatprep.subr.bf16.mxu1 %v4070_v18 }
 0x299   : > { %4073 = vmatpush1.bf16.msra.mxu1 %v4072_v23 }
 0x29a   : > { %4075 = vmatprep.subr.bf16.mxu1 %v4074_v15 }
 0x29d   : > { %4077 = vmatpush1.bf16.msra.mxu1 %v4076_v2 }
 0x29e   : > { %4079 = vmatprep.subr.bf16.mxu1 %v4078_v4 }
 0x2a1   : > { %4081 = vmatpush1.bf16.msra.mxu1 %v4080_v24 }
 0x2a2   : > { %4083 = vmatprep.subr.bf16.mxu1 %v4082_v20 }
 0x2a5   : > { %4085 = vmatpush1.bf16.msra.mxu1 %v4084_v36 }
 0x2a6   : > { %3874 = vmatprep.subr.mxu1 %v5176_v37 }
 0x2a8   : > { %1173 = vmatmul.mubr.f32.vlgmr.msra.gmra.mrb[8].mxu1 %v5627_v25 }
 0x2a9   : > { %1178 = vmatprep.mubr.f32.mxu1 %v5633_v31  ;;  %v943_v31 = vld [vmem:[%s6215_s6] sm:$0x3] }
 0x2aa   : > { %v948_v41 = vrot.slane %v943_v31, %v5611_v3  ;;  %v952_v42 = vrot.slane %v943_v31, %v5608_v63 }
 0x2ac   : > { %1179 = vmatmul.mubr.f32.gmra.mrb[10].mxu1 %v5635_v32  ;;  %v790_v32 = vld [vmem:[%s6213_s4] sm:$0x3] }
 0x2ad   : > { %3876 = vmatprep.mubr.msk.f32.mxu1 %vm5177_vm0, %v5176_v37  ;;  %v795_v43 = vrot.slane %v790_v32, %v5611_v3  ;;  %v799_v45 = vrot.slane %v790_v32, %v5608_v63 }
 0x2fb   : > { %v868_v38 = vpop.f32.mrb[0].mxu1 }
 0x2fc   : > { %v870_v39 = vpop.f32.mrb[1].mxu1  ;;  %v869_v49 = vadd.f32 %v868_v38, %v795_v43 }
 0x2fd   : > { %v871_v51 = vadd.f32 %v870_v39, %v799_v45 }
 0x2ff   : > { %v874_v40 = vpop.f32.mrb[2].mxu1 }
 0x300   : > { %v876_v25 = vpop.f32.mrb[3].mxu1  ;;  %v875_v55 = vadd.f32 %v874_v40, %v795_v43 }
 0x301   : > { %v877_v56 = vadd.f32 %v876_v25, %v799_v45 }
 0x33b   : > { %v1021_v44 = vpop.f32.mrb[4].mxu1 }
 0x33c   : > { %v1022_v46 = vadd.f32 %v1021_v44, %v948_v41  ;;  %v1023_v47 = vpop.f32.mrb[5].mxu1 }
 0x33d   : > { %v1024_v48 = vadd.f32 %v1023_v47, %v952_v42 }
 0x33e   : > { %3855 = vmatpush3.xpose.msra.mxu0 %v1022_v46 }
 0x33f   : > { %v1027_v50 = vpop.f32.mrb[6].mxu1  ;;  %3875 = vmatpush3.xpose.msra.mxu1 %v1024_v48  ;;  %3859 = vmatprep.subr.mxu0 %v5176_v37  ;;  %v1815_v48 = vld [vmem:[#allocation11 + $0x8] sm:$0xff] }
 0x340   : > { %v1028_v52 = vadd.f32 %v1027_v50, %v948_v41  ;;  %v1029_v53 = vpop.f32.mrb[7].mxu1  ;;  %3879 = vmatprep.subr.mxu1 %v5176_v37 }
 0x341   : > { %v1030_v54 = vadd.f32 %v1029_v53, %v952_v42  ;;  %3857 = vmatmul.mubr.f32.vlgmr.msra.gmra.mrb[0].mxu0 %v869_v49  ;;  %v1817_v49 = vld [vmem:[#allocation11 + $0x18] sm:$0xff] }
 0x342   : > { %3860 = vmatpush3.xpose.msra.mxu0 %v1028_v52  ;;  %3877 = vmatmul.mubr.f32.vlgmr.msra.gmra.mrb[12].mxu1 %v871_v51 }
 0x343   : > { %3880 = vmatpush3.xpose.msra.mxu1 %v1030_v54  ;;  %3861 = vmatprep.mubr.msk.f32.mxu0 %vm5177_vm0, %v5176_v37  ;;  %v4086_v54 = vpack.c.bf16 %v1817_v49, %v1815_v48  ;;  %v1851_v48 = vld [vmem:[#allocation11 + $0x128] sm:$0xff]  ;;  %v1853_v49 = vld [vmem:[#allocation11 + $0x138] sm:$0xff] }
 0x344   : > { %3881 = vmatprep.mubr.msk.f32.mxu1 %vm5177_vm0, %v5176_v37  ;;  %3864 = vmatprep.subr.mxu0 %v5176_v37 }
 0x345   : > { %3862 = vmatmul.mubr.f32.vlgmr.msra.gmra.mrb[2].mxu0 %v875_v55  ;;  %3884 = vmatprep.subr.mxu1 %v5176_v37  ;;  %v1814_v55 = vld [vmem:[#allocation11] sm:$0xff] }
 0x346   : > { %3882 = vmatmul.mubr.f32.vlgmr.msra.gmra.mrb[14].mxu1 %v877_v56  ;;  %3866 = vmatprep.mubr.msk.f32.mxu0 %vm5177_vm0, %v5176_v37  ;;  %v1816_v56 = vld [vmem:[#allocation11 + $0x10] sm:$0xff] }
 0x347   : > { %3886 = vmatprep.mubr.msk.f32.mxu1 %vm5177_vm0, %v5176_v37 }
 0x37b   : > { %v1174_v60 = vpop.f32.mrb[8].mxu1 }
 0x37c   : > { %v1175_v62 = vadd.f32 %v1174_v60, %v1101_v58  ;;  %v1176_v5 = vpop.f32.mrb[9].mxu1 }
 0x37d   : > { %v1177_v6 = vadd.f32 %v1176_v5, %v1105_v59  ;;  %v4088_v5 = vpack.c.bf16 %v1816_v56, %v1814_v55  ;;  %v1857_v55 = vld [vmem:[#allocation11 + $0x158] sm:$0xff] }
 0x37e   : > { %3865 = vmatpush3.msra.mxu0 %v1175_v62 }
 0x37f   : > { %v1180_v7 = vpop.f32.mrb[10].mxu1  ;;  %3885 = vmatpush3.msra.mxu1 %v1177_v6  ;;  %3869 = vmatprep.subr.mxu0 %v5176_v37 }
 0x380   : > { %v5681_v8 = vadd.f32 %v1180_v7, %v1101_v58  ;;  %v1182_v9 = vpop.f32.mrb[11].mxu1  ;;  %3889 = vmatprep.subr.mxu1 %v5176_v37  ;;  %v1821_v58 = vld [vmem:[#allocation11 + $0x38] sm:$0xff] }
 0x381   : > { %v5684_v10 = vadd.f32 %v1182_v9, %v1105_v59  ;;  %v4090_v7 = vpack.c.bf16 %v1821_v58, %v1819_v57  ;;  %v1818_v9 = vld [vmem:[#allocation11 + $0x20] sm:$0xff] }
 0x382   : > { %v1854_v58 = vld [vmem:[#allocation11 + $0x140] sm:$0xff] }
 0x414   : > { %v1251_v11 = vpop.f32.mrb[0].mxu0 }
 0x415   : > { %v1325_v12 = vmul.f32 0.088388346, %v1251_v11  ;;  %v3858_v13 = vpop.f32.mrb[1].mxu0  ;;  %v1564_v16 = vpop.f32.mrb[12].mxu1  ;;  %v1820_v11 = vld [vmem:[#allocation11 + $0x30] sm:$0xff] }
 0x416   : > { %v1638_v17 = vmul.f32 0.088388346, %v1564_v16  ;;  %v3878_v18 = vpop.f32.mrb[13].mxu1  ;;  %v1822_v16 = vld [vmem:[#allocation11 + $0x40] sm:$0xff] }
 0x417   : > { %v1328_v19 = vsel %vm1327_vm1, %v1325_v12, -inf  ;;  %v1827_v18 = vld [vmem:[#allocation11 + $0x68] sm:$0xff] }
 0x418   : > { %1329 = vmax.xlane.f32.xlu1 %v1328_v19  ;;  %v1321_v22 = vpop.f32.mrb[2].mxu0  ;;  %v1640_v0 = vsel %vm1327_vm1, %v1638_v17, -inf  ;;  %v1829_v19 = vld [vmem:[#allocation11 + $0x78] sm:$0xff] }
 0x419   : > { %v1326_v1 = vmul.f32 0.088388346, %v1321_v22  ;;  %1641 = vmax.xlane.f32.xlu0 %v1640_v0  ;;  %v3863_v23 = vpop.f32.mrb[3].mxu0  ;;  %v1634_v15 = vpop.f32.mrb[14].mxu1  ;;  %v4098_v22 = vpack.c.bf16 %v1829_v19, %v1827_v18  ;;  %v1826_v0 = vld [vmem:[#allocation11 + $0x60] sm:$0xff]  ;;  %v1869_v18 = vld [vmem:[#allocation11 + $0x1b8] sm:$0xff] }
 0x41a   : > { %v1639_v26 = vmul.f32 0.088388346, %v1634_v15  ;;  %v3883_v27 = vpop.f32.mrb[15].mxu1  ;;  %v1831_v23 = vld [vmem:[#allocation11 + $0x88] sm:$0xff]  ;;  %v1833_v15 = vld [vmem:[#allocation11 + $0x98] sm:$0xff] }
 0x41b   : > { %v1331_v14 = vsel %vm1327_vm1, %v1326_v1, -inf  ;;  %v4102_v27 = vpack.c.bf16 %v1833_v15, %v1831_v23  ;;  %v1873_v23 = vld [vmem:[#allocation11 + $0x1d8] sm:$0xff] }
 0x41c   : > { %1332 = vmax.xlane.f32.xlu1 %v1331_v14  ;;  %v1643_v28 = vsel %vm1327_vm1, %v1639_v26, -inf  ;;  %v1830_v14 = vld [vmem:[#allocation11 + $0x80] sm:$0xff] }
 0x41d   : > { %1644 = vmax.xlane.f32.xlu0 %v1643_v28  ;;  %v1832_v28 = vld [vmem:[#allocation11 + $0x90] sm:$0xff] }
 0x4a5   : > { %v1330_v2 = vpop.xlane.xlu1 %1329 }
 0x4a6   : > { %v1334_v4 = vsub.f32 %v1325_v12, %v1330_v2  ;;  %v1642_v29 = vpop.xlane.xlu0 %1641  ;;  %v1825_v12 = vld [vmem:[#allocation11 + $0x58] sm:$0xff]  ;;  %v1835_v2 = vld [vmem:[#allocation11 + $0xa8] sm:$0xff] }
 0x4a7   : > { %v1646_v30 = vsub.f32 %v1638_v17, %v1642_v29  ;;  %v1824_v17 = vld [vmem:[#allocation11 + $0x50] sm:$0xff]  ;;  %v4104_v29 = vpack.c.bf16 %v1832_v28, %v1830_v14  ;;  %v1875_v28 = vld [vmem:[#allocation11 + $0x1e8] sm:$0xff] }
 0x4a8   : > { %v1336_v33 = vmul.f32 1.442695, %v1334_v4  ;;  %v1837_v4 = vld [vmem:[#allocation11 + $0xb8] sm:$0xff]  ;;  %v1872_v14 = vld [vmem:[#allocation11 + $0x1d0] sm:$0xff] }
 0x4a9   : > { %v1648_v21 = vmul.f32 1.442695, %v1646_v30  ;;  %v1333_v24 = vpop.xlane.xlu1 %1332  ;;  %v4106_v30 = vpack.c.bf16 %v1837_v4, %v1835_v2  ;;  %v1877_v2 = vld [vmem:[#allocation11 + $0x1f8] sm:$0xff] }
 0x4aa   : > { %4798 = vpow2.f32 %v1336_v33  ;;  %v1335_v20 = vsub.f32 %v1326_v1, %v1333_v24  ;;  %v1645_v34 = vpop.xlane.xlu0 %1644  ;;  %v1828_v1 = vld [vmem:[#allocation11 + $0x70] sm:$0xff]  ;;  %v1834_v33 = vld [vmem:[#allocation11 + $0xa0] sm:$0xff]  ;;  %v1839_v24 = vld [vmem:[#allocation11 + $0xc8] sm:$0xff] }
 0x4ab   : > { %4800 = vpow2.f32 %v1648_v21  ;;  %v1647_v35 = vsub.f32 %v1639_v26, %v1645_v34  ;;  %v4100_v26 = vpack.c.bf16 %v1828_v1, %v1826_v0  ;;  %v1836_v21 = vld [vmem:[#allocation11 + $0xb0] sm:$0xff]  ;;  %v1871_v1 = vld [vmem:[#allocation11 + $0x1c8] sm:$0xff] }
 0x4ac   : > { %v1338_v36 = vmul.f32 1.442695, %v1335_v20  ;;  %v1841_v20 = vld [vmem:[#allocation11 + $0xd8] sm:$0xff]  ;;  %v4108_v34 = vpack.c.bf16 %v1836_v21, %v1834_v33  ;;  %v1868_v0 = vld [vmem:[#allocation11 + $0x1b0] sm:$0xff] }
 0x4ad   : > { %v1650_v38 = vmul.f32 1.442695, %v1647_v35  ;;  %v4110_v35 = vpack.c.bf16 %v1841_v20, %v1839_v24  ;;  %v1876_v33 = vld [vmem:[#allocation11 + $0x1f0] sm:$0xff] }
 0x4ae   : > { %4802 = vpow2.f32 %v1338_v36  ;;  %v1838_v36 = vld [vmem:[#allocation11 + $0xc0] sm:$0xff] }
 0x4af   : > { %4804 = vpow2.f32 %v1650_v38  ;;  %v1840_v38 = vld [vmem:[#allocation11 + $0xd0] sm:$0xff] }
 0x4b4   : > { %v4799_v39 = vpop.eup %4798 }
 0x4b5   : > { %v4801_v40 = vpop.eup %4800  ;;  %v1340_v25 = vsel %vm1327_vm1, %v4799_v39, 0.0 }
 0x4b6   : > { %1341 = vadd.xlane.f32.xlu1 %v1340_v25  ;;  %v1652_v31 = vsel %vm1327_vm1, %v4801_v40, 0.0  ;;  %v4112_v25 = vpack.c.bf16 %v1840_v38, %v1838_v36 }
 0x4b7   : > { %1653 = vadd.xlane.f32.xlu0 %v1652_v31 }
 0x4b8   : > { %v4803_v32 = vpop.eup %4802 }
 0x4b9   : > { %v4805_v41 = vpop.eup %4804  ;;  %v1343_v42 = vsel %vm1327_vm1, %v4803_v32, 0.0 }
 0x4ba   : > { %1344 = vadd.xlane.f32.xlu1 %v1343_v42  ;;  %v1655_v43 = vsel %vm1327_vm1, %v4805_v41, 0.0  ;;  %v1847_v42 = vld [vmem:[#allocation11 + $0x108] sm:$0xff] }
 0x4bb   : > { %1656 = vadd.xlane.f32.xlu0 %v1655_v43  ;;  %v1849_v43 = vld [vmem:[#allocation11 + $0x118] sm:$0xff] }
 0x543   : > { %v1342_v44 = vpop.xlane.xlu1 %1341 }
 0x544   : > { %4806 = vrcp.f32 %v1342_v44  ;;  %v1654_v45 = vpop.xlane.xlu0 %1653 }
 0x545   : > { %4808 = vrcp.f32 %v1654_v45  ;;  %v4118_v45 = vpack.c.bf16 %v1849_v43, %v1847_v42 }
 0x547   : > { %v1345_v46 = vpop.xlane.xlu1 %1344 }
 0x548   : > { %4810 = vrcp.f32 %v1345_v46  ;;  %v1657_v47 = vpop.xlane.xlu0 %1656  ;;  %v1846_v46 = vld [vmem:[#allocation11 + $0x100] sm:$0xff] }
 0x549   : > { %4812 = vrcp.f32 %v1657_v47  ;;  %v1848_v47 = vld [vmem:[#allocation11 + $0x110] sm:$0xff] }
 0x54e   : > { %v4807_v50 = vpop.eup %4806 }
 0x54f   : > { %v4809_v51 = vpop.eup %4808  ;;  %v1347_v52 = vmul.f32 %v4807_v50, %v4799_v39  ;;  %v1843_v39 = vld [vmem:[#allocation11 + $0xe8] sm:$0xff]  ;;  %v4120_v50 = vpack.c.bf16 %v1848_v47, %v1846_v46 }
 0x550   : > { %v1659_v53 = vmul.f32 %v4809_v51, %v4801_v40  ;;  %v1845_v40 = vld [vmem:[#allocation11 + $0xf8] sm:$0xff]  ;;  %v4122_v51 = vpack.c.bf16 %v1853_v49, %v1851_v48  ;;  %v4883_v47 = vld [vmem:[%s5551_s19 + $0x8] sm:$0xff] }
 0x551   : > { %3867 = vmatmul.mubr.msk.f32.vlgmr.msra.gmra.mrb[4].mxu0 %vm1327_vm1, %v1347_v52  ;;  %v4114_v31 = vpack.c.bf16 %v1845_v40, %v1843_v39  ;;  %v1850_v52 = vld [vmem:[#allocation11 + $0x120] sm:$0xff] }
 0x552   : > { %v4811_v59 = vpop.eup %4810  ;;  %3870 = vmatpush3.msra.mxu0 %v5681_v8  ;;  %3887 = vmatmul.mubr.msk.f32.vlgmr.msra.gmra.mrb[16].mxu1 %vm1327_vm1, %v1659_v53  ;;  %v1823_v8 = vld [vmem:[#allocation11 + $0x48] sm:$0xff]  ;;  %v1852_v53 = vld [vmem:[#allocation11 + $0x130] sm:$0xff] }
 0x553   : > { %v4813_v60 = vpop.eup %4812  ;;  %v1349_v62 = vmul.f32 %v4811_v59, %v4803_v32  ;;  %3890 = vmatpush3.msra.mxu1 %v5684_v10  ;;  %3871 = vmatprep.mubr.msk.f32.mxu0 %vm5177_vm0, %v5176_v37  ;;  %v4092_v10 = vpack.c.bf16 %v1820_v11, %v1818_v9  ;;  %v4094_v13 = vpack.c.bf16 %v1825_v12, %v1823_v8  ;;  %v1842_v32 = vld [vmem:[#allocation11 + $0xe0] sm:$0xff]  ;;  %v1856_v59 = vld [vmem:[#allocation11 + $0x150] sm:$0xff]  ;;  %v1863_v11 = vld [vmem:[#allocation11 + $0x188] sm:$0xff] }
 0x554   : > { %v1661_v6 = vmul.f32 %v4813_v60, %v4805_v41  ;;  %3891 = vmatprep.mubr.msk.f32.mxu1 %vm5177_vm0, %v5176_v37  ;;  %4087 = vmatprep.subr.bf16.mxu1 %v4086_v54  ;;  %v4096_v37 = vpack.c.bf16 %v1824_v17, %v1822_v16  ;;  %v1844_v41 = vld [vmem:[#allocation11 + $0xf0] sm:$0xff]  ;;  %v1855_v54 = vld [vmem:[#allocation11 + $0x148] sm:$0xff]  ;;  %v4124_v56 = vpack.c.bf16 %v1852_v53, %v1850_v52  ;;  %v1865_v8 = vld [vmem:[#allocation11 + $0x198] sm:$0xff] }
 0x555   : > { %3872 = vmatmul.mubr.msk.f32.vlgmr.msra.gmra.mrb[6].mxu0 %vm1327_vm1, %v1349_v62  ;;  %v4116_v44 = vpack.c.bf16 %v1844_v41, %v1842_v32  ;;  %v4126_v57 = vpack.c.bf16 %v1857_v55, %v1855_v54  ;;  %v1859_v60 = vld [vmem:[#allocation11 + $0x168] sm:$0xff]  ;;  %v1861_v62 = vld [vmem:[#allocation11 + $0x178] sm:$0xff]  ;;  %v1860_v9 = vld [vmem:[#allocation11 + $0x170] sm:$0xff] }
 0x556   : > { %3892 = vmatmul.mubr.msk.f32.vlgmr.msra.gmra.mrb[18].mxu1 %vm1327_vm1, %v1661_v6  ;;  %v4130_v6 = vpack.c.bf16 %v1861_v62, %v1859_v60  ;;  %v1864_v16 = vld [vmem:[#allocation11 + $0x190] sm:$0xff]  ;;  %v1867_v17 = vld [vmem:[#allocation11 + $0x1a8] sm:$0xff]  ;;  %v2038_v62 = vld [vmem:[#allocation12 + $0x18] sm:$0xff] }
 0x557   : > { %4089 = vmatpush1.bf16.msra.mxu1 %v4088_v5  ;;  %v4128_v5 = vpack.c.bf16 %v1856_v59, %v1854_v58  ;;  %v4884_v54 = vld [vmem:[%s5551_s19 + $0x10] sm:$0xff]  ;;  %v2036_v59 = vld [vmem:[#allocation12 + $0x8] sm:$0xff] }
 0x558   : > { %4091 = vmatprep.subr.bf16.mxu1 %v4090_v7  ;;  %v1858_v7 = vld [vmem:[#allocation11 + $0x160] sm:$0xff]  ;;  %v2044_v60 = vld [vmem:[#allocation12 + $0x48] sm:$0xff] }
 0x559   : > { %v4132_v12 = vpack.c.bf16 %v1860_v9, %v1858_v7  ;;  %v2035_v7 = vld [vmem:[#allocation12] sm:$0xff] }
 0x55a   : > { %v2043_v9 = vld [vmem:[#allocation12 + $0x40] sm:$0xff] }
 0x55b   : > { %4093 = vmatpush1.bf16.msra.mxu1 %v4092_v10  ;;  %v4134_v10 = vpack.c.bf16 %v1865_v8, %v1863_v11  ;;  %v4152_v8 = vpack.c.bf16 %v2043_v9, %v2035_v7 }
 0x55c   : > { %4095 = vmatprep.subr.bf16.mxu1 %v4094_v13  ;;  %v1862_v13 = vld [vmem:[#allocation11 + $0x180] sm:$0xff] }
 0x55d   : > { %v4136_v19 = vpack.c.bf16 %v1864_v16, %v1862_v13  ;;  %v2052_v13 = vld [vmem:[#allocation12 + $0x88] sm:$0xff] }
 0x55f   : > { %4097 = vmatpush1.bf16.msra.mxu1 %v4096_v37  ;;  %v4138_v37 = vpack.c.bf16 %v1869_v18, %v1867_v17  ;;  %v2060_v17 = vld [vmem:[#allocation12 + $0xc8] sm:$0xff]  ;;  %v2054_v18 = vld [vmem:[#allocation12 + $0x98] sm:$0xff] }
 0x560   : > { %4099 = vmatprep.subr.bf16.mxu1 %v4098_v22  ;;  %v1866_v22 = vld [vmem:[#allocation11 + $0x1a0] sm:$0xff] }
 0x561   : > { %v4140_v15 = vpack.c.bf16 %v1868_v0, %v1866_v22  ;;  %v2051_v0 = vld [vmem:[#allocation12 + $0x80] sm:$0xff] }
 0x563   : > { %4101 = vmatpush1.bf16.msra.mxu1 %v4100_v26  ;;  %v4142_v26 = vpack.c.bf16 %v1873_v23, %v1871_v1  ;;  %v2059_v1 = vld [vmem:[#allocation12 + $0xc0] sm:$0xff]  ;;  %v2053_v23 = vld [vmem:[#allocation12 + $0x90] sm:$0xff] }
 0x564   : > { %4103 = vmatprep.subr.bf16.mxu1 %v4102_v27  ;;  %v1870_v27 = vld [vmem:[#allocation11 + $0x1c0] sm:$0xff] }
 0x565   : > { %v4144_v4 = vpack.c.bf16 %v1872_v14, %v1870_v27  ;;  %v2068_v27 = vld [vmem:[#allocation12 + $0x108] sm:$0xff] }
 0x566   : > { %v2076_v14 = vld [vmem:[#allocation12 + $0x148] sm:$0xff] }
 0x567   : > { %4105 = vmatpush1.bf16.msra.mxu1 %v4104_v29  ;;  %v4146_v29 = vpack.c.bf16 %v1877_v2, %v1875_v28  ;;  %v4158_v2 = vpack.c.bf16 %v2076_v14, %v2068_v27  ;;  %v2141_v14 = vld [vmem:[#allocation12 + $0x350] sm:$0xff] }
 0x568   : > { %4107 = vmatprep.subr.bf16.mxu1 %v4106_v30  ;;  %v1874_v30 = vld [vmem:[#allocation11 + $0x1e0] sm:$0xff] }
 0x569   : > { %v4148_v21 = vpack.c.bf16 %v1876_v33, %v1874_v30  ;;  %v2067_v30 = vld [vmem:[#allocation12 + $0x100] sm:$0xff] }
 0x56b   : > { %4109 = vmatpush1.bf16.msra.mxu1 %v4108_v34 }
 0x56c   : > { %4111 = vmatprep.subr.bf16.mxu1 %v4110_v35 }
 0x56f   : > { %4113 = vmatpush1.bf16.msra.mxu1 %v4112_v25  ;;  %v1878_v25 = vld [vmem:[%s6273_s17] sm:$0x3] }
 0x570   : > { %4115 = vmatprep.subr.bf16.mxu1 %v4114_v31  ;;  %v1883_v31 = vrot.slane %v1878_v25, %v5611_v3  ;;  %v1887_v32 = vrot.slane %v1878_v25, %v5608_v63  ;;  %v2094_v25 = vld [vmem:[#allocation12 + $0x1d8] sm:$0xff] }
 0x573   : > { %4117 = vmatpush1.bf16.msra.mxu1 %v4116_v44 }
 0x574   : > { %4119 = vmatprep.subr.bf16.mxu1 %v4118_v45  ;;  %v4882_v45 = vld [vmem:[%s5551_s19] sm:$0xff] }
 0x577   : > { %4121 = vmatpush1.bf16.msra.mxu1 %v4120_v50 }
 0x578   : > { %4123 = vmatprep.subr.bf16.mxu1 %v4122_v51 }
 0x57b   : > { %4125 = vmatpush1.bf16.msra.mxu1 %v4124_v56  ;;  %v4885_v56 = vld [vmem:[%s5551_s19 + $0x18] sm:$0xff]  ;;  %s6277_s19 = sld [smem:[#allocation31_spill]] }
 0x57c   : > { %4127 = vmatprep.subr.bf16.mxu1 %v4126_v57 }
 0x57f   : > { %4129 = vmatpush1.bf16.msra.mxu1 %v4128_v5  ;;  %v4150_v5 = vpack.c.bf16 %v2044_v60, %v2036_v59  ;;  %v2109_v59 = vld [vmem:[#allocation12 + $0x250] sm:$0xff]  ;;  %v2116_v60 = vld [vmem:[#allocation12 + $0x288] sm:$0xff] }
 0x580   : > { %4131 = vmatprep.subr.bf16.mxu1 %v4130_v6  ;;  %v2046_v6 = vld [vmem:[#allocation12 + $0x58] sm:$0xff] }
 0x581   : > { %v4214_v11 = vpack.c.bf16 %v2046_v6, %v2038_v62  ;;  %4151 = vmatprep.subr.bf16.mxu0 %v4150_v5  ;;  %v2124_v62 = vld [vmem:[#allocation12 + $0x2c8] sm:$0xff]  ;;  %v2118_v5 = vld [vmem:[#allocation12 + $0x298] sm:$0xff] }
 0x582   : > { %4153 = vmatpush1.bf16.msra.mxu0 %v4152_v8  ;;  %v2126_v6 = vld [vmem:[#allocation12 + $0x2d8] sm:$0xff]  ;;  %v2115_v8 = vld [vmem:[#allocation12 + $0x280] sm:$0xff] }
 0x583   : > { %4133 = vmatpush1.bf16.msra.mxu1 %v4132_v12  ;;  %v2037_v12 = vld [vmem:[#allocation12 + $0x10] sm:$0xff] }
 0x584   : > { %4135 = vmatprep.subr.bf16.mxu1 %v4134_v10  ;;  %v2045_v10 = vld [vmem:[#allocation12 + $0x50] sm:$0xff] }
 0x585   : > { %v4216_v16 = vpack.c.bf16 %v2045_v10, %v2037_v12  ;;  %v2123_v12 = vld [vmem:[#allocation12 + $0x2c0] sm:$0xff]  ;;  %v2117_v10 = vld [vmem:[#allocation12 + $0x290] sm:$0xff] }
 0x587   : > { %4137 = vmatpush1.bf16.msra.mxu1 %v4136_v19  ;;  %v2062_v19 = vld [vmem:[#allocation12 + $0xd8] sm:$0xff] }
 0x588   : > { %4139 = vmatprep.subr.bf16.mxu1 %v4138_v37  ;;  %v4154_v37 = vpack.c.bf16 %v2060_v17, %v2052_v13  ;;  %v4218_v22 = vpack.c.bf16 %v2062_v19, %v2054_v18  ;;  %v4234_v13 = vpack.c.bf16 %v2126_v6, %v2118_v5  ;;  %v2132_v17 = vld [vmem:[#allocation12 + $0x308] sm:$0xff]  ;;  %v2134_v19 = vld [vmem:[#allocation12 + $0x318] sm:$0xff]  ;;  %v2189_v5 = vld [vmem:[#allocation12 + $0x4d0] sm:$0xff] }
 0x589   : > { %v2140_v18 = vld [vmem:[#allocation12 + $0x348] sm:$0xff] }
 0x58a   : > { %4155 = vmatprep.subr.bf16.mxu0 %v4154_v37  ;;  %v2142_v37 = vld [vmem:[#allocation12 + $0x358] sm:$0xff]  ;;  %v2196_v6 = vld [vmem:[#allocation12 + $0x508] sm:$0xff] }
 0x58b   : > { %4141 = vmatpush1.bf16.msra.mxu1 %v4140_v15  ;;  %v4156_v15 = vpack.c.bf16 %v2059_v1, %v2051_v0  ;;  %v4174_v1 = vpack.c.bf16 %v2140_v18, %v2132_v17  ;;  %v4238_v27 = vpack.c.bf16 %v2142_v37, %v2134_v19  ;;  %v2197_v18 = vld [vmem:[#allocation12 + $0x510] sm:$0xff] }
 0x58c   : > { %4143 = vmatprep.subr.bf16.mxu1 %v4142_v26  ;;  %v2061_v26 = vld [vmem:[#allocation12 + $0xd0] sm:$0xff] }
 0x58d   : > { %v4220_v28 = vpack.c.bf16 %v2061_v26, %v2053_v23  ;;  %4157 = vmatpush1.bf16.msra.mxu0 %v4156_v15  ;;  %v2131_v23 = vld [vmem:[#allocation12 + $0x300] sm:$0xff]  ;;  %v2133_v26 = vld [vmem:[#allocation12 + $0x310] sm:$0xff] }
 0x58e   : > { %4159 = vmatprep.subr.bf16.mxu0 %v4158_v2  ;;  %v2139_v15 = vld [vmem:[#allocation12 + $0x340] sm:$0xff]  ;;  %v2156_v2 = vld [vmem:[#allocation12 + $0x3c8] sm:$0xff]  ;;  %v2205_v19 = vld [vmem:[#allocation12 + $0x550] sm:$0xff] }
 0x58f   : > { %4145 = vmatpush1.bf16.msra.mxu1 %v4144_v4  ;;  %v2070_v4 = vld [vmem:[#allocation12 + $0x118] sm:$0xff] }
 0x590   : > { %4147 = vmatprep.subr.bf16.mxu1 %v4146_v29  ;;  %v2078_v29 = vld [vmem:[#allocation12 + $0x158] sm:$0xff] }
 0x591   : > { %v4222_v33 = vpack.c.bf16 %v2078_v29, %v2070_v4  ;;  %v2150_v4 = vld [vmem:[#allocation12 + $0x398] sm:$0xff] }
 0x592   : > { %v2158_v29 = vld [vmem:[#allocation12 + $0x3d8] sm:$0xff] }
 0x593   : > { %4149 = vmatpush1.bf16.msra.mxu1 %v4148_v21  ;;  %v2075_v21 = vld [vmem:[#allocation12 + $0x140] sm:$0xff] }
 0x594   : > { %4215 = vmatprep.subr.bf16.mxu1 %v4214_v11  ;;  %v4170_v11 = vpack.c.bf16 %v2124_v62, %v2116_v60  ;;  %v2181_v60 = vld [vmem:[#allocation12 + $0x490] sm:$0xff] }
 0x624   : > { %v1419_v24 = vpop.f32.mrb[4].mxu0 }
 0x625   : > { %v3868_v20 = vpop.f32.mrb[5].mxu0  ;;  %v1731_v34 = vpop.f32.mrb[16].mxu1 }
 0x626   : > { %v3888_v35 = vpop.f32.mrb[17].mxu1  ;;  %1954 = vmatprep.mubr.f32.mxu1 %v1731_v34  ;;  %v2077_v20 = vld [vmem:[#allocation12 + $0x150] sm:$0xff]  ;;  %v4160_v34 = vpack.c.bf16 %v2075_v21, %v2067_v30  ;;  %v4176_v30 = vpack.c.bf16 %v2139_v15, %v2131_v23 }
 0x627   : > { %1955 = vmatmul.mubr.f32.vlgmr.msra.gmra.mrb[20].mxu1 %v1419_v24  ;;  %v2069_v24 = vld [vmem:[#allocation12 + $0x110] sm:$0xff]  ;;  %v2084_v35 = vld [vmem:[#allocation12 + $0x188] sm:$0xff] }
 0x628   : > { %v1492_v36 = vpop.f32.mrb[6].mxu0  ;;  %4217 = vmatpush1.bf16.msra.mxu1 %v4216_v16  ;;  %4161 = vmatpush1.bf16.msra.mxu0 %v4160_v34  ;;  %v2125_v16 = vld [vmem:[#allocation12 + $0x2d0] sm:$0xff] }
 0x629   : > { %v3873_v38 = vpop.f32.mrb[7].mxu0  ;;  %v1804_v39 = vpop.f32.mrb[18].mxu1  ;;  %4219 = vmatprep.subr.bf16.mxu1 %v4218_v22  ;;  %v4172_v22 = vpack.c.bf16 %v2123_v12, %v2115_v8  ;;  %v4236_v0 = vpack.c.bf16 %v2125_v16, %v2117_v10  ;;  %v2149_v34 = vld [vmem:[#allocation12 + $0x390] sm:$0xff]  ;;  %v4252_v12 = vpack.c.bf16 %v2189_v5, %v2181_v60  ;;  %v2203_v16 = vld [vmem:[#allocation12 + $0x540] sm:$0xff]  ;;  %v2246_v60 = vld [vmem:[#allocation12 + $0x698] sm:$0xff] }
 0x62a   : > { %v3893_v40 = vpop.f32.mrb[19].mxu1  ;;  %1960 = vmatprep.mubr.f32.mxu1 %v1804_v39  ;;  %v2086_v38 = vld [vmem:[#allocation12 + $0x198] sm:$0xff]  ;;  %v4224_v39 = vpack.c.bf16 %v2077_v20, %v2069_v24  ;;  %v2147_v24 = vld [vmem:[#allocation12 + $0x380] sm:$0xff] }
 0x62b   : > { %1961 = vmatmul.mubr.f32.gmra.mrb[22].mxu1 %v1492_v36  ;;  %v2092_v36 = vld [vmem:[#allocation12 + $0x1c8] sm:$0xff]  ;;  %v2155_v20 = vld [vmem:[#allocation12 + $0x3c0] sm:$0xff]  ;;  %v2254_v5 = vld [vmem:[#allocation12 + $0x6d8] sm:$0xff] }
 0x62c   : > { %4221 = vmatpush1.bf16.msra.mxu1 %v4220_v28  ;;  %v4162_v40 = vpack.c.bf16 %v2092_v36, %v2084_v35  ;;  %v2148_v28 = vld [vmem:[#allocation12 + $0x388] sm:$0xff]  ;;  %v4242_v35 = vpack.c.bf16 %v2158_v29, %v2150_v4  ;;  %v2157_v36 = vld [vmem:[#allocation12 + $0x3d0] sm:$0xff] }
 0x62d   : > { %4223 = vmatprep.subr.bf16.mxu1 %v4222_v33  ;;  %v4240_v33 = vpack.c.bf16 %v2141_v14, %v2133_v26  ;;  %v4178_v21 = vpack.c.bf16 %v2156_v2, %v2148_v28 }
 0x62e   : > { %4163 = vmatprep.subr.bf16.mxu0 %v4162_v40  ;;  %v2166_v40 = vld [vmem:[#allocation12 + $0x418] sm:$0xff] }
 0x630   : > { %4225 = vmatpush1.bf16.msra.mxu1 %v4224_v39  ;;  %v2172_v39 = vld [vmem:[#allocation12 + $0x448] sm:$0xff] }
 0x6fa   : > { %v1956_v41 = vpop.f32.mrb[20].mxu1 }
 0x6fb   : > { %v1957_v42 = vadd.f32 %v1956_v41, %v1883_v31  ;;  %v1958_v43 = vpop.f32.mrb[21].mxu1  ;;  %v4226_v41 = vpack.c.bf16 %v2094_v25, %v2086_v38  ;;  %v2164_v38 = vld [vmem:[#allocation12 + $0x408] sm:$0xff]  ;;  %v2174_v25 = vld [vmem:[#allocation12 + $0x458] sm:$0xff] }
 0x6fc   : > { %v1959_v44 = vadd.f32 %v1958_v43, %v1887_v32  ;;  %v2093_v43 = vld [vmem:[#allocation12 + $0x1d0] sm:$0xff] }
 0x6fd   : > { %v5710_v46 = vadd.f32 %v4882_v45, %v1957_v42  ;;  %v2085_v42 = vld [vmem:[#allocation12 + $0x190] sm:$0xff]  ;;  %v2108_v45 = vld [vmem:[#allocation12 + $0x248] sm:$0xff]  ;;  %4227 = vmatprep.subr.bf16.mxu1 %v4226_v41  ;;  %v4182_v41 = vpack.c.bf16 %v2172_v39, %v2164_v38  ;;  %v2211_v38 = vld [vmem:[#allocation12 + $0x580] sm:$0xff] }
 0x6fe   : > { %v5713_v48 = vadd.f32 %v4883_v47, %v1959_v44  ;;  %v1962_v49 = vpop.f32.mrb[22].mxu1  ;;  %v2100_v44 = vld [vmem:[#allocation12 + $0x208] sm:$0xff]  ;;  %v2102_v47 = vld [vmem:[#allocation12 + $0x218] sm:$0xff]  ;;  %v2219_v39 = vld [vmem:[#allocation12 + $0x5c0] sm:$0xff] }
 0x6ff   : > { %v1963_v50 = vadd.f32 %v1962_v49, %v1883_v31  ;;  %v1964_v51 = vpop.f32.mrb[23].mxu1  ;;  %v2083_v31 = vld [vmem:[#allocation12 + $0x180] sm:$0xff]  ;;  %v2110_v49 = vld [vmem:[#allocation12 + $0x258] sm:$0xff] }
 0x700   : > { %v1965_v52 = vadd.f32 %v1964_v51, %v1887_v32  ;;  %v1973_v53 = vadd.f32 %v5713_v48, %v5710_v46  ;;  %v2091_v32 = vld [vmem:[#allocation12 + $0x1c0] sm:$0xff]  ;;  %v4228_v51 = vpack.c.bf16 %v2093_v43, %v2085_v42 }
 0x701   : > { %v5718_v55 = vadd.f32 %v4884_v54, %v1963_v50  ;;  %v4164_v50 = vpack.c.bf16 %v2091_v32, %v2083_v31  ;;  %v2107_v54 = vld [vmem:[#allocation12 + $0x240] sm:$0xff]  ;;  %v4180_v31 = vpack.c.bf16 %v2155_v20, %v2147_v24  ;;  %v4244_v32 = vpack.c.bf16 %v2157_v36, %v2149_v34  ;;  %v2212_v24 = vld [vmem:[#allocation12 + $0x588] sm:$0xff]  ;;  %v2214_v34 = vld [vmem:[#allocation12 + $0x598] sm:$0xff] }
 0x702   : > { %v5721_v57 = vadd.f32 %v4885_v56, %v1965_v52  ;;  %1974 = vadd.xlane.f32.xlu0 %v1973_v53  ;;  %v4166_v52 = vpack.c.bf16 %v2108_v45, %v2100_v44  ;;  %v2099_v53 = vld [vmem:[#allocation12 + $0x200] sm:$0xff]  ;;  %v2101_v56 = vld [vmem:[#allocation12 + $0x210] sm:$0xff]  ;;  %4229 = vmatpush1.bf16.msra.mxu1 %v4228_v51  ;;  %v4246_v45 = vpack.c.bf16 %v2174_v25, %v2166_v40  ;;  %v2182_v51 = vld [vmem:[#allocation12 + $0x498] sm:$0xff] }
 0x703   : > { %4165 = vmatpush1.bf16.msra.mxu0 %v4164_v50  ;;  %v4168_v7 = vpack.c.bf16 %v2107_v54, %v2099_v53  ;;  %v4232_v9 = vpack.c.bf16 %v2109_v59, %v2101_v56  ;;  %v2163_v42 = vld [vmem:[#allocation12 + $0x400] sm:$0xff]  ;;  %v2165_v44 = vld [vmem:[#allocation12 + $0x410] sm:$0xff]  ;;  %v2188_v50 = vld [vmem:[#allocation12 + $0x4c8] sm:$0xff]  ;;  %v4196_v25 = vpack.c.bf16 %v2219_v39, %v2211_v38 }
 0x704   : > { %v1976_v58 = vadd.f32 %v5721_v57, %v5718_v55  ;;  %4167 = vmatprep.subr.bf16.mxu0 %v4166_v52  ;;  %v2171_v43 = vld [vmem:[#allocation12 + $0x440] sm:$0xff]  ;;  %v2190_v52 = vld [vmem:[#allocation12 + $0x4d8] sm:$0xff]  ;;  %v2220_v20 = vld [vmem:[#allocation12 + $0x5c8] sm:$0xff] }
 0x705   : > { %v4184_v53 = vpack.c.bf16 %v2171_v43, %v2163_v42  ;;  %v2187_v59 = vld [vmem:[#allocation12 + $0x4c0] sm:$0xff]  ;;  %v4250_v62 = vpack.c.bf16 %v2190_v52, %v2182_v51  ;;  %v2222_v36 = vld [vmem:[#allocation12 + $0x5d8] sm:$0xff]  ;;  %v2228_v42 = vld [vmem:[#allocation12 + $0x608] sm:$0xff] }
 0x706   : > { %1977 = vadd.xlane.f32.xlu1 %v1976_v58  ;;  %v4230_v58 = vpack.c.bf16 %v2110_v49, %v2102_v47  ;;  %v2173_v47 = vld [vmem:[#allocation12 + $0x450] sm:$0xff]  ;;  %v2180_v49 = vld [vmem:[#allocation12 + $0x488] sm:$0xff]  ;;  %v4258_v40 = vpack.c.bf16 %v2222_v36, %v2214_v34  ;;  %v2283_v34 = vld [vmem:[#allocation12 + $0x7c0] sm:$0xff] }
 0x707   : > { %4169 = vmatpush1.bf16.msra.mxu0 %v4168_v7  ;;  %v4248_v54 = vpack.c.bf16 %v2173_v47, %v2165_v44  ;;  %v4186_v56 = vpack.c.bf16 %v2188_v50, %v2180_v49  ;;  %v2204_v7 = vld [vmem:[#allocation12 + $0x548] sm:$0xff]  ;;  %v2230_v44 = vld [vmem:[#allocation12 + $0x618] sm:$0xff]  ;;  %v2227_v49 = vld [vmem:[#allocation12 + $0x600] sm:$0xff] }
 0x708   : > { %4231 = vmatprep.subr.bf16.mxu1 %v4230_v58  ;;  %4171 = vmatprep.subr.bf16.mxu0 %v4170_v11  ;;  %v2179_v58 = vld [vmem:[#allocation12 + $0x480] sm:$0xff]  ;;  %v2206_v11 = vld [vmem:[#allocation12 + $0x558] sm:$0xff]  ;;  %v4190_v10 = vpack.c.bf16 %v2204_v7, %v2196_v6  ;;  %v2236_v43 = vld [vmem:[#allocation12 + $0x648] sm:$0xff] }
 0x709   : > { %4233 = vmatpush1.bf16.msra.mxu1 %v4232_v9  ;;  %v2198_v9 = vld [vmem:[#allocation12 + $0x518] sm:$0xff]  ;;  %v4188_v8 = vpack.c.bf16 %v2187_v59, %v2179_v58  ;;  %v2235_v50 = vld [vmem:[#allocation12 + $0x640] sm:$0xff]  ;;  %v2244_v58 = vld [vmem:[#allocation12 + $0x688] sm:$0xff] }
 0x70a   : > { %4235 = vmatprep.subr.bf16.mxu1 %v4234_v13  ;;  %v2195_v13 = vld [vmem:[#allocation12 + $0x500] sm:$0xff]  ;;  %v4254_v17 = vpack.c.bf16 %v2206_v11, %v2198_v9  ;;  %v2238_v47 = vld [vmem:[#allocation12 + $0x658] sm:$0xff]  ;;  %v4200_v52 = vpack.c.bf16 %v2235_v50, %v2227_v49  ;;  %v2252_v59 = vld [vmem:[#allocation12 + $0x6c8] sm:$0xff]  ;;  %v4266_v9 = vpack.c.bf16 %v2254_v5, %v2246_v60 }
 0x70b   : > { %4173 = vmatpush1.bf16.msra.mxu0 %v4172_v22  ;;  %v4192_v37 = vpack.c.bf16 %v2203_v16, %v2195_v13  ;;  %v4256_v22 = vpack.c.bf16 %v2205_v19, %v2197_v18  ;;  %v4262_v51 = vpack.c.bf16 %v2238_v47, %v2230_v44  ;;  %v2243_v6 = vld [vmem:[#allocation12 + $0x680] sm:$0xff]  ;;  %v2268_v16 = vld [vmem:[#allocation12 + $0x748] sm:$0xff]  ;;  %v2270_v18 = vld [vmem:[#allocation12 + $0x758] sm:$0xff] }
 0x70c   : > { %4175 = vmatprep.subr.bf16.mxu0 %v4174_v1  ;;  %v2251_v7 = vld [vmem:[#allocation12 + $0x6c0] sm:$0xff]  ;;  %v2285_v36 = vld [vmem:[#allocation12 + $0x7d0] sm:$0xff] }
 0x70d   : > { %4237 = vmatpush1.bf16.msra.mxu1 %v4236_v0  ;;  %v4204_v11 = vpack.c.bf16 %v2251_v7, %v2243_v6  ;;  %v2047_v6 = vld [vmem:[#allocation12 + $0x60] sm:$0xff]  ;;  %v2041_v7 = vld [vmem:[#allocation12 + $0x30] sm:$0xff] }
 0x70e   : > { %4239 = vmatprep.subr.bf16.mxu1 %v4238_v27 }
 0x70f   : > { %4177 = vmatpush1.bf16.msra.mxu0 %v4176_v30 }
 0x710   : > { %4179 = vmatprep.subr.bf16.mxu0 %v4178_v21 }
 0x711   : > { %4241 = vmatpush1.bf16.msra.mxu1 %v4240_v33 }
 0x712   : > { %4243 = vmatprep.subr.bf16.mxu1 %v4242_v35  ;;  %v4194_v35 = vpack.c.bf16 %v2220_v20, %v2212_v24  ;;  %v2275_v24 = vld [vmem:[#allocation12 + $0x780] sm:$0xff] }
 0x713   : > { %4181 = vmatpush1.bf16.msra.mxu0 %v4180_v31  ;;  %v2213_v31 = vld [vmem:[#allocation12 + $0x590] sm:$0xff]  ;;  %v4212_v38 = vpack.c.bf16 %v2283_v34, %v2275_v24  ;;  %v2080_v24 = vld [vmem:[#allocation12 + $0x168] sm:$0xff] }
 0x714   : > { %4183 = vmatprep.subr.bf16.mxu0 %v4182_v41 }
 0x715   : > { %4245 = vmatpush1.bf16.msra.mxu1 %v4244_v32  ;;  %v2221_v32 = vld [vmem:[#allocation12 + $0x5d0] sm:$0xff] }
 0x716   : > { %4247 = vmatprep.subr.bf16.mxu1 %v4246_v45  ;;  %v4260_v41 = vpack.c.bf16 %v2221_v32, %v2213_v31  ;;  %v4198_v45 = vpack.c.bf16 %v2236_v43, %v2228_v42  ;;  %v2042_v31 = vld [vmem:[#allocation12 + $0x38] sm:$0xff] }
 0x717   : > { %4185 = vmatpush1.bf16.msra.mxu0 %v4184_v53  ;;  %v2229_v53 = vld [vmem:[#allocation12 + $0x610] sm:$0xff] }
 0x718   : > { %4187 = vmatprep.subr.bf16.mxu0 %v4186_v56 }
 0x719   : > { %4249 = vmatpush1.bf16.msra.mxu1 %v4248_v54  ;;  %v2237_v54 = vld [vmem:[#allocation12 + $0x650] sm:$0xff] }
 0x71a   : > { %4251 = vmatprep.subr.bf16.mxu1 %v4250_v62  ;;  %v4264_v56 = vpack.c.bf16 %v2237_v54, %v2229_v53  ;;  %v4202_v62 = vpack.c.bf16 %v2252_v59, %v2244_v58  ;;  %v2039_v58 = vld [vmem:[#allocation12 + $0x20] sm:$0xff] }
 0x71b   : > { %4189 = vmatpush1.bf16.msra.mxu0 %v4188_v8  ;;  %v2245_v8 = vld [vmem:[#allocation12 + $0x690] sm:$0xff] }
 0x71c   : > { %4191 = vmatprep.subr.bf16.mxu0 %v4190_v10  ;;  %v2260_v10 = vld [vmem:[#allocation12 + $0x708] sm:$0xff] }
 0x71d   : > { %4253 = vmatpush1.bf16.msra.mxu1 %v4252_v12  ;;  %v2253_v12 = vld [vmem:[#allocation12 + $0x6d0] sm:$0xff]  ;;  %v4206_v19 = vpack.c.bf16 %v2268_v16, %v2260_v10  ;;  %v2064_v10 = vld [vmem:[#allocation12 + $0xe8] sm:$0xff]  ;;  %v2066_v16 = vld [vmem:[#allocation12 + $0xf8] sm:$0xff] }
 0x71e   : > { %4255 = vmatprep.subr.bf16.mxu1 %v4254_v17  ;;  %v4268_v13 = vpack.c.bf16 %v2253_v12, %v2245_v8  ;;  %v2262_v17 = vld [vmem:[#allocation12 + $0x718] sm:$0xff] }
 0x71f   : > { %4193 = vmatpush1.bf16.msra.mxu0 %v4192_v37  ;;  %v4270_v37 = vpack.c.bf16 %v2270_v18, %v2262_v17  ;;  %v4280_v18 = vpack.c.bf16 %v2047_v6, %v2039_v58  ;;  %v2106_v58 = vld [vmem:[#allocation12 + $0x238] sm:$0xff]  ;;  %v2111_v6 = vld [vmem:[#allocation12 + $0x260] sm:$0xff] }
 0x720   : > { %4195 = vmatprep.subr.bf16.mxu0 %v4194_v35  ;;  %v2277_v35 = vld [vmem:[#allocation12 + $0x790] sm:$0xff] }
 0x721   : > { %4257 = vmatpush1.bf16.msra.mxu1 %v4256_v22  ;;  %v2259_v22 = vld [vmem:[#allocation12 + $0x700] sm:$0xff]  ;;  %v4276_v39 = vpack.c.bf16 %v2285_v36, %v2277_v35 }
 0x722   : > { %4259 = vmatprep.subr.bf16.mxu1 %v4258_v40  ;;  %v2040_v40 = vld [vmem:[#allocation12 + $0x28] sm:$0xff]  ;;  %v2071_v36 = vld [vmem:[#allocation12 + $0x120] sm:$0xff] }
 0x723   : > { %4197 = vmatpush1.bf16.msra.mxu0 %v4196_v25  ;;  %v2048_v25 = vld [vmem:[#allocation12 + $0x68] sm:$0xff] }
 0x724   : > { %4199 = vmatprep.subr.bf16.mxu0 %v4198_v45  ;;  %v4278_v32 = vpack.c.bf16 %v2048_v25, %v2040_v40  ;;  %v2081_v40 = vld [vmem:[#allocation12 + $0x170] sm:$0xff]  ;;  %v2088_v25 = vld [vmem:[#allocation12 + $0x1a8] sm:$0xff] }
 0x725   : > { %4261 = vmatpush1.bf16.msra.mxu1 %v4260_v41  ;;  %v2050_v41 = vld [vmem:[#allocation12 + $0x78] sm:$0xff] }
 0x726   : > { %4263 = vmatprep.subr.bf16.mxu1 %v4262_v51  ;;  %v4342_v42 = vpack.c.bf16 %v2050_v41, %v2042_v31  ;;  %v1971_v51 = vld [vmem:[%s6274_s3] sm:$0x3]  ;;  %v2096_v41 = vld [vmem:[#allocation12 + $0x1e8] sm:$0xff]  ;;  %s3672_s3 = sshll.u32 %s654_s14, 4  ;;  %s6158_s3 = int_to_ptr.vmem [resolvable:$true] %s3672_s3 }
 0x727   : > { %4201 = vmatpush1.bf16.msra.mxu0 %v4200_v52  ;;  %v1972_v52 = vld [vmem:[%s6275_s29] sm:$0x3]  ;;  %v2013_v53 = vrot.slane %v1971_v51, %v5608_v63  ;;  %v2009_v54 = vrot.slane %v1971_v51, %v5611_v3  ;;  %s6278_s29 = sld [smem:[#allocation32_spill]]  ;;  %s5085_s12 = scalar_lea.vmem %s6158_s3, 512 }
 0x728   : > { %4203 = vmatprep.subr.bf16.mxu0 %v4202_v62  ;;  %v2028_v60 = vrot.slane %v1972_v52, %v5608_v63  ;;  %v2024_v5 = vrot.slane %v1972_v52, %v5611_v3  ;;  %v2089_v52 = vld [vmem:[#allocation12 + $0x1b0] sm:$0xff]  ;;  %p5086_p6 = scmp.ne.s32.totalorder %s6158_s3, %s5085_s12  ;;  %p5092_p13 = scmp.lt.s32.totalorder %s6158_s3, %s5090_s5 }
 0x729   : > { %4265 = vmatpush1.bf16.msra.mxu1 %v4264_v56  ;;  %p5093_p0 = scmp.lt.s32.totalorder %s5091_s30, %s5085_s12 }
 0x72a   : > { %4267 = vmatprep.subr.bf16.mxu1 %v4266_v9  ;;  %v2049_v9 = vld [vmem:[#allocation12 + $0x70] sm:$0xff]  ;;  %p5087_p12 = pnand %p5086_p6, %p6279_p9 }
 0x72b   : > { %4205 = vmatpush1.bf16.msra.mxu0 %v4204_v11  ;;  %v2056_v11 = vld [vmem:[#allocation12 + $0xa8] sm:$0xff]  ;;  %p5094_p2 = por %p5093_p0, %p5092_p13 }
 0x72c   : > { %4207 = vmatprep.subr.bf16.mxu0 %v4206_v19  ;;  %v4344_v19 = vpack.c.bf16 %v2049_v9, %v2041_v7  ;;  %p5088_p1 = pneg %p5087_p12 }
 0x72d   : > { %4269 = vmatpush1.bf16.msra.mxu1 %v4268_v13  ;;  %v2058_v13 = vld [vmem:[#allocation12 + $0xb8] sm:$0xff]  ;;  %s6164_s11 = scalar_lea.hbm %s6278_s29, %s3837_s16 }
 0x72e   : > { %4271 = vmatprep.subr.bf16.mxu1 %v4270_v37  ;;  %p5095_p8 = pnand %p5094_p2, %p5088_p1 }
 0x78f   : > { %v1975_v0 = vpop.xlane.xlu0 %1974 }
 0x790   : > { %v1979_v1 = vmul.f32 0.00390625, %v1975_v0  ;;  %v2267_v0 = vld [vmem:[#allocation12 + $0x740] sm:$0xff] }
 0x792   : > { %v5726_v23 = vsub.f32 %v5710_v46, %v1979_v1  ;;  %v5729_v15 = vsub.f32 %v5713_v48, %v1979_v1  ;;  %v2261_v1 = vld [vmem:[#allocation12 + $0x710] sm:$0xff] }
 0x793   : > { %v1978_v26 = vpop.xlane.xlu1 %1977 }
 0x794   : > { %v1980_v27 = vmul.f32 0.00390625, %v1978_v26  ;;  %v1985_v14 = vmul.f32 %v5726_v23, %v5726_v23  ;;  %v1986_v28 = vmul.f32 %v5729_v15, %v5729_v15  ;;  %v4208_v26 = vpack.c.bf16 %v2267_v0, %v2259_v22  ;;  %v2055_v0 = vld [vmem:[#allocation12 + $0xa0] sm:$0xff] }
 0x796   : > { %v5736_v2 = vsub.f32 %v5718_v55, %v1980_v27  ;;  %v5739_v4 = vsub.f32 %v5721_v57, %v1980_v27  ;;  %v1989_v29 = vadd.f32 %v1986_v28, %v1985_v14  ;;  %v2269_v27 = vld [vmem:[#allocation12 + $0x750] sm:$0xff]  ;;  %v2276_v14 = vld [vmem:[#allocation12 + $0x788] sm:$0xff]  ;;  %4209 = vmatpush1.bf16.msra.mxu0 %v4208_v26  ;;  %v4282_v26 = vpack.c.bf16 %v2064_v10, %v2056_v11 }
 0x797   : > { %v2284_v28 = vld [vmem:[#allocation12 + $0x7c8] sm:$0xff]  ;;  %v2105_v11 = vld [vmem:[#allocation12 + $0x230] sm:$0xff] }
 0x798   : > { %1990 = vadd.xlane.f32.xlu0 %v1989_v29  ;;  %v1987_v30 = vmul.f32 %v5736_v2, %v5736_v2  ;;  %v1988_v33 = vmul.f32 %v5739_v4, %v5739_v4  ;;  %v4272_v29 = vpack.c.bf16 %v2269_v27, %v2261_v1  ;;  %v2063_v1 = vld [vmem:[#allocation12 + $0xe0] sm:$0xff]  ;;  %v4346_v27 = vpack.c.bf16 %v2066_v16, %v2058_v13  ;;  %v2128_v10 = vld [vmem:[#allocation12 + $0x2e8] sm:$0xff]  ;;  %v2122_v13 = vld [vmem:[#allocation12 + $0x2b8] sm:$0xff] }
 0x799   : > { %v2130_v16 = vld [vmem:[#allocation12 + $0x2f8] sm:$0xff] }
 0x79a   : > { %v1992_v21 = vadd.f32 %v1988_v33, %v1987_v30  ;;  %v4210_v30 = vpack.c.bf16 %v2284_v28, %v2276_v14  ;;  %v2278_v33 = vld [vmem:[#allocation12 + $0x798] sm:$0xff]  ;;  %4273 = vmatpush1.bf16.msra.mxu1 %v4272_v29  ;;  %v2057_v14 = vld [vmem:[#allocation12 + $0xb0] sm:$0xff] }
 0x79b   : > { %v2065_v28 = vld [vmem:[#allocation12 + $0xf0] sm:$0xff] }
 0x79c   : > { %1993 = vadd.xlane.f32.xlu1 %v1992_v21  ;;  %v2286_v21 = vld [vmem:[#allocation12 + $0x7d8] sm:$0xff]  ;;  %4211 = vmatprep.subr.bf16.mxu0 %v4210_v30  ;;  %v4348_v35 = vpack.c.bf16 %v2065_v28, %v2057_v14 }
 0x79d   : > { %v4274_v20 = vpack.c.bf16 %v2286_v21, %v2278_v33  ;;  %4213 = vmatpush1.bf16.msra.mxu0 %v4212_v38  ;;  %v2072_v33 = vld [vmem:[#allocation12 + $0x128] sm:$0xff]  ;;  %v4284_v21 = vpack.c.bf16 %v2063_v1, %v2055_v0  ;;  %v2079_v38 = vld [vmem:[#allocation12 + $0x160] sm:$0xff]  ;;  %v2121_v0 = vld [vmem:[#allocation12 + $0x2b0] sm:$0xff] }
 0x79e   : > { %4279 = vmatprep.subr.bf16.mxu0 %v4278_v32  ;;  %v4286_v31 = vpack.c.bf16 %v2080_v24, %v2072_v33  ;;  %v2129_v1 = vld [vmem:[#allocation12 + $0x2f0] sm:$0xff]  ;;  %v2138_v14 = vld [vmem:[#allocation12 + $0x338] sm:$0xff]  ;;  %v2135_v33 = vld [vmem:[#allocation12 + $0x320] sm:$0xff] }
 0x79f   : > { %4275 = vmatprep.subr.bf16.mxu1 %v4274_v20  ;;  %v2082_v20 = vld [vmem:[#allocation12 + $0x178] sm:$0xff] }
 0x7a0   : > { %4277 = vmatpush1.bf16.msra.mxu1 %v4276_v39  ;;  %v2073_v39 = vld [vmem:[#allocation12 + $0x130] sm:$0xff]  ;;  %v2146_v28 = vld [vmem:[#allocation12 + $0x378] sm:$0xff] }
 0x7a1   : > { %4343 = vmatprep.subr.bf16.mxu1 %v4342_v42  ;;  %v2090_v42 = vld [vmem:[#allocation12 + $0x1b8] sm:$0xff] }
 0x825   : > { %v1991_v43 = vpop.xlane.xlu0 %1990 }
 0x826   : > { %v1995_v44 = vmul.f32 0.00390625, %v1991_v43  ;;  %v2098_v43 = vld [vmem:[#allocation12 + $0x1f8] sm:$0xff] }
 0x827   : > { %v4354_v51 = vpack.c.bf16 %v2098_v43, %v2090_v42 }
 0x828   : > { %v1997_v45 = vadd.f32 1e-05, %v1995_v44  ;;  %v4288_v44 = vpack.c.bf16 %v2079_v38, %v2071_v36  ;;  %v2152_v36 = vld [vmem:[#allocation12 + $0x3a8] sm:$0xff] }
 0x829   : > { %v1994_v47 = vpop.xlane.xlu1 %1993  ;;  %v2160_v38 = vld [vmem:[#allocation12 + $0x3e8] sm:$0xff] }
 0x82a   : > { %4814 = vrsqrt.f32 %v1997_v45  ;;  %v1996_v49 = vmul.f32 0.00390625, %v1994_v47  ;;  %v4352_v45 = vpack.c.bf16 %v2081_v40, %v2073_v39  ;;  %v2087_v47 = vld [vmem:[#allocation12 + $0x1a0] sm:$0xff]  ;;  %v2154_v39 = vld [vmem:[#allocation12 + $0x3b8] sm:$0xff]  ;;  %v4306_v42 = vpack.c.bf16 %v2160_v38, %v2152_v36 }
 0x82b   : > { %v2162_v40 = vld [vmem:[#allocation12 + $0x3f8] sm:$0xff]  ;;  %v2215_v36 = vld [vmem:[#allocation12 + $0x5a0] sm:$0xff] }
 0x82c   : > { %v1998_v50 = vadd.f32 1e-05, %v1996_v49  ;;  %v2095_v49 = vld [vmem:[#allocation12 + $0x1e0] sm:$0xff]  ;;  %v4370_v43 = vpack.c.bf16 %v2162_v40, %v2154_v39 }
 0x82d   : > { %v2223_v38 = vld [vmem:[#allocation12 + $0x5e0] sm:$0xff] }
 0x82e   : > { %4816 = vrsqrt.f32 %v1998_v50  ;;  %v4290_v50 = vpack.c.bf16 %v2096_v41, %v2088_v25  ;;  %v2159_v41 = vld [vmem:[#allocation12 + $0x3e0] sm:$0xff] }
 0x834   : > { %v4815_v56 = vpop.eup %4814 }
 0x835   : > { %v2002_v59 = vmul.f32 %v4815_v56, %v5729_v15  ;;  %v2001_v62 = vmul.f32 %v4815_v56, %v5726_v23  ;;  %v2112_v56 = vld [vmem:[#allocation12 + $0x268] sm:$0xff] }
 0x837   : > { %v2017_v8 = vmul.f32 %v2013_v53, %v2002_v59  ;;  %v2016_v12 = vmul.f32 %v2009_v54, %v2001_v62  ;;  %v2114_v59 = vld [vmem:[#allocation12 + $0x278] sm:$0xff] }
 0x838   : > { %v4817_v17 = vpop.eup %4816  ;;  %v4358_v9 = vpack.c.bf16 %v2114_v59, %v2106_v58 }
 0x839   : > { %v2032_v37 = vadd.f32 %v2028_v60, %v2017_v8  ;;  %v5757_v15 = vadd.f32 %v2024_v5, %v2016_v12  ;;  %v2004_v22 = vmul.f32 %v4817_v17, %v5739_v4  ;;  %v2003_v23 = vmul.f32 %v4817_v17, %v5736_v2  ;;  %v2074_v4 = vld [vmem:[#allocation12 + $0x138] sm:$0xff]  ;;  %v2113_v8 = vld [vmem:[#allocation12 + $0x270] sm:$0xff]  ;;  %v2120_v12 = vld [vmem:[#allocation12 + $0x2a8] sm:$0xff] }
 0x83a   : > { %v4350_v32 = vpack.c.bf16 %v2082_v20, %v2074_v4  ;;  %v4366_v4 = vpack.c.bf16 %v2146_v28, %v2138_v14  ;;  %v2137_v20 = vld [vmem:[#allocation12 + $0x330] sm:$0xff] }
 0x83b   : > { %2397 = vmatprep.mubr.f32.mxu0 %v2032_v37  ;;  %2474 = vmatprep.mubr.f32.mxu1 %v2032_v37  ;;  %v2019_v29 = vmul.f32 %v2013_v53, %v2004_v22  ;;  %v2018_v30 = vmul.f32 %v2009_v54, %v2003_v23  ;;  %v2097_v53 = vld [vmem:[#allocation12 + $0x1f0] sm:$0xff]  ;;  %v2104_v54 = vld [vmem:[#allocation12 + $0x228] sm:$0xff]  ;;  %v4298_v22 = vpack.c.bf16 %v2128_v10, %v2120_v12  ;;  %v2183_v12 = vld [vmem:[#allocation12 + $0x4a0] sm:$0xff] }
 0x83c   : > { %2398 = vmatmul.mubr.f32.vlgmr.msra.gmra.mrb[8].mxu0 %v5757_v15  ;;  %2475 = vmatmul.mubr.f32.vlgmr.msra.gmra.mrb[24].mxu1 %v5757_v15  ;;  %v4356_v62 = vpack.c.bf16 %v2097_v53, %v2089_v52  ;;  %v4294_v7 = vpack.c.bf16 %v2112_v56, %v2104_v54  ;;  %v4362_v23 = vpack.c.bf16 %v2130_v16, %v2122_v13  ;;  %v2167_v54 = vld [vmem:[#allocation12 + $0x420] sm:$0xff] }
 0x83d   : > { %4281 = vmatpush1.bf16.msra.mxu0 %v4280_v18  ;;  %4345 = vmatpush1.bf16.msra.mxu1 %v4344_v19  ;;  %v5763_v2 = vadd.f32 %v2028_v60, %v2019_v29  ;;  %v5765_v34 = vadd.f32 %v2024_v5, %v2018_v30  ;;  %v4292_v60 = vpack.c.bf16 %v2095_v49, %v2087_v47  ;;  %v2103_v5 = vld [vmem:[#allocation12 + $0x220] sm:$0xff]  ;;  %v2168_v47 = vld [vmem:[#allocation12 + $0x428] sm:$0xff] }
 0x83e   : > { %4283 = vmatprep.subr.bf16.mxu0 %v4282_v26  ;;  %4347 = vmatprep.subr.bf16.mxu1 %v4346_v27  ;;  %v4296_v17 = vpack.c.bf16 %v2111_v6, %v2103_v5  ;;  %v4360_v18 = vpack.c.bf16 %v2113_v8, %v2105_v11  ;;  %v2119_v19 = vld [vmem:[#allocation12 + $0x2a0] sm:$0xff]  ;;  %v2136_v26 = vld [vmem:[#allocation12 + $0x328] sm:$0xff]  ;;  %v4364_v30 = vpack.c.bf16 %v2129_v1, %v2121_v0 }
 0x83f   : > { %2403 = vmatprep.mubr.f32.mxu0 %v5763_v2  ;;  %2480 = vmatprep.mubr.f32.mxu1 %v5763_v2  ;;  %v2144_v27 = vld [vmem:[#allocation12 + $0x368] sm:$0xff]  ;;  %v2175_v56 = vld [vmem:[#allocation12 + $0x460] sm:$0xff] }
 0x840   : > { %2404 = vmatmul.mubr.f32.gmra.mrb[10].mxu0 %v5765_v34  ;;  %2481 = vmatmul.mubr.f32.gmra.mrb[26].mxu1 %v5765_v34  ;;  %v4302_v24 = vpack.c.bf16 %v2144_v27, %v2136_v26  ;;  %v2176_v49 = vld [vmem:[#allocation12 + $0x468] sm:$0xff]  ;;  %v4312_v11 = vpack.c.bf16 %v2175_v56, %v2167_v54  ;;  %v2191_v10 = vld [vmem:[#allocation12 + $0x4e0] sm:$0xff] }
 0x841   : > { %4285 = vmatpush1.bf16.msra.mxu0 %v4284_v21  ;;  %4349 = vmatpush1.bf16.msra.mxu1 %v4348_v35  ;;  %v2143_v21 = vld [vmem:[#allocation12 + $0x360] sm:$0xff]  ;;  %v2145_v35 = vld [vmem:[#allocation12 + $0x370] sm:$0xff]  ;;  %v4310_v58 = vpack.c.bf16 %v2176_v49, %v2168_v47  ;;  %v2184_v5 = vld [vmem:[#allocation12 + $0x4a8] sm:$0xff]  ;;  %v4316_v0 = vpack.c.bf16 %v2191_v10, %v2183_v12 }
 0x842   : > { %2551 = vmatprep.mubr.f32.mxu0 %v2032_v37  ;;  %2628 = vmatprep.mubr.f32.mxu1 %v2032_v37  ;;  %v2127_v37 = vld [vmem:[#allocation12 + $0x2e0] sm:$0xff]  ;;  %v4304_v25 = vpack.c.bf16 %v2143_v21, %v2135_v33  ;;  %v2192_v6 = vld [vmem:[#allocation12 + $0x4e8] sm:$0xff] }
 0x843   : > { %4287 = vmatprep.subr.bf16.mxu0 %v4286_v31  ;;  %4351 = vmatprep.subr.bf16.mxu1 %v4350_v32  ;;  %v4300_v29 = vpack.c.bf16 %v2127_v37, %v2119_v19  ;;  %v4368_v31 = vpack.c.bf16 %v2145_v35, %v2137_v20  ;;  %v2151_v32 = vld [vmem:[#allocation12 + $0x3a0] sm:$0xff]  ;;  %v4314_v13 = vpack.c.bf16 %v2192_v6, %v2184_v5  ;;  %v2200_v19 = vld [vmem:[#allocation12 + $0x528] sm:$0xff] }
 0x844   : > { %v4308_v52 = vpack.c.bf16 %v2159_v41, %v2151_v32  ;;  %v2208_v37 = vld [vmem:[#allocation12 + $0x568] sm:$0xff]  ;;  %v2199_v26 = vld [vmem:[#allocation12 + $0x520] sm:$0xff] }
 0x845   : > { %4289 = vmatpush1.bf16.msra.mxu0 %v4288_v44  ;;  %4353 = vmatpush1.bf16.msra.mxu1 %v4352_v45  ;;  %v2153_v44 = vld [vmem:[#allocation12 + $0x3b0] sm:$0xff]  ;;  %v2207_v27 = vld [vmem:[#allocation12 + $0x560] sm:$0xff]  ;;  %v4318_v14 = vpack.c.bf16 %v2208_v37, %v2200_v19  ;;  %v2216_v33 = vld [vmem:[#allocation12 + $0x5a8] sm:$0xff] }
 0x846   : > { %4291 = vmatprep.subr.bf16.mxu0 %v4290_v50  ;;  %4355 = vmatprep.subr.bf16.mxu1 %v4354_v51  ;;  %v2161_v45 = vld [vmem:[#allocation12 + $0x3f0] sm:$0xff]  ;;  %v2170_v50 = vld [vmem:[#allocation12 + $0x438] sm:$0xff]  ;;  %v2224_v21 = vld [vmem:[#allocation12 + $0x5e8] sm:$0xff]  ;;  %v4320_v20 = vpack.c.bf16 %v2207_v27, %v2199_v26 }
 0x847   : > { %v2178_v51 = vld [vmem:[#allocation12 + $0x478] sm:$0xff]  ;;  %v4372_v53 = vpack.c.bf16 %v2161_v45, %v2153_v44  ;;  %v4322_v39 = vpack.c.bf16 %v2224_v21, %v2216_v33  ;;  %v2232_v32 = vld [vmem:[#allocation12 + $0x628] sm:$0xff]  ;;  %v4324_v44 = vpack.c.bf16 %v2223_v38, %v2215_v36  ;;  %v2231_v47 = vld [vmem:[#allocation12 + $0x620] sm:$0xff] }
 0x848   : > { %v4374_v59 = vpack.c.bf16 %v2178_v51, %v2170_v50  ;;  %v2240_v41 = vld [vmem:[#allocation12 + $0x668] sm:$0xff]  ;;  %v2239_v49 = vld [vmem:[#allocation12 + $0x660] sm:$0xff]  ;;  %v3076_v38 = vld [vmem:[#allocation14 + $0x18] sm:$0xff] }
 0x849   : > { %4293 = vmatpush1.bf16.msra.mxu0 %v4292_v60  ;;  %4357 = vmatpush1.bf16.msra.mxu1 %v4356_v62  ;;  %v2169_v60 = vld [vmem:[#allocation12 + $0x430] sm:$0xff]  ;;  %v4326_v50 = vpack.c.bf16 %v2240_v41, %v2232_v32  ;;  %v2248_v54 = vld [vmem:[#allocation12 + $0x6a8] sm:$0xff]  ;;  %v2247_v5 = vld [vmem:[#allocation12 + $0x6a0] sm:$0xff] }
 0x84a   : > { %4295 = vmatprep.subr.bf16.mxu0 %v4294_v7  ;;  %4359 = vmatprep.subr.bf16.mxu1 %v4358_v9  ;;  %v2177_v62 = vld [vmem:[#allocation12 + $0x470] sm:$0xff]  ;;  %v2186_v7 = vld [vmem:[#allocation12 + $0x4b8] sm:$0xff]  ;;  %v2256_v56 = vld [vmem:[#allocation12 + $0x6e8] sm:$0xff] }
 0x84b   : > { %v2194_v9 = vld [vmem:[#allocation12 + $0x4f8] sm:$0xff]  ;;  %v4376_v8 = vpack.c.bf16 %v2177_v62, %v2169_v60  ;;  %v4328_v60 = vpack.c.bf16 %v2239_v49, %v2231_v47  ;;  %v2255_v6 = vld [vmem:[#allocation12 + $0x6e0] sm:$0xff]  ;;  %v2264_v12 = vld [vmem:[#allocation12 + $0x728] sm:$0xff] }
 0x84c   : > { %v4378_v16 = vpack.c.bf16 %v2194_v9, %v2186_v7  ;;  %v4330_v7 = vpack.c.bf16 %v2256_v56, %v2248_v54  ;;  %v2272_v10 = vld [vmem:[#allocation12 + $0x768] sm:$0xff]  ;;  %v2263_v19 = vld [vmem:[#allocation12 + $0x720] sm:$0xff]  ;;  %v3075_v32 = vld [vmem:[#allocation14 + $0x10] sm:$0xff] }
 0x84d   : > { %4297 = vmatpush1.bf16.msra.mxu0 %v4296_v17  ;;  %4361 = vmatpush1.bf16.msra.mxu1 %v4360_v18  ;;  %v2185_v17 = vld [vmem:[#allocation12 + $0x4b0] sm:$0xff]  ;;  %v2271_v37 = vld [vmem:[#allocation12 + $0x760] sm:$0xff]  ;;  %v2280_v26 = vld [vmem:[#allocation12 + $0x7a8] sm:$0xff] }
 0x84e   : > { %4299 = vmatprep.subr.bf16.mxu0 %v4298_v22  ;;  %4363 = vmatprep.subr.bf16.mxu1 %v4362_v23  ;;  %v2193_v18 = vld [vmem:[#allocation12 + $0x4f0] sm:$0xff]  ;;  %v2202_v22 = vld [vmem:[#allocation12 + $0x538] sm:$0xff]  ;;  %v2288_v27 = vld [vmem:[#allocation12 + $0x7e8] sm:$0xff] }
 0x84f   : > { %v2210_v23 = vld [vmem:[#allocation12 + $0x578] sm:$0xff]  ;;  %v4380_v1 = vpack.c.bf16 %v2193_v18, %v2185_v17  ;;  %v4332_v17 = vpack.c.bf16 %v2255_v6, %v2247_v5  ;;  %v2279_v33 = vld [vmem:[#allocation12 + $0x7a0] sm:$0xff]  ;;  %v4338_v21 = vpack.c.bf16 %v2288_v27, %v2280_v26  ;;  %v3074_v36 = vld [vmem:[#allocation14 + $0x8] sm:$0xff] }
 0x850   : > { %v4382_v28 = vpack.c.bf16 %v2210_v23, %v2202_v22  ;;  %v4334_v22 = vpack.c.bf16 %v2272_v10, %v2264_v12  ;;  %v3078_v41 = vld [vmem:[#allocation14 + $0x28] sm:$0xff]  ;;  %v3079_v47 = vld [vmem:[#allocation14 + $0x30] sm:$0xff]  ;;  %v3092_v6 = vld [vmem:[#allocation14 + $0x98] sm:$0xff] }
 0x851   : > { %4301 = vmatpush1.bf16.msra.mxu0 %v4300_v29  ;;  %4365 = vmatpush1.bf16.msra.mxu1 %v4364_v30  ;;  %v2201_v29 = vld [vmem:[#allocation12 + $0x530] sm:$0xff]  ;;  %v3082_v49 = vld [vmem:[#allocation14 + $0x48] sm:$0xff]  ;;  %v3096_v12 = vld [vmem:[#allocation14 + $0xb8] sm:$0xff] }
 0x852   : > { %4303 = vmatprep.subr.bf16.mxu0 %v4302_v24  ;;  %4367 = vmatprep.subr.bf16.mxu1 %v4366_v4  ;;  %v2209_v30 = vld [vmem:[#allocation12 + $0x570] sm:$0xff]  ;;  %v2218_v24 = vld [vmem:[#allocation12 + $0x5b8] sm:$0xff]  ;;  %v3086_v56 = vld [vmem:[#allocation14 + $0x68] sm:$0xff] }
 0x853   : > { %v2226_v4 = vld [vmem:[#allocation12 + $0x5f8] sm:$0xff]  ;;  %v4384_v35 = vpack.c.bf16 %v2209_v30, %v2201_v29  ;;  %v4336_v29 = vpack.c.bf16 %v2271_v37, %v2263_v19  ;;  %v3083_v54 = vld [vmem:[#allocation14 + $0x50] sm:$0xff]  ;;  %v3090_v5 = vld [vmem:[#allocation14 + $0x88] sm:$0xff] }
 0x854   : > { %v4386_v40 = vpack.c.bf16 %v2226_v4, %v2218_v24  ;;  %v2287_v4 = vld [vmem:[#allocation12 + $0x7e0] sm:$0xff]  ;;  %v3100_v19 = vld [vmem:[#allocation14 + $0xd8] sm:$0xff] }
 0x855   : > { %4305 = vmatpush1.bf16.msra.mxu0 %v4304_v25  ;;  %4369 = vmatpush1.bf16.msra.mxu1 %v4368_v31  ;;  %v2217_v25 = vld [vmem:[#allocation12 + $0x5b0] sm:$0xff]  ;;  %v3104_v26 = vld [vmem:[#allocation14 + $0xf8] sm:$0xff] }
 0x856   : > { %4307 = vmatprep.subr.bf16.mxu0 %v4306_v42  ;;  %4371 = vmatprep.subr.bf16.mxu1 %v4370_v43  ;;  %v2225_v31 = vld [vmem:[#allocation12 + $0x5f0] sm:$0xff]  ;;  %v2234_v42 = vld [vmem:[#allocation12 + $0x638] sm:$0xff] }
 0x857   : > { %v2242_v43 = vld [vmem:[#allocation12 + $0x678] sm:$0xff]  ;;  %v4388_v45 = vpack.c.bf16 %v2225_v31, %v2217_v25  ;;  %v4406_v25 = vpack.c.bf16 %v3076_v38, %v3074_v36  ;;  %v3073_v31 = vld [vmem:[#allocation14] sm:$0xff] }
 0x858   : > { %v4390_v51 = vpack.c.bf16 %v2242_v43, %v2234_v42  ;;  %v3080_v42 = vld [vmem:[#allocation14 + $0x38] sm:$0xff]  ;;  %v4408_v43 = vpack.c.bf16 %v3075_v32, %v3073_v31  ;;  %v3114_v31 = vld [vmem:[#allocation14 + $0x148] sm:$0xff] }
 0x859   : > { %4309 = vmatpush1.bf16.msra.mxu0 %v4308_v52  ;;  %4373 = vmatpush1.bf16.msra.mxu1 %v4372_v53  ;;  %v2233_v52 = vld [vmem:[#allocation12 + $0x630] sm:$0xff]  ;;  %v3112_v36 = vld [vmem:[#allocation14 + $0x138] sm:$0xff] }
 0x85a   : > { %4311 = vmatprep.subr.bf16.mxu0 %v4310_v58  ;;  %4375 = vmatprep.subr.bf16.mxu1 %v4374_v59  ;;  %v2241_v53 = vld [vmem:[#allocation12 + $0x670] sm:$0xff]  ;;  %v2250_v58 = vld [vmem:[#allocation12 + $0x6b8] sm:$0xff] }
 0x85b   : > { %v2258_v59 = vld [vmem:[#allocation12 + $0x6f8] sm:$0xff]  ;;  %v4392_v62 = vpack.c.bf16 %v2241_v53, %v2233_v52  ;;  %v3081_v53 = vld [vmem:[#allocation14 + $0x40] sm:$0xff] }
 0x85c   : > { %v4394_v9 = vpack.c.bf16 %v2258_v59, %v2250_v58  ;;  %v3088_v58 = vld [vmem:[#allocation14 + $0x78] sm:$0xff] }
 0x85d   : > { %4313 = vmatpush1.bf16.msra.mxu0 %v4312_v11  ;;  %4377 = vmatpush1.bf16.msra.mxu1 %v4376_v8  ;;  %v2249_v11 = vld [vmem:[#allocation12 + $0x6b0] sm:$0xff]  ;;  %v4418_v59 = vpack.c.bf16 %v3088_v58, %v3086_v56  ;;  %v3116_v32 = vld [vmem:[#allocation14 + $0x158] sm:$0xff]  ;;  %v3121_v58 = vld [vmem:[#allocation14 + $0x180] sm:$0xff] }
 0x85e   : > { %4315 = vmatprep.subr.bf16.mxu0 %v4314_v13  ;;  %4379 = vmatprep.subr.bf16.mxu1 %v4378_v16  ;;  %v2257_v8 = vld [vmem:[#allocation12 + $0x6f0] sm:$0xff]  ;;  %v2266_v13 = vld [vmem:[#allocation12 + $0x738] sm:$0xff] }
 0x85f   : > { %v2274_v16 = vld [vmem:[#allocation12 + $0x778] sm:$0xff]  ;;  %v4396_v18 = vpack.c.bf16 %v2257_v8, %v2249_v11  ;;  %v3091_v11 = vld [vmem:[#allocation14 + $0x90] sm:$0xff] }
 0x860   : > { %v4398_v23 = vpack.c.bf16 %v2274_v16, %v2266_v13  ;;  %v3093_v13 = vld [vmem:[#allocation14 + $0xa0] sm:$0xff]  ;;  %v3095_v16 = vld [vmem:[#allocation14 + $0xb0] sm:$0xff] }
 0x861   : > { %4317 = vmatpush1.bf16.msra.mxu0 %v4316_v0  ;;  %4381 = vmatpush1.bf16.msra.mxu1 %v4380_v1  ;;  %v2265_v0 = vld [vmem:[#allocation12 + $0x730] sm:$0xff] }
 0x862   : > { %4319 = vmatprep.subr.bf16.mxu0 %v4318_v14  ;;  %4383 = vmatprep.subr.bf16.mxu1 %v4382_v28  ;;  %v2273_v1 = vld [vmem:[#allocation12 + $0x770] sm:$0xff]  ;;  %v2282_v14 = vld [vmem:[#allocation12 + $0x7b8] sm:$0xff] }
 0x863   : > { %v2290_v28 = vld [vmem:[#allocation12 + $0x7f8] sm:$0xff]  ;;  %v4400_v30 = vpack.c.bf16 %v2273_v1, %v2265_v0  ;;  %v3102_v1 = vld [vmem:[#allocation14 + $0xe8] sm:$0xff] }
 0x864   : > { %v4402_v24 = vpack.c.bf16 %v2290_v28, %v2282_v14  ;;  %v4434_v27 = vpack.c.bf16 %v3104_v26, %v3102_v1  ;;  %v3101_v14 = vld [vmem:[#allocation14 + $0xe0] sm:$0xff]  ;;  %v3103_v28 = vld [vmem:[#allocation14 + $0xf0] sm:$0xff]  ;;  %v2307_v26 = vsub.s32 3, %v5605_v61 }
 0x865   : > { %4321 = vmatpush1.bf16.msra.mxu0 %v4320_v20  ;;  %4385 = vmatpush1.bf16.msra.mxu1 %v4384_v35  ;;  %v2281_v20 = vld [vmem:[#allocation12 + $0x7b0] sm:$0xff]  ;;  %v5780_v1 = vld [vmem:[%s6276_s28] sm:$0xff] }
 0x866   : > { %4323 = vmatprep.subr.bf16.mxu0 %v4322_v39  ;;  %4387 = vmatprep.subr.bf16.mxu1 %v4386_v40  ;;  %v2289_v35 = vld [vmem:[#allocation12 + $0x7f0] sm:$0xff]  ;;  %v4340_v39 = vpack.c.bf16 %v2287_v4, %v2279_v33  ;;  %v3108_v33 = vld [vmem:[#allocation14 + $0x118] sm:$0xff] }
 0x867   : > { %v4404_v40 = vpack.c.bf16 %v2289_v35, %v2281_v20  ;;  %v3107_v4 = vld [vmem:[#allocation14 + $0x110] sm:$0xff]  ;;  %v3110_v35 = vld [vmem:[#allocation14 + $0x128] sm:$0xff] }
 0x868   : > { %v4442_v38 = vpack.c.bf16 %v3112_v36, %v3110_v35 }
 0x869   : > { %4325 = vmatpush1.bf16.msra.mxu0 %v4324_v44  ;;  %4389 = vmatpush1.bf16.msra.mxu1 %v4388_v45  ;;  %v4410_v44 = vpack.c.bf16 %v3080_v42, %v3078_v41  ;;  %v3077_v45 = vld [vmem:[#allocation14 + $0x20] sm:$0xff]  ;;  %v4446_v41 = vpack.c.bf16 %v3116_v32, %v3114_v31 }
 0x86a   : > { %4327 = vmatprep.subr.bf16.mxu0 %v4326_v50  ;;  %4391 = vmatprep.subr.bf16.mxu1 %v4390_v51  ;;  %v3084_v50 = vld [vmem:[#allocation14 + $0x58] sm:$0xff]  ;;  %v4412_v51 = vpack.c.bf16 %v3079_v47, %v3077_v45  ;;  %v3113_v42 = vld [vmem:[#allocation14 + $0x140] sm:$0xff]  ;;  %v3118_v45 = vld [vmem:[#allocation14 + $0x168] sm:$0xff] }
 0x86b   : > { %v4414_v52 = vpack.c.bf16 %v3084_v50, %v3082_v49  ;;  %v3120_v47 = vld [vmem:[#allocation14 + $0x178] sm:$0xff]  ;;  %v3117_v50 = vld [vmem:[#allocation14 + $0x160] sm:$0xff] }
 0x86c   : > { %v4450_v49 = vpack.c.bf16 %v3120_v47, %v3118_v45 }
 0x86d   : > { %4329 = vmatpush1.bf16.msra.mxu0 %v4328_v60  ;;  %4393 = vmatpush1.bf16.msra.mxu1 %v4392_v62  ;;  %v3085_v60 = vld [vmem:[#allocation14 + $0x60] sm:$0xff] }
 0x86e   : > { %4331 = vmatprep.subr.bf16.mxu0 %v4330_v7  ;;  %4395 = vmatprep.subr.bf16.mxu1 %v4394_v9  ;;  %v4422_v7 = vpack.c.bf16 %v3092_v6, %v3090_v5  ;;  %v3089_v9 = vld [vmem:[#allocation14 + $0x80] sm:$0xff]  ;;  %v3127_v5 = vld [vmem:[#allocation14 + $0x1b0] sm:$0xff] }
 0x86f   : > { %v4424_v8 = vpack.c.bf16 %v3091_v11, %v3089_v9  ;;  %v3132_v9 = vld [vmem:[#allocation14 + $0x1d8] sm:$0xff] }
 0x871   : > { %4333 = vmatpush1.bf16.msra.mxu0 %v4332_v17  ;;  %4397 = vmatpush1.bf16.msra.mxu1 %v4396_v18  ;;  %v4428_v17 = vpack.c.bf16 %v3095_v16, %v3093_v13  ;;  %v3098_v18 = vld [vmem:[#allocation14 + $0xc8] sm:$0xff]  ;;  %v3136_v13 = vld [vmem:[#allocation14 + $0x1f8] sm:$0xff] }
 0x872   : > { %4335 = vmatprep.subr.bf16.mxu0 %v4334_v22  ;;  %4399 = vmatprep.subr.bf16.mxu1 %v4398_v23  ;;  %v4430_v37 = vpack.c.bf16 %v3100_v19, %v3098_v18  ;;  %v3097_v22 = vld [vmem:[#allocation14 + $0xc0] sm:$0xff]  ;;  %v3099_v23 = vld [vmem:[#allocation14 + $0xd0] sm:$0xff] }
 0x873   : > { %v4432_v0 = vpack.c.bf16 %v3099_v23, %v3097_v22  ;;  %v3133_v18 = vld [vmem:[#allocation14 + $0x1e0] sm:$0xff]  ;;  %v3135_v19 = vld [vmem:[#allocation14 + $0x1f0] sm:$0xff]  ;;  %v3140_v22 = vld [vmem:[#allocation14 + $0x218] sm:$0xff] }
 0x874   : > { %v4468_v23 = vpack.c.bf16 %v3135_v19, %v3133_v18 }
 0x875   : > { %4337 = vmatpush1.bf16.msra.mxu0 %v4336_v29  ;;  %4401 = vmatpush1.bf16.msra.mxu1 %v4400_v30  ;;  %v4436_v29 = vpack.c.bf16 %v3103_v28, %v3101_v14  ;;  %v3106_v30 = vld [vmem:[#allocation14 + $0x108] sm:$0xff]  ;;  %v2300_v14 = vrot.slane %v5780_v1, %v5608_v63  ;;  %v5788_v28 = vrot.slane %v5780_v1, %v2307_v26 }
 0x876   : > { %4339 = vmatprep.subr.bf16.mxu0 %v4338_v21  ;;  %4403 = vmatprep.subr.bf16.mxu1 %v4402_v24  ;;  %v4438_v21 = vpack.c.bf16 %v3108_v33, %v3106_v30  ;;  %v3105_v24 = vld [vmem:[#allocation14 + $0x100] sm:$0xff] }
 0x877   : > { %v4440_v20 = vpack.c.bf16 %v3107_v4, %v3105_v24 }
 0x879   : > { %4341 = vmatpush1.bf16.msra.mxu0 %v4340_v39  ;;  %4405 = vmatpush1.bf16.msra.mxu1 %v4404_v40  ;;  %v3109_v39 = vld [vmem:[#allocation14 + $0x120] sm:$0xff]  ;;  %v3111_v40 = vld [vmem:[#allocation14 + $0x130] sm:$0xff] }
 0x87a   : > { %4407 = vmatprep.subr.bf16.mxu0 %v4406_v25  ;;  %v4444_v25 = vpack.c.bf16 %v3111_v40, %v3109_v39 }
 0x87c   : > { %2552 = vmatmul.mubr.f32.vlgmr.msra.gmra.mrb[12].mxu0 %v5757_v15  ;;  %2629 = vmatmul.mubr.f32.vlgmr.msra.gmra.mrb[28].mxu1 %v5757_v15  ;;  %v4416_v15 = vpack.c.bf16 %v3083_v54, %v3081_v53  ;;  %v3122_v53 = vld [vmem:[#allocation14 + $0x188] sm:$0xff]  ;;  %v3124_v54 = vld [vmem:[#allocation14 + $0x198] sm:$0xff] }
 0x87d   : > { %2557 = vmatprep.mubr.f32.mxu0 %v5763_v2  ;;  %2634 = vmatprep.mubr.f32.mxu1 %v5763_v2  ;;  %v3087_v2 = vld [vmem:[#allocation14 + $0x70] sm:$0xff]  ;;  %v4454_v56 = vpack.c.bf16 %v3124_v54, %v3122_v53 }
 0x87e   : > { %4409 = vmatpush1.bf16.msra.mxu0 %v4408_v43  ;;  %v4420_v62 = vpack.c.bf16 %v3087_v2, %v3085_v60  ;;  %v3115_v43 = vld [vmem:[#allocation14 + $0x150] sm:$0xff]  ;;  %v3128_v2 = vld [vmem:[#allocation14 + $0x1b8] sm:$0xff] }
 0x87f   : > { %4411 = vmatprep.subr.bf16.mxu0 %v4410_v44  ;;  %v4448_v44 = vpack.c.bf16 %v3115_v43, %v3113_v42 }
 0x880   : > { %2558 = vmatmul.mubr.f32.gmra.mrb[14].mxu0 %v5765_v34  ;;  %2635 = vmatmul.mubr.f32.gmra.mrb[30].mxu1 %v5765_v34  ;;  %v3094_v34 = vld [vmem:[#allocation14 + $0xa8] sm:$0xff] }
 0x881   : > { %v4426_v10 = vpack.c.bf16 %v3096_v12, %v3094_v34  ;;  %v3129_v34 = vld [vmem:[#allocation14 + $0x1c0] sm:$0xff]  ;;  %v3131_v12 = vld [vmem:[#allocation14 + $0x1d0] sm:$0xff] }
 0x882   : > { %4413 = vmatpush1.bf16.msra.mxu0 %v4412_v51  ;;  %v3119_v51 = vld [vmem:[#allocation14 + $0x170] sm:$0xff]  ;;  %v4464_v16 = vpack.c.bf16 %v3131_v12, %v3129_v34 }
 0x883   : > { %4415 = vmatprep.subr.bf16.mxu0 %v4414_v52  ;;  %v4452_v52 = vpack.c.bf16 %v3119_v51, %v3117_v50 }
 0x886   : > { %4417 = vmatpush1.bf16.msra.mxu0 %v4416_v15  ;;  %v3123_v15 = vld [vmem:[#allocation14 + $0x190] sm:$0xff] }
 0x887   : > { %4419 = vmatprep.subr.bf16.mxu0 %v4418_v59  ;;  %v3126_v59 = vld [vmem:[#allocation14 + $0x1a8] sm:$0xff]  ;;  %v4456_v60 = vpack.c.bf16 %v3123_v15, %v3121_v58 }
 0x888   : > { %v4458_v6 = vpack.c.bf16 %v3128_v2, %v3126_v59 }
 0x88a   : > { %4421 = vmatpush1.bf16.msra.mxu0 %v4420_v62  ;;  %v3125_v62 = vld [vmem:[#allocation14 + $0x1a0] sm:$0xff] }
 0x88b   : > { %4423 = vmatprep.subr.bf16.mxu0 %v4422_v7  ;;  %v3130_v7 = vld [vmem:[#allocation14 + $0x1c8] sm:$0xff]  ;;  %v4460_v11 = vpack.c.bf16 %v3127_v5, %v3125_v62 }
 0x88e   : > { %4425 = vmatpush1.bf16.msra.mxu0 %v4424_v8  ;;  %v4462_v8 = vpack.c.bf16 %v3132_v9, %v3130_v7  ;;  %v2303_v7 = vsub.s32 2, %v5605_v61 }
 0x88f   : > { %4427 = vmatprep.subr.bf16.mxu0 %v4426_v10  ;;  %v3134_v10 = vld [vmem:[#allocation14 + $0x1e8] sm:$0xff] }
 0x892   : > { %4429 = vmatpush1.bf16.msra.mxu0 %v4428_v17  ;;  %v4466_v17 = vpack.c.bf16 %v3136_v13, %v3134_v10 }
 0x893   : > { %4431 = vmatprep.subr.bf16.mxu0 %v4430_v37  ;;  %v3138_v37 = vld [vmem:[#allocation14 + $0x208] sm:$0xff] }
 0x896   : > { %4433 = vmatpush1.bf16.msra.mxu0 %v4432_v0  ;;  %v4470_v0 = vpack.c.bf16 %v3140_v22, %v3138_v37 }
 0x897   : > { %4435 = vmatprep.subr.bf16.mxu0 %v4434_v27  ;;  %v2296_v27 = vrot.slane %v5780_v1, %v5611_v3 }
 0x89a   : > { %4437 = vmatpush1.bf16.msra.mxu0 %v4436_v29 }
 0x89b   : > { %4439 = vmatprep.subr.bf16.mxu0 %v4438_v21 }
 0x89e   : > { %4441 = vmatpush1.bf16.msra.mxu0 %v4440_v20 }
 0x89f   : > { %4443 = vmatprep.subr.bf16.mxu0 %v4442_v38 }
 0x8a2   : > { %4445 = vmatpush1.bf16.msra.mxu0 %v4444_v25 }
 0x8a3   : > { %4447 = vmatprep.subr.bf16.mxu0 %v4446_v41 }
 0x8a6   : > { %4449 = vmatpush1.bf16.msra.mxu0 %v4448_v44 }
 0x8a7   : > { %4451 = vmatprep.subr.bf16.mxu0 %v4450_v49 }
 0x8aa   : > { %4453 = vmatpush1.bf16.msra.mxu0 %v4452_v52 }
 0x8ab   : > { %4455 = vmatprep.subr.bf16.mxu0 %v4454_v56 }
 0x8ae   : > { %4457 = vmatpush1.bf16.msra.mxu0 %v4456_v60 }
 0x8af   : > { %4459 = vmatprep.subr.bf16.mxu0 %v4458_v6 }
 0x8b2   : > { %4461 = vmatpush1.bf16.msra.mxu0 %v4460_v11 }
 0x8b3   : > { %4463 = vmatprep.subr.bf16.mxu0 %v4462_v8 }
 0x8b6   : > { %4465 = vmatpush1.bf16.msra.mxu0 %v4464_v16  ;;  %v2304_v16 = vrot.slane %v5780_v1, %v2303_v7 }
 0x8b7   : > { %4467 = vmatprep.subr.bf16.mxu0 %v4466_v17 }
 0x8ba   : > { %4469 = vmatpush1.bf16.msra.mxu0 %v4468_v23 }
 0x8bb   : > { %4471 = vmatprep.subr.bf16.mxu0 %v4470_v0 }
 0x90f   : > { %v2399_v29 = vpop.f32.mrb[8].mxu0  ;;  %v2476_v30 = vpop.f32.mrb[24].mxu1 }
 0x910   : > { %v5790_v33 = vadd.f32 %v2399_v29, %v2296_v27  ;;  %v2401_v21 = vpop.f32.mrb[9].mxu0  ;;  %v2478_v24 = vpop.f32.mrb[25].mxu1 }
 0x911   : > { %v5792_v4 = vadd.f32 %v2401_v21, %v2300_v14  ;;  %v5795_v20 = vadd.f32 %v2478_v24, %v5788_v28 }
 0x912   : > { %v5798_v35 = vmul.f32 0.70710677, %v5790_v33 }
 0x913   : > { %v5801_v36 = vmul.f32 0.70710677, %v5792_v4  ;;  %v5806_v40 = vmul.f32 0.70710677, %v5795_v20  ;;  %v2405_v25 = vpop.f32.mrb[10].mxu0  ;;  %v5808_v41 = vpop.f32.mrb[26].mxu1 }
 0x914   : > { %v2705_v38 = vand.u32 2147483647, %v5798_v35  ;;  %v2407_v43 = vpop.f32.mrb[11].mxu0  ;;  %v2484_v44 = vpop.f32.mrb[27].mxu1  ;;  %v5811_v49 = vadd.f32 %v2405_v25, %v2296_v27  ;;  %vm2673_vm2 = vcmp.ge.f32.partialorder %v5798_v35, 0.0 }
 0x915   : > { %v2706_v39 = vand.u32 2147483647, %v5801_v36  ;;  %v2708_v45 = vand.u32 2147483647, %v5806_v40  ;;  %v5816_v53 = vadd.f32 %v2407_v43, %v2300_v14  ;;  %v5831_v14 = vadd.f32 %v2476_v30, %v2304_v16 }
 0x916   : > { %v2721_v31 = vmul.f32 0.3275911, %v2705_v38  ;;  %v5814_v51 = vmul.f32 0.70710677, %v5811_v49  ;;  %v2929_v56 = vsub.f32 0.0, %v2705_v38  ;;  %vm2674_vm3 = vcmp.ge.f32.partialorder %v5801_v36, 0.0 }
 0x917   : > { %v2722_v32 = vmul.f32 0.3275911, %v2706_v39  ;;  %v2724_v50 = vmul.f32 0.3275911, %v2708_v45  ;;  %v5820_v15 = vmul.f32 0.70710677, %v5816_v53 }
 0x918   : > { %v2737_v42 = vadd.f32 1.0, %v2721_v31  ;;  %v2713_v54 = vand.u32 2147483647, %v5814_v51  ;;  %v2930_v59 = vsub.f32 0.0, %v2706_v39  ;;  %v2945_v5 = vmul.f32 %v2929_v56, %v2705_v38 }
 0x919   : > { %v2738_v47 = vadd.f32 1.0, %v2722_v32  ;;  %v2740_v52 = vadd.f32 1.0, %v2724_v50  ;;  %v2714_v2 = vand.u32 2147483647, %v5820_v15  ;;  %v2932_v37 = vsub.f32 0.0, %v2708_v45 }
 0x91a   : > { %4818 = vrcp.f32 %v2737_v42  ;;  %v2729_v58 = vmul.f32 0.3275911, %v2713_v54  ;;  %v2946_v11 = vmul.f32 %v2930_v59, %v2706_v39  ;;  %v2961_v10 = vmul.f32 1.442695, %v2945_v5 }
 0x91b   : > { %4820 = vrcp.f32 %v2738_v47  ;;  %v2730_v9 = vmul.f32 0.3275911, %v2714_v2  ;;  %v2937_v23 = vsub.f32 0.0, %v2713_v54  ;;  %v2948_v24 = vmul.f32 %v2932_v37, %v2708_v45 }
 0x91c   : > { %4822 = vrcp.f32 %v2740_v52  ;;  %v2745_v60 = vadd.f32 1.0, %v2729_v58  ;;  %v2963_v19 = vmul.f32 1.442695, %v2946_v11  ;;  %v2938_v32 = vsub.f32 0.0, %v2714_v2 }
 0x91d   : > { %v2746_v34 = vadd.f32 1.0, %v2730_v9  ;;  %v2953_v25 = vmul.f32 %v2937_v23, %v2713_v54  ;;  %v5837_v42 = vadd.f32 %v2484_v44, %v5788_v28  ;;  %v5843_v50 = vmul.f32 0.70710677, %v5831_v14 }
 0x91e   : > { %4824 = vrcp.f32 %v2745_v60  ;;  %v2967_v52 = vmul.f32 1.442695, %v2948_v24  ;;  %v5847_v54 = vadd.f32 %v5808_v41, %v2304_v16  ;;  %v2954_v5 = vmul.f32 %v2938_v32, %v2714_v2 }
 0x91f   : > { %4826 = vrcp.f32 %v2746_v34  ;;  %v2977_v44 = vmul.f32 1.442695, %v2953_v25  ;;  %vm2681_vm4 = vcmp.ge.f32.partialorder %v5814_v51, 0.0  ;;  %vm2676_vm5 = vcmp.ge.f32.partialorder %v5806_v40, 0.0 }
 0x920   : > { %4828 = vpow2.f32 %v2961_v10  ;;  %vm2682_vm6 = vcmp.ge.f32.partialorder %v5820_v15, 0.0  ;;  %vm2675_vm7 = vcmp.ge.f32.partialorder %v5843_v50, 0.0 }
 0x921   : > { %4830 = vpow2.f32 %v2963_v19 }
 0x922   : > { %4832 = vpow2.f32 %v2967_v52 }
 0x923   : > { %4834 = vpow2.f32 %v2977_v44 }
 0x924   : > { %v4819_v62 = vpop.eup %4818 }
 0x925   : > { %v2785_v6 = vmul.f32 1.0614054, %v4819_v62  ;;  %v5824_v12 = vpop.eup %4820 }
 0x926   : > { %v2786_v17 = vmul.f32 1.0614054, %v5824_v12  ;;  %v5828_v18 = vpop.eup %4822 }
 0x927   : > { %v2801_v8 = vadd.f32 -1.4531521, %v2785_v6  ;;  %v2788_v26 = vmul.f32 1.0614054, %v5828_v18  ;;  %v5852_v6 = vmul.f32 0.70710677, %v5837_v42 }
 0x928   : > { %v2802_v0 = vadd.f32 -1.4531521, %v2786_v17  ;;  %v5834_v21 = vpop.eup %4824 }
 0x929   : > { %v2817_v13 = vmul.f32 %v4819_v62, %v2801_v8  ;;  %v2804_v38 = vadd.f32 -1.4531521, %v2788_v26  ;;  %v2793_v43 = vmul.f32 1.0614054, %v5834_v21  ;;  %v5849_v60 = vpop.eup %4826  ;;  %v5857_v8 = vand.u32 2147483647, %v5843_v50 }
 0x92a   : > { %v2818_v29 = vmul.f32 %v5824_v12, %v2802_v0  ;;  %v2794_v34 = vmul.f32 1.0614054, %v5849_v60  ;;  %v4829_v10 = vpop.eup %4828  ;;  %vm2684_vm8 = vcmp.ge.f32.partialorder %v5852_v6, 0.0 }
 0x92b   : > { %v2833_v22 = vadd.f32 1.4214138, %v2817_v13  ;;  %v2820_v47 = vmul.f32 %v5828_v18, %v2804_v38  ;;  %v2809_v56 = vadd.f32 -1.4531521, %v2793_v43  ;;  %v5862_v13 = vmul.f32 0.70710677, %v5847_v54  ;;  %v4831_v26 = vpop.eup %4830 }
 0x92c   : > { %v2834_v31 = vadd.f32 1.4214138, %v2818_v29  ;;  %v2810_v37 = vadd.f32 -1.4531521, %v2794_v34  ;;  %v2723_v25 = vmul.f32 0.3275911, %v5857_v8 }
 0x92d   : > { %v2849_v27 = vmul.f32 %v4819_v62, %v2833_v22  ;;  %v2836_v58 = vadd.f32 1.4214138, %v2820_v47  ;;  %v2825_v7 = vmul.f32 %v5834_v21, %v2809_v56  ;;  %v2979_v22 = vmul.f32 1.442695, %v2954_v5 }
 0x92e   : > { %v2850_v45 = vmul.f32 %v5824_v12, %v2834_v31  ;;  %v5877_v43 = vand.u32 2147483647, %v5862_v13  ;;  %vm2683_vm9 = vcmp.ge.f32.partialorder %v5862_v13, 0.0  ;;  %v3208_v13 = vld [vmem:[#allocation14 + $0x438] sm:$0xff] }
 0x92f   : > { %v2865_v39 = vadd.f32 -0.28449672, %v2849_v27  ;;  %v2852_v9 = vmul.f32 %v5828_v18, %v2836_v58  ;;  %v2841_v2 = vadd.f32 1.4214138, %v2825_v7  ;;  %v5178_v27 = vmov -1.0   ;;  %v3137_v7 = vld [vmem:[#allocation14 + $0x200] sm:$0xff] }
 0x930   : > { %v2866_v59 = vadd.f32 -0.28449672, %v2850_v45  ;;  %v2689_v29 = vsel %vm2673_vm2, 1.0, %v5178_v27  ;;  %4836 = vpow2.f32 %v2979_v22  ;;  %v2690_v44 = vsel %vm2674_vm3, 1.0, %v5178_v27 }
 0x931   : > { %v2881_v30 = vmul.f32 %v4819_v62, %v2865_v39  ;;  %v2868_v16 = vadd.f32 -0.28449672, %v2852_v9  ;;  %v2857_v23 = vmul.f32 %v5834_v21, %v2841_v2  ;;  %v2826_v39 = vmul.f32 %v5849_v60, %v2810_v37  ;;  %v3139_v9 = vld [vmem:[#allocation14 + $0x210] sm:$0xff]  ;;  %v3142_v2 = vld [vmem:[#allocation14 + $0x228] sm:$0xff] }
 0x932   : > { %v2882_v41 = vmul.f32 %v5824_v12, %v2866_v59  ;;  %v2731_v59 = vmul.f32 0.3275911, %v5877_v43  ;;  %v2700_v50 = vsel %vm2684_vm8, 1.0, %v5178_v27 }
 0x933   : > { %v2897_v28 = vadd.f32 0.2548296, %v2881_v30  ;;  %v2884_v0 = vmul.f32 %v5828_v18, %v2868_v16  ;;  %v2873_v31 = vadd.f32 -0.28449672, %v2857_v23  ;;  %v2842_v30 = vadd.f32 1.4214138, %v2826_v39 }
 0x934   : > { %v2898_v19 = vadd.f32 0.2548296, %v2882_v41  ;;  %v4833_v41 = vpop.eup %4832  ;;  %v3144_v16 = vld [vmem:[#allocation14 + $0x238] sm:$0xff] }
 0x935   : > { %v2913_v11 = vmul.f32 %v4819_v62, %v2897_v28  ;;  %v5865_v62 = vand.u32 2147483647, %v5852_v6  ;;  %v2900_v32 = vadd.f32 0.2548296, %v2884_v0  ;;  %v2889_v52 = vmul.f32 %v5834_v21, %v2873_v31  ;;  %v3141_v31 = vld [vmem:[#allocation14 + $0x220] sm:$0xff] }
 0x936   : > { %v2914_v38 = vmul.f32 %v5824_v12, %v2898_v19  ;;  %v2858_v56 = vmul.f32 %v5849_v60, %v2842_v30  ;;  %v2739_v28 = vadd.f32 1.0, %v2723_v25  ;;  %v4835_v19 = vpop.eup %4834  ;;  %v2641_v0 = vmul.f32 0.5, %v5790_v33  ;;  %v3146_v30 = vld [vmem:[#allocation14 + $0x248] sm:$0xff] }
 0x937   : > { %v2993_v17 = vmul.f32 %v4829_v10, %v2913_v11  ;;  %v2732_v35 = vmul.f32 0.3275911, %v5865_v62  ;;  %v2916_v58 = vmul.f32 %v5828_v18, %v2900_v32  ;;  %v2905_v36 = vadd.f32 0.2548296, %v2889_v52  ;;  %v3143_v32 = vld [vmem:[#allocation14 + $0x230] sm:$0xff] }
 0x938   : > { %v2994_v47 = vmul.f32 %v4831_v26, %v2914_v38  ;;  %v2874_v11 = vadd.f32 -0.28449672, %v2858_v56  ;;  %v2642_v18 = vmul.f32 0.5, %v5792_v4  ;;  %4838 = vrcp.f32 %v2739_v28  ;;  %v3145_v28 = vld [vmem:[#allocation14 + $0x240] sm:$0xff] }
 0x939   : > { %v3009_v24 = vsub.f32 1.0, %v2993_v17  ;;  %v2748_v10 = vadd.f32 1.0, %v2732_v35  ;;  %v2921_v17 = vmul.f32 %v5834_v21, %v2905_v36  ;;  %v2996_v23 = vmul.f32 %v4833_v41, %v2916_v58 }
 0x93a   : > { %v3010_v12 = vsub.f32 1.0, %v2994_v47  ;;  %v2890_v22 = vmul.f32 %v5849_v60, %v2874_v11  ;;  %v4472_v26 = vpack.c.bf16 %v3139_v9, %v3137_v7  ;;  %v4474_v25 = vpack.c.bf16 %v3144_v16, %v3142_v2  ;;  %v4837_v35 = vpop.eup %4836  ;;  %v3149_v2 = vld [vmem:[#allocation14 + $0x260] sm:$0xff]  ;;  %v3151_v16 = vld [vmem:[#allocation14 + $0x270] sm:$0xff] }
 0x93b   : > { %v3025_v45 = vmul.f32 %v3009_v24, %v2689_v29  ;;  %v3001_v29 = vmul.f32 %v4835_v19, %v2921_v17  ;;  %v2747_v24 = vadd.f32 1.0, %v2731_v59  ;;  %4840 = vrcp.f32 %v2748_v10  ;;  %v3150_v59 = vld [vmem:[#allocation14 + $0x268] sm:$0xff] }
 0x93c   : > { %v3026_v5 = vmul.f32 %v3010_v12, %v2690_v44  ;;  %v2906_v39 = vadd.f32 0.2548296, %v2890_v22  ;;  %v3012_v33 = vsub.f32 1.0, %v2996_v23  ;;  %v4476_v52 = vpack.c.bf16 %v3143_v32, %v3141_v31  ;;  %v3154_v22 = vld [vmem:[#allocation14 + $0x288] sm:$0xff]  ;;  %v3156_v23 = vld [vmem:[#allocation14 + $0x298] sm:$0xff] }
 0x93d   : > { %v3041_v34 = vadd.f32 1.0, %v3025_v45  ;;  %v3017_v4 = vsub.f32 1.0, %v3001_v29  ;;  %v3148_v45 = vld [vmem:[#allocation14 + $0x258] sm:$0xff]  ;;  %v2697_v12 = vsel %vm2681_vm4, 1.0, %v5178_v27  ;;  %4842 = vrcp.f32 %v2747_v24 }
 0x93e   : > { %v3042_v37 = vadd.f32 1.0, %v3026_v5  ;;  %v2922_v21 = vmul.f32 %v5849_v60, %v2906_v39  ;;  %v2692_v56 = vsel %vm2676_vm5, 1.0, %v5178_v27  ;;  %v4478_v58 = vpack.c.bf16 %v3148_v45, %v3146_v30  ;;  %v3147_v60 = vld [vmem:[#allocation14 + $0x250] sm:$0xff]  ;;  %v3152_v5 = vld [vmem:[#allocation14 + $0x278] sm:$0xff]  ;;  %v3158_v45 = vld [vmem:[#allocation14 + $0x2a8] sm:$0xff] }
 0x93f   : > { %v3057_v47 = vmul.f32 %v3041_v34, %v2641_v0  ;;  %v3033_v40 = vmul.f32 %v3017_v4, %v2697_v12  ;;  %v3028_v36 = vmul.f32 %v3012_v33, %v2692_v56  ;;  %v2315_v7 = vsub.s32 5, %v5605_v61  ;;  %v3155_v33 = vld [vmem:[#allocation14 + $0x290] sm:$0xff] }
 0x940   : > { %v3058_v38 = vmul.f32 %v3042_v37, %v2642_v18  ;;  %v3002_v51 = vmul.f32 %v4837_v35, %v2922_v21  ;;  %v2698_v9 = vsel %vm2682_vm6, 1.0, %v5178_v27  ;;  %v4480_v15 = vpack.c.bf16 %v3147_v60, %v3145_v28  ;;  %v3153_v21 = vld [vmem:[#allocation14 + $0x280] sm:$0xff]  ;;  %v3160_v35 = vld [vmem:[#allocation14 + $0x2b8] sm:$0xff]  ;;  %v3159_v28 = vld [vmem:[#allocation14 + $0x2b0] sm:$0xff] }
 0x941   : > { %v3049_v34 = vadd.f32 1.0, %v3033_v40  ;;  %v4482_v10 = vpack.c.bf16 %v3152_v5, %v3150_v59  ;;  %v2650_v17 = vmul.f32 0.5, %v5816_v53  ;;  %v3044_v18 = vadd.f32 1.0, %v3028_v36  ;;  %v3162_v60 = vld [vmem:[#allocation14 + $0x2c8] sm:$0xff]  ;;  %v3164_v5 = vld [vmem:[#allocation14 + $0x2d8] sm:$0xff] }
 0x942   : > { %3405 = vmatprep.mubr.f32.mxu0 %v3058_v38  ;;  %v3018_v44 = vsub.f32 1.0, %v3002_v51  ;;  %v5897_v41 = vpop.eup %4838  ;;  %v5901_v37 = vrot.slane %v5780_v1, %v2315_v7  ;;  %v2644_v24 = vmul.f32 0.5, %v5795_v20  ;;  %v4486_v4 = vpack.c.bf16 %v3156_v23, %v3154_v22  ;;  %v3166_v22 = vld [vmem:[#allocation14 + $0x2e8] sm:$0xff]  ;;  %v3168_v23 = vld [vmem:[#allocation14 + $0x2f8] sm:$0xff] }
 0x943   : > { %3406 = vmatmul.mubr.f32.vlgmr.msra.gmra.mrb[16].mxu0 %v3057_v47  ;;  %v2787_v29 = vmul.f32 1.0614054, %v5897_v41  ;;  %v4488_v56 = vpack.c.bf16 %v3155_v33, %v3153_v21  ;;  %v4490_v40 = vpack.c.bf16 %v3160_v35, %v3158_v45  ;;  %v3170_v33 = vld [vmem:[#allocation14 + $0x308] sm:$0xff]  ;;  %v2940_v35 = vsub.f32 0.0, %v5865_v62 }
 0x944   : > { %4473 = vmatpush1.bf16.msra.mxu0 %v4472_v26  ;;  %v3034_v11 = vmul.f32 %v3018_v44, %v2698_v9  ;;  %v2649_v26 = vmul.f32 0.5, %v5811_v49  ;;  %v3060_v30 = vmul.f32 %v3044_v18, %v2644_v24 }
 0x945   : > { %4475 = vmatprep.subr.bf16.mxu0 %v4474_v25  ;;  %v5903_v0 = vpop.eup %4840  ;;  %v4484_v25 = vpack.c.bf16 %v3151_v16, %v3149_v2  ;;  %v2803_v12 = vadd.f32 -1.4531521, %v2787_v29  ;;  %v4494_v16 = vpack.c.bf16 %v3164_v5, %v3162_v60  ;;  %v3174_v5 = vld [vmem:[#allocation14 + $0x328] sm:$0xff] }
 0x946   : > { %v3050_v19 = vadd.f32 1.0, %v3034_v11  ;;  %v3065_v31 = vmul.f32 %v3049_v34, %v2649_v26 }
 0x947   : > { %v5914_v49 = vpop.eup %4842  ;;  %v2819_v9 = vmul.f32 %v5897_v41, %v2803_v12 }
 0x948   : > { %4477 = vmatpush1.bf16.msra.mxu0 %v4476_v52  ;;  %v3066_v38 = vmul.f32 %v3050_v19, %v2650_v17  ;;  %v2796_v52 = vmul.f32 1.0614054, %v5903_v0  ;;  %v2795_v44 = vmul.f32 1.0614054, %v5914_v49  ;;  %v3161_v17 = vld [vmem:[#allocation14 + $0x2c0] sm:$0xff]  ;;  %v3163_v19 = vld [vmem:[#allocation14 + $0x2d0] sm:$0xff] }
 0x949   : > { %4479 = vmatprep.subr.bf16.mxu0 %v4478_v58  ;;  %v3157_v58 = vld [vmem:[#allocation14 + $0x2a0] sm:$0xff]  ;;  %v2835_v24 = vadd.f32 1.4214138, %v2819_v9 }
 0x94a   : > { %3411 = vmatprep.mubr.f32.mxu0 %v3066_v38  ;;  %v2812_v7 = vadd.f32 -1.4531521, %v2796_v52  ;;  %v4492_v34 = vpack.c.bf16 %v3159_v28, %v3157_v58  ;;  %v2811_v18 = vadd.f32 -1.4531521, %v2795_v44  ;;  %v4496_v38 = vpack.c.bf16 %v3163_v19, %v3161_v17  ;;  %v3169_v58 = vld [vmem:[#allocation14 + $0x300] sm:$0xff]  ;;  %v3171_v28 = vld [vmem:[#allocation14 + $0x310] sm:$0xff] }
 0x94b   : > { %3412 = vmatmul.mubr.f32.gmra.mrb[18].mxu0 %v3065_v31  ;;  %v4498_v31 = vpack.c.bf16 %v3168_v23, %v3166_v22  ;;  %v2851_v52 = vmul.f32 %v5897_v41, %v2835_v24  ;;  %v2939_v44 = vsub.f32 0.0, %v5877_v43 }
 0x94c   : > { %4481 = vmatpush1.bf16.msra.mxu0 %v4480_v15  ;;  %3482 = vmatprep.mubr.f32.mxu0 %v3060_v30  ;;  %v2828_v26 = vmul.f32 %v5903_v0, %v2812_v7  ;;  %v2827_v21 = vmul.f32 %v5914_v49, %v2811_v18  ;;  %v3172_v30 = vld [vmem:[#allocation14 + $0x318] sm:$0xff]  ;;  %v3175_v18 = vld [vmem:[#allocation14 + $0x330] sm:$0xff] }
 0x94d   : > { %4483 = vmatprep.subr.bf16.mxu0 %v4482_v10  ;;  %v3176_v7 = vld [vmem:[#allocation14 + $0x338] sm:$0xff]  ;;  %v2955_v23 = vmul.f32 %v2939_v44, %v5877_v43  ;;  %v2323_v44 = vsub.s32 7, %v5605_v61 }
 0x94e   : > { %v2844_v45 = vadd.f32 1.4214138, %v2828_v26  ;;  %v2843_v60 = vadd.f32 1.4214138, %v2827_v21  ;;  %v4506_v19 = vpack.c.bf16 %v3176_v7, %v3174_v5  ;;  %v3178_v26 = vld [vmem:[#allocation14 + $0x348] sm:$0xff]  ;;  %v3181_v7 = vld [vmem:[#allocation14 + $0x360] sm:$0xff] }
 0x94f   : > { %v5908_v39 = vpop.f32.mrb[12].mxu0  ;;  %v5910_v53 = vpop.f32.mrb[28].mxu1 }
 0x950   : > { %v2555_v32 = vpop.f32.mrb[13].mxu0  ;;  %v5912_v47 = vpop.f32.mrb[29].mxu1  ;;  %4485 = vmatpush1.bf16.msra.mxu0 %v4484_v25  ;;  %v2931_v25 = vsub.f32 0.0, %v5857_v8  ;;  %v2860_v9 = vmul.f32 %v5903_v0, %v2844_v45  ;;  %v2859_v22 = vmul.f32 %v5914_v49, %v2843_v60  ;;  %v2981_v45 = vmul.f32 1.442695, %v2955_v23  ;;  %v3185_v23 = vld [vmem:[#allocation14 + $0x380] sm:$0xff] }
 0x951   : > { %v5917_v20 = vadd.f32 %v2555_v32, %v5901_v37  ;;  %4487 = vmatprep.subr.bf16.mxu0 %v4486_v4  ;;  %v3165_v32 = vld [vmem:[#allocation14 + $0x2e0] sm:$0xff]  ;;  %v3167_v4 = vld [vmem:[#allocation14 + $0x2f0] sm:$0xff] }
 0x952   : > { %v4500_v12 = vpack.c.bf16 %v3167_v4, %v3165_v32  ;;  %v2876_v24 = vadd.f32 -0.28449672, %v2860_v9  ;;  %v2875_v43 = vadd.f32 -0.28449672, %v2859_v22  ;;  %v3183_v9 = vld [vmem:[#allocation14 + $0x370] sm:$0xff] }
 0x953   : > { %v5921_v51 = vmul.f32 0.70710677, %v5917_v20  ;;  %v5927_v59 = vpop.f32.mrb[14].mxu0  ;;  %v5931_v15 = vpop.f32.mrb[30].mxu1  ;;  %v4516_v22 = vpack.c.bf16 %v3183_v9, %v3181_v7  ;;  %v3198_v7 = vld [vmem:[#allocation14 + $0x3e8] sm:$0xff] }
 0x954   : > { %4489 = vmatpush1.bf16.msra.mxu0 %v4488_v56  ;;  %v5933_v10 = vpop.f32.mrb[15].mxu0  ;;  %v5935_v2 = vpop.f32.mrb[31].mxu1  ;;  %v2947_v56 = vmul.f32 %v2931_v25, %v5857_v8  ;;  %v3173_v8 = vld [vmem:[#allocation14 + $0x320] sm:$0xff] }
 0x955   : > { %v5925_v36 = vand.u32 2147483647, %v5921_v51  ;;  %4491 = vmatprep.subr.bf16.mxu0 %v4490_v40  ;;  %v4502_v40 = vpack.c.bf16 %v3172_v30, %v3170_v33  ;;  %v4508_v32 = vpack.c.bf16 %v3175_v18, %v3173_v8  ;;  %v3177_v33 = vld [vmem:[#allocation14 + $0x340] sm:$0xff]  ;;  %v3179_v30 = vld [vmem:[#allocation14 + $0x350] sm:$0xff]  ;;  %vm2678_vm10 = vcmp.ge.f32.partialorder %v5921_v51, 0.0 }
 0x956   : > { %v2965_v17 = vmul.f32 1.442695, %v2947_v56 }
 0x957   : > { %v2726_v11 = vmul.f32 0.3275911, %v5925_v36  ;;  %v2934_v25 = vsub.f32 0.0, %v5925_v36 }
 0x958   : > { %4493 = vmatpush1.bf16.msra.mxu0 %v4492_v34  ;;  %v2867_v34 = vadd.f32 -0.28449672, %v2851_v52  ;;  %v3184_v52 = vld [vmem:[#allocation14 + $0x378] sm:$0xff] }
 0x959   : > { %v2742_v29 = vadd.f32 1.0, %v2726_v11  ;;  %4495 = vmatprep.subr.bf16.mxu0 %v4494_v16  ;;  %v2956_v11 = vmul.f32 %v2940_v35, %v5865_v62  ;;  %v4504_v16 = vpack.c.bf16 %v3171_v28, %v3169_v58  ;;  %v3182_v35 = vld [vmem:[#allocation14 + $0x368] sm:$0xff]  ;;  %v2950_v56 = vmul.f32 %v2934_v25, %v5925_v36 }
 0x95a   : > { %v2883_v62 = vmul.f32 %v5897_v41, %v2867_v34  ;;  %v4512_v28 = vpack.c.bf16 %v3179_v30, %v3177_v33  ;;  %v4514_v5 = vpack.c.bf16 %v3184_v52, %v3182_v35  ;;  %v3186_v34 = vld [vmem:[#allocation14 + $0x388] sm:$0xff] }
 0x95b   : > { %4844 = vrcp.f32 %v2742_v29  ;;  %v3180_v29 = vld [vmem:[#allocation14 + $0x358] sm:$0xff] }
 0x95c   : > { %4497 = vmatpush1.bf16.msra.mxu0 %v4496_v38  ;;  %v2983_v38 = vmul.f32 1.442695, %v2956_v11  ;;  %4846 = vpow2.f32 %v2965_v17  ;;  %v4510_v21 = vpack.c.bf16 %v3180_v29, %v3178_v26  ;;  %v2891_v11 = vmul.f32 %v5914_v49, %v2875_v43  ;;  %v3187_v26 = vld [vmem:[#allocation14 + $0x390] sm:$0xff] }
 0x95d   : > { %4499 = vmatprep.subr.bf16.mxu0 %v4498_v31  ;;  %v2311_v31 = vsub.s32 4, %v5605_v61  ;;  %v4520_v33 = vpack.c.bf16 %v3187_v26, %v3185_v23  ;;  %v2691_v26 = vsel %vm2675_vm7, 1.0, %v5178_v27 }
 0x95e   : > { %4848 = vpow2.f32 %v2983_v38  ;;  %v5969_v38 = vadd.f32 %v5933_v10, %v5901_v37  ;;  %v3189_v37 = vld [vmem:[#allocation14 + $0x3a0] sm:$0xff]  ;;  %v3191_v10 = vld [vmem:[#allocation14 + $0x3b0] sm:$0xff] }
 0x95f   : > { %v2312_v58 = vrot.slane %v5780_v1, %v2311_v31  ;;  %4850 = vpow2.f32 %v2981_v45  ;;  %v3192_v31 = vld [vmem:[#allocation14 + $0x3b8] sm:$0xff] }
 0x960   : > { %4501 = vmatpush1.bf16.msra.mxu0 %v4500_v12  ;;  %v2892_v12 = vmul.f32 %v5903_v0, %v2876_v24  ;;  %v5965_v24 = vrot.slane %v5780_v1, %v2323_v44  ;;  %v5984_v52 = vmul.f32 0.70710677, %v5969_v38  ;;  %v3193_v44 = vld [vmem:[#allocation14 + $0x3c0] sm:$0xff] }
 0x961   : > { %4503 = vmatprep.subr.bf16.mxu0 %v4502_v40  ;;  %v2899_v40 = vadd.f32 0.2548296, %v2883_v62  ;;  %v5961_v18 = vadd.f32 %v5908_v39, %v2312_v58  ;;  %v2907_v62 = vadd.f32 0.2548296, %v2891_v11  ;;  %v5976_v1 = vadd.f32 %v5927_v59, %v2312_v58  ;;  %v3196_v59 = vld [vmem:[#allocation14 + $0x3d8] sm:$0xff] }
 0x962   : > { %v2908_v17 = vadd.f32 0.2548296, %v2892_v12  ;;  %vm2686_vm12 = vcmp.ge.f32.partialorder %v5984_v52, 0.0 }
 0x963   : > { %v2915_v8 = vmul.f32 %v5897_v41, %v2899_v40  ;;  %v3190_v41 = vld [vmem:[#allocation14 + $0x3a8] sm:$0xff]  ;;  %v5973_v43 = vmul.f32 0.70710677, %v5961_v18 }
 0x964   : > { %4505 = vmatpush1.bf16.msra.mxu0 %v4504_v16  ;;  %v3188_v16 = vld [vmem:[#allocation14 + $0x398] sm:$0xff]  ;;  %v2924_v39 = vmul.f32 %v5903_v0, %v2908_v17  ;;  %v5981_v0 = vadd.f32 %v5912_v47, %v5965_v24  ;;  %v4522_v12 = vpack.c.bf16 %v3192_v31, %v3190_v41  ;;  %v3194_v40 = vld [vmem:[#allocation14 + $0x3c8] sm:$0xff]  ;;  %v3199_v41 = vld [vmem:[#allocation14 + $0x3f0] sm:$0xff] }
 0x965   : > { %v5951_v4 = vpop.eup %4844  ;;  %4507 = vmatprep.subr.bf16.mxu0 %v4506_v19  ;;  %v2971_v19 = vmul.f32 1.442695, %v2950_v56  ;;  %v4518_v25 = vpack.c.bf16 %v3188_v16, %v3186_v34  ;;  %v2923_v56 = vmul.f32 %v5914_v49, %v2907_v62  ;;  %v5989_v11 = vand.u32 2147483647, %v5973_v43  ;;  %v3200_v49 = vld [vmem:[#allocation14 + $0x3f8] sm:$0xff]  ;;  %v3197_v62 = vld [vmem:[#allocation14 + $0x3e0] sm:$0xff] }
 0x966   : > { %v2790_v60 = vmul.f32 1.0614054, %v5951_v4  ;;  %v5992_v34 = vmul.f32 0.70710677, %v5976_v1  ;;  %v5996_v17 = vmul.f32 0.70710677, %v5981_v0 }
 0x967   : > { %4852 = vpow2.f32 %v2971_v19  ;;  %v4526_v19 = vpack.c.bf16 %v3196_v59, %v3194_v40  ;;  %v4532_v40 = vpack.c.bf16 %v3199_v41, %v3197_v62  ;;  %vm2677_vm11 = vcmp.ge.f32.partialorder %v5973_v43, 0.0 }
 0x968   : > { %4509 = vmatpush1.bf16.msra.mxu0 %v4508_v32  ;;  %v2806_v36 = vadd.f32 -1.4531521, %v2790_v60  ;;  %v4524_v60 = vpack.c.bf16 %v3191_v10, %v3189_v37  ;;  %v6015_v10 = vand.u32 2147483647, %v5996_v17  ;;  %vm2685_vm13 = vcmp.ge.f32.partialorder %v5992_v34, 0.0 }
 0x969   : > { %4511 = vmatprep.subr.bf16.mxu0 %v4510_v21  ;;  %v4847_v21 = vpop.eup %4846  ;;  %vm2680_vm14 = vcmp.ge.f32.partialorder %v5996_v17, 0.0  ;;  %v3270_v17 = vld [vmem:[#allocation14 + $0x628] sm:$0xff] }
 0x96a   : > { %v2822_v29 = vmul.f32 %v5951_v4, %v2806_v36  ;;  %v2995_v30 = vmul.f32 %v4847_v21, %v2915_v8  ;;  %v4849_v35 = vpop.eup %4848  ;;  %v5999_v36 = vand.u32 2147483647, %v5984_v52  ;;  %v3202_v21 = vld [vmem:[#allocation14 + $0x408] sm:$0xff]  ;;  %v2728_v51 = vmul.f32 0.3275911, %v6015_v10 }
 0x96b   : > { %v3004_v58 = vmul.f32 %v4849_v35, %v2924_v39  ;;  %v4851_v9 = vpop.eup %4850  ;;  %v2725_v39 = vmul.f32 0.3275911, %v5989_v11 }
 0x96c   : > { %4513 = vmatpush1.bf16.msra.mxu0 %v4512_v28  ;;  %v2838_v32 = vadd.f32 1.4214138, %v2822_v29  ;;  %v3011_v47 = vsub.f32 1.0, %v2995_v30  ;;  %v3003_v8 = vmul.f32 %v4851_v9, %v2923_v56  ;;  %v2744_v41 = vadd.f32 1.0, %v2728_v51 }
 0x96d   : > { %4515 = vmatprep.subr.bf16.mxu0 %v4514_v5  ;;  %v3195_v5 = vld [vmem:[#allocation14 + $0x3d0] sm:$0xff] }
 0x96e   : > { %v2854_v45 = vmul.f32 %v5951_v4, %v2838_v32  ;;  %v4528_v29 = vpack.c.bf16 %v3195_v5, %v3193_v44  ;;  %v3027_v31 = vmul.f32 %v3011_v47, %v2691_v26  ;;  %v6008_v32 = vand.u32 2147483647, %v5992_v34  ;;  %v3203_v44 = vld [vmem:[#allocation14 + $0x410] sm:$0xff] }
 0x96f   : > { %v3019_v35 = vsub.f32 1.0, %v3003_v8  ;;  %v2643_v8 = vmul.f32 0.5, %v5831_v14  ;;  %v2651_v14 = vmul.f32 0.5, %v5847_v54  ;;  %v2701_v34 = vsel %vm2685_vm13, 1.0, %v5178_v27 }
 0x970   : > { %4517 = vmatpush1.bf16.msra.mxu0 %v4516_v22  ;;  %v2870_v28 = vadd.f32 -0.28449672, %v2854_v45  ;;  %v3020_v22 = vsub.f32 1.0, %v3004_v58  ;;  %v2734_v45 = vmul.f32 0.3275911, %v5999_v36  ;;  %v3201_v58 = vld [vmem:[#allocation14 + $0x400] sm:$0xff] }
 0x971   : > { %4519 = vmatprep.subr.bf16.mxu0 %v4518_v25  ;;  %v4530_v25 = vpack.c.bf16 %v3200_v49, %v3198_v7  ;;  %v4853_v37 = vpop.eup %4852  ;;  %v3043_v6 = vadd.f32 1.0, %v3027_v31  ;;  %v2694_v7 = vsel %vm2678_vm10, 1.0, %v5178_v27  ;;  %v3206_v49 = vld [vmem:[#allocation14 + $0x428] sm:$0xff] }
 0x972   : > { %v2886_v16 = vmul.f32 %v5951_v4, %v2870_v28  ;;  %v2741_v28 = vadd.f32 1.0, %v2725_v39  ;;  %v2750_v9 = vadd.f32 1.0, %v2734_v45  ;;  %v3207_v39 = vld [vmem:[#allocation14 + $0x430] sm:$0xff] }
 0x973   : > { %v3059_v62 = vmul.f32 %v3043_v6, %v2643_v8  ;;  %v3215_v6 = vld [vmem:[#allocation14 + $0x470] sm:$0xff] }
 0x974   : > { %4521 = vmatpush1.bf16.msra.mxu0 %v4520_v33  ;;  %v2902_v23 = vadd.f32 0.2548296, %v2886_v16  ;;  %v3204_v33 = vld [vmem:[#allocation14 + $0x418] sm:$0xff]  ;;  %4854 = vrcp.f32 %v2741_v28 }
 0x975   : > { %4523 = vmatprep.subr.bf16.mxu0 %v4522_v12  ;;  %v3036_v12 = vmul.f32 %v3020_v22, %v2700_v50  ;;  %v4534_v59 = vpack.c.bf16 %v3204_v33, %v3202_v21  ;;  %v4536_v22 = vpack.c.bf16 %v3203_v44, %v3201_v58  ;;  %4856 = vrcp.f32 %v2750_v9  ;;  %v3220_v44 = vld [vmem:[#allocation14 + $0x498] sm:$0xff] }
 0x976   : > { %v2918_v30 = vmul.f32 %v5951_v4, %v2902_v23  ;;  %v2699_v4 = vsel %vm2683_vm9, 1.0, %v5178_v27  ;;  %v2652_v23 = vmul.f32 0.5, %v5837_v42  ;;  %v2646_v42 = vmul.f32 0.5, %v5917_v20  ;;  %v3213_v20 = vld [vmem:[#allocation14 + $0x460] sm:$0xff] }
 0x977   : > { %v3035_v47 = vmul.f32 %v3019_v35, %v2699_v4  ;;  %v3052_v16 = vadd.f32 1.0, %v3036_v12  ;;  %v3209_v12 = vld [vmem:[#allocation14 + $0x440] sm:$0xff] }
 0x978   : > { %4525 = vmatpush1.bf16.msra.mxu0 %v4524_v60  ;;  %v2998_v56 = vmul.f32 %v4853_v37, %v2918_v30  ;;  %v2733_v60 = vmul.f32 0.3275911, %v6008_v32  ;;  %v3210_v30 = vld [vmem:[#allocation14 + $0x448] sm:$0xff]  ;;  %v3212_v37 = vld [vmem:[#allocation14 + $0x458] sm:$0xff] }
 0x979   : > { %4527 = vmatprep.subr.bf16.mxu0 %v4526_v19  ;;  %v3051_v31 = vadd.f32 1.0, %v3035_v47  ;;  %v3068_v21 = vmul.f32 %v3052_v16, %v2652_v23  ;;  %v4542_v35 = vpack.c.bf16 %v3212_v37, %v3210_v30  ;;  %v3217_v47 = vld [vmem:[#allocation14 + $0x480] sm:$0xff]  ;;  %v3222_v16 = vld [vmem:[#allocation14 + $0x4a8] sm:$0xff] }
 0x97a   : > { %v3014_v5 = vsub.f32 1.0, %v2998_v56  ;;  %v2749_v26 = vadd.f32 1.0, %v2733_v60  ;;  %v3211_v56 = vld [vmem:[#allocation14 + $0x450] sm:$0xff]  ;;  %v3218_v60 = vld [vmem:[#allocation14 + $0x488] sm:$0xff] }
 0x97b   : > { %v3067_v45 = vmul.f32 %v3051_v31, %v2651_v14  ;;  %v4544_v54 = vpack.c.bf16 %v3211_v56, %v3209_v12  ;;  %v4550_v9 = vpack.c.bf16 %v3220_v44, %v3218_v60  ;;  %v3232_v12 = vld [vmem:[#allocation14 + $0x4f8] sm:$0xff]  ;;  %v2933_v60 = vsub.f32 0.0, %v5989_v11  ;;  %v3234_v44 = vld [vmem:[#allocation14 + $0x508] sm:$0xff] }
 0x97c   : > { %4529 = vmatpush1.bf16.msra.mxu0 %v4528_v29  ;;  %v3030_v19 = vmul.f32 %v3014_v5, %v2694_v7  ;;  %v4538_v29 = vpack.c.bf16 %v3208_v13, %v3206_v49  ;;  %4858 = vrcp.f32 %v2749_v26  ;;  %v4548_v7 = vpack.c.bf16 %v3215_v6, %v3213_v20  ;;  %v3219_v49 = vld [vmem:[#allocation14 + $0x490] sm:$0xff] }
 0x97d   : > { %4531 = vmatprep.subr.bf16.mxu0 %v4530_v25  ;;  %v3205_v25 = vld [vmem:[#allocation14 + $0x420] sm:$0xff]  ;;  %4860 = vrcp.f32 %v2744_v41  ;;  %v4552_v23 = vpack.c.bf16 %v3219_v49, %v3217_v47  ;;  %v3223_v41 = vld [vmem:[#allocation14 + $0x4b0] sm:$0xff]  ;;  %v2942_v47 = vsub.f32 0.0, %v5999_v36 }
 0x97e   : > { %v3046_v33 = vadd.f32 1.0, %v3030_v19  ;;  %v4540_v50 = vpack.c.bf16 %v3207_v39, %v3205_v25  ;;  %v6029_v28 = vpop.eup %4854  ;;  %v3224_v19 = vld [vmem:[#allocation14 + $0x4b8] sm:$0xff]  ;;  %v3226_v25 = vld [vmem:[#allocation14 + $0x4c8] sm:$0xff]  ;;  %v3231_v20 = vld [vmem:[#allocation14 + $0x4f0] sm:$0xff] }
 0x97f   : > { %v6031_v5 = vpop.eup %4856  ;;  %v2789_v51 = vmul.f32 1.0614054, %v6029_v28  ;;  %v3228_v39 = vld [vmem:[#allocation14 + $0x4d8] sm:$0xff] }
 0x980   : > { %4533 = vmatpush1.bf16.msra.mxu0 %v4532_v40  ;;  %v3062_v4 = vmul.f32 %v3046_v33, %v2646_v42  ;;  %v3214_v40 = vld [vmem:[#allocation14 + $0x468] sm:$0xff]  ;;  %v2798_v8 = vmul.f32 1.0614054, %v6031_v5  ;;  %v4558_v14 = vpack.c.bf16 %v3228_v39, %v3226_v25  ;;  %v3225_v42 = vld [vmem:[#allocation14 + $0x4c0] sm:$0xff] }
 0x981   : > { %4535 = vmatprep.subr.bf16.mxu0 %v4534_v59  ;;  %v3216_v59 = vld [vmem:[#allocation14 + $0x478] sm:$0xff]  ;;  %v2805_v26 = vadd.f32 -1.4531521, %v2789_v51 }
 0x982   : > { %v4546_v58 = vpack.c.bf16 %v3216_v59, %v3214_v40 }
 0x983   : > { %3483 = vmatmul.mubr.f32.vlgmr.msra.gmra.mrb[16].mxu0 %v3059_v62  ;;  %v3221_v62 = vld [vmem:[#allocation14 + $0x4a0] sm:$0xff]  ;;  %v2821_v37 = vmul.f32 %v6029_v28, %v2805_v26 }
 0x984   : > { %3488 = vmatprep.mubr.f32.mxu0 %v3068_v21  ;;  %4537 = vmatpush1.bf16.msra.mxu0 %v4536_v22  ;;  %v2814_v21 = vadd.f32 -1.4531521, %v2798_v8  ;;  %v4556_v30 = vpack.c.bf16 %v3223_v41, %v3221_v62  ;;  %v3233_v8 = vld [vmem:[#allocation14 + $0x500] sm:$0xff]  ;;  %v2941_v62 = vsub.f32 0.0, %v6008_v32  ;;  %v3238_v41 = vld [vmem:[#allocation14 + $0x528] sm:$0xff] }
 0x985   : > { %4539 = vmatprep.subr.bf16.mxu0 %v4538_v29  ;;  %v4554_v29 = vpack.c.bf16 %v3224_v19, %v3222_v16  ;;  %v2837_v59 = vadd.f32 1.4214138, %v2821_v37 }
 0x986   : > { %v6034_v13 = vpop.eup %4858  ;;  %v2830_v56 = vmul.f32 %v6031_v5, %v2814_v21  ;;  %v2936_v21 = vsub.f32 0.0, %v6015_v10 }
 0x987   : > { %3489 = vmatmul.mubr.f32.gmra.mrb[18].mxu0 %v3067_v45  ;;  %v6037_v22 = vpop.eup %4860  ;;  %v2797_v31 = vmul.f32 1.0614054, %v6034_v13  ;;  %v2853_v16 = vmul.f32 %v6029_v28, %v2837_v59 }
 0x988   : > { %4541 = vmatpush1.bf16.msra.mxu0 %v4540_v50  ;;  %3559 = vmatprep.mubr.f32.mxu0 %v3062_v4  ;;  %v2792_v33 = vmul.f32 1.0614054, %v6037_v22  ;;  %v3227_v50 = vld [vmem:[#allocation14 + $0x4d0] sm:$0xff]  ;;  %v2846_v51 = vadd.f32 1.4214138, %v2830_v56  ;;  %v3244_v56 = vld [vmem:[#allocation14 + $0x558] sm:$0xff]  ;;  %v2952_v59 = vmul.f32 %v2936_v21, %v6015_v10 }
 0x989   : > { %4543 = vmatprep.subr.bf16.mxu0 %v4542_v35  ;;  %v2813_v45 = vadd.f32 -1.4531521, %v2797_v31  ;;  %v3230_v35 = vld [vmem:[#allocation14 + $0x4e8] sm:$0xff]  ;;  %v4560_v40 = vpack.c.bf16 %v3227_v50, %v3225_v42  ;;  %v3240_v31 = vld [vmem:[#allocation14 + $0x538] sm:$0xff]  ;;  %v2869_v37 = vadd.f32 -0.28449672, %v2853_v16 }
 0x98a   : > { %v2808_v4 = vadd.f32 -1.4531521, %v2792_v33  ;;  %v2862_v25 = vmul.f32 %v6031_v5, %v2846_v51  ;;  %v2958_v33 = vmul.f32 %v2942_v47, %v5999_v36  ;;  %v3237_v42 = vld [vmem:[#allocation14 + $0x520] sm:$0xff]  ;;  %v3239_v50 = vld [vmem:[#allocation14 + $0x530] sm:$0xff]  ;;  %v3246_v51 = vld [vmem:[#allocation14 + $0x568] sm:$0xff] }
 0x98b   : > { %v2829_v6 = vmul.f32 %v6034_v13, %v2813_v45  ;;  %v2975_v10 = vmul.f32 1.442695, %v2952_v59 }
 0x98c   : > { %4545 = vmatpush1.bf16.msra.mxu0 %v4544_v54  ;;  %v4562_v54 = vpack.c.bf16 %v3232_v12, %v3230_v35  ;;  %v2957_v35 = vmul.f32 %v2941_v62, %v6008_v32  ;;  %v3242_v12 = vld [vmem:[#allocation14 + $0x548] sm:$0xff]  ;;  %v2987_v36 = vmul.f32 1.442695, %v2958_v33 }
 0x98d   : > { %4547 = vmatprep.subr.bf16.mxu0 %v4546_v58  ;;  %v3229_v58 = vld [vmem:[#allocation14 + $0x4e0] sm:$0xff]  ;;  %v2845_v26 = vadd.f32 1.4214138, %v2829_v6  ;;  %v4574_v6 = vpack.c.bf16 %v3244_v56, %v3242_v12 }
 0x98e   : > { %v4564_v49 = vpack.c.bf16 %v3231_v20, %v3229_v58  ;;  %v4572_v58 = vpack.c.bf16 %v3239_v50, %v3237_v42  ;;  %v2885_v20 = vmul.f32 %v6029_v28, %v2869_v37  ;;  %v2985_v32 = vmul.f32 1.442695, %v2957_v35  ;;  %v3249_v42 = vld [vmem:[#allocation14 + $0x580] sm:$0xff]  ;;  %v3251_v50 = vld [vmem:[#allocation14 + $0x590] sm:$0xff]  ;;  %v3256_v35 = vld [vmem:[#allocation14 + $0x5b8] sm:$0xff] }
 0x98f   : > { %v6071_v37 = vadd.f32 %v5935_v2, %v5965_v24  ;;  %v4584_v2 = vpack.c.bf16 %v3251_v50, %v3249_v42  ;;  %v3253_v24 = vld [vmem:[#allocation14 + $0x5a0] sm:$0xff] }
 0x990   : > { %4549 = vmatpush1.bf16.msra.mxu0 %v4548_v7  ;;  %v3236_v7 = vld [vmem:[#allocation14 + $0x518] sm:$0xff] }
 0x991   : > { %4551 = vmatprep.subr.bf16.mxu0 %v4550_v9  ;;  %v2824_v9 = vmul.f32 %v6037_v22, %v2808_v4  ;;  %v4566_v19 = vpack.c.bf16 %v3236_v7, %v3234_v44  ;;  %v2878_v4 = vadd.f32 -0.28449672, %v2862_v25  ;;  %v3243_v44 = vld [vmem:[#allocation14 + $0x550] sm:$0xff] }
 0x993   : > { %v2840_v39 = vadd.f32 1.4214138, %v2824_v9  ;;  %v3248_v9 = vld [vmem:[#allocation14 + $0x578] sm:$0xff]  ;;  %v2894_v47 = vmul.f32 %v6031_v5, %v2878_v4 }
 0x994   : > { %4553 = vmatpush1.bf16.msra.mxu0 %v4552_v23  ;;  %v3235_v23 = vld [vmem:[#allocation14 + $0x510] sm:$0xff] }
 0x995   : > { %4555 = vmatprep.subr.bf16.mxu0 %v4554_v29  ;;  %v2949_v29 = vmul.f32 %v2933_v60, %v5989_v11  ;;  %v2861_v11 = vmul.f32 %v6034_v13, %v2845_v26  ;;  %v3241_v60 = vld [vmem:[#allocation14 + $0x540] sm:$0xff]  ;;  %v2910_v25 = vadd.f32 0.2548296, %v2894_v47 }
 0x996   : > { %v3245_v26 = vld [vmem:[#allocation14 + $0x560] sm:$0xff] }
 0x997   : > { %v2969_v45 = vmul.f32 1.442695, %v2949_v29  ;;  %v2877_v7 = vadd.f32 -0.28449672, %v2861_v11  ;;  %v3247_v29 = vld [vmem:[#allocation14 + $0x570] sm:$0xff]  ;;  %v2926_v12 = vmul.f32 %v6031_v5, %v2910_v25  ;;  %v3258_v5 = vld [vmem:[#allocation14 + $0x5c8] sm:$0xff] }
 0x998   : > { %4557 = vmatpush1.bf16.msra.mxu0 %v4556_v30  ;;  %v4568_v30 = vpack.c.bf16 %v3235_v23, %v3233_v8  ;;  %v2901_v8 = vadd.f32 0.2548296, %v2885_v20  ;;  %v4578_v23 = vpack.c.bf16 %v3248_v9, %v3246_v51  ;;  %v4580_v33 = vpack.c.bf16 %v3247_v29, %v3245_v26  ;;  %v3260_v20 = vld [vmem:[#allocation14 + $0x5d8] sm:$0xff] }
 0x999   : > { %4559 = vmatprep.subr.bf16.mxu0 %v4558_v14  ;;  %v4570_v14 = vpack.c.bf16 %v3240_v31, %v3238_v41  ;;  %4862 = vpow2.f32 %v2969_v45  ;;  %v2893_v62 = vmul.f32 %v6034_v13, %v2877_v7  ;;  %v3250_v41 = vld [vmem:[#allocation14 + $0x588] sm:$0xff]  ;;  %v3252_v31 = vld [vmem:[#allocation14 + $0x598] sm:$0xff]  ;;  %v3259_v7 = vld [vmem:[#allocation14 + $0x5d0] sm:$0xff] }
 0x99a   : > { %4864 = vpow2.f32 %v2987_v36  ;;  %v3254_v45 = vld [vmem:[#allocation14 + $0x5a8] sm:$0xff]  ;;  %v6081_v36 = vmul.f32 0.70710677, %v6071_v37 }
 0x99b   : > { %4866 = vpow2.f32 %v2985_v32  ;;  %v2909_v11 = vadd.f32 0.2548296, %v2893_v62  ;;  %v3261_v62 = vld [vmem:[#allocation14 + $0x5e0] sm:$0xff] }
 0x99c   : > { %4561 = vmatpush1.bf16.msra.mxu0 %v4560_v40  ;;  %v2856_v40 = vmul.f32 %v6037_v22, %v2840_v39  ;;  %4868 = vpow2.f32 %v2975_v10  ;;  %v3262_v10 = vld [vmem:[#allocation14 + $0x5e8] sm:$0xff]  ;;  %vm2688_vm0 = vcmp.ge.f32.partialorder %v6081_v36, 0.0 }
 0x99d   : > { %4563 = vmatprep.subr.bf16.mxu0 %v4562_v54  ;;  %v2319_v54 = vsub.s32 6, %v5605_v61  ;;  %v4886_v61 = vld [vmem:[%s6276_s28] sm:$0xff] }
 0x99f   : > { %v2320_v16 = vrot.slane %v4886_v61, %v2319_v54  ;;  %v4586_v54 = vpack.c.bf16 %v3256_v35, %v3254_v45  ;;  %v3264_v61 = vld [vmem:[#allocation14 + $0x5f8] sm:$0xff] }
 0x9a0   : > { %4565 = vmatpush1.bf16.msra.mxu0 %v4564_v49  ;;  %v2872_v49 = vadd.f32 -0.28449672, %v2856_v40  ;;  %v4594_v29 = vpack.c.bf16 %v3264_v61, %v3262_v10  ;;  %v3271_v10 = vld [vmem:[#allocation14 + $0x630] sm:$0xff] }
 0x9a1   : > { %4567 = vmatprep.subr.bf16.mxu0 %v4566_v19  ;;  %v4576_v19 = vpack.c.bf16 %v3243_v44, %v3241_v60  ;;  %v6066_v21 = vadd.f32 %v5910_v53, %v2320_v16 }
 0x9a2   : > { %v2888_v39 = vmul.f32 %v6037_v22, %v2872_v49  ;;  %v4590_v49 = vpack.c.bf16 %v3260_v20, %v3258_v5  ;;  %v3272_v5 = vld [vmem:[#allocation14 + $0x638] sm:$0xff] }
 0x9a3   : > { %v4863_v53 = vpop.eup %4862  ;;  %v6075_v4 = vmul.f32 0.70710677, %v6066_v21 }
 0x9a4   : > { %4569 = vmatpush1.bf16.msra.mxu0 %v4568_v30  ;;  %v2917_v30 = vmul.f32 %v6029_v28, %v2901_v8  ;;  %v2904_v56 = vadd.f32 0.2548296, %v2888_v39  ;;  %v6078_v28 = vadd.f32 %v5931_v15, %v2320_v16  ;;  %v4865_v40 = vpop.eup %4864  ;;  %v3257_v15 = vld [vmem:[#allocation14 + $0x5c0] sm:$0xff] }
 0x9a5   : > { %4571 = vmatprep.subr.bf16.mxu0 %v4570_v14  ;;  %v4582_v14 = vpack.c.bf16 %v3252_v31, %v3250_v41  ;;  %v3006_v60 = vmul.f32 %v4865_v40, %v2926_v12  ;;  %v4867_v32 = vpop.eup %4866  ;;  %v6086_v51 = vand.u32 2147483647, %v6075_v4  ;;  %v4592_v26 = vpack.c.bf16 %v3259_v7, %v3257_v15  ;;  %v3263_v41 = vld [vmem:[#allocation14 + $0x5f0] sm:$0xff]  ;;  %v3265_v40 = vld [vmem:[#allocation14 + $0x600] sm:$0xff] }
 0x9a6   : > { %v2997_v59 = vmul.f32 %v4863_v53, %v2917_v30  ;;  %v2920_v44 = vmul.f32 %v6037_v22, %v2904_v56  ;;  %v6089_v9 = vmul.f32 0.70710677, %v6078_v28  ;;  %v4869_v16 = vpop.eup %4868  ;;  %v6093_v22 = vand.u32 2147483647, %v6081_v36  ;;  %v3266_v30 = vld [vmem:[#allocation14 + $0x608] sm:$0xff] }
 0x9a7   : > { %v3022_v8 = vsub.f32 1.0, %v3006_v60  ;;  %v2693_v31 = vsel %vm2677_vm11, 1.0, %v5178_v27  ;;  %v2727_v25 = vmul.f32 0.3275911, %v6086_v51  ;;  %v4596_v45 = vpack.c.bf16 %v3263_v41, %v3261_v62  ;;  %v3275_v62 = vld [vmem:[#allocation14 + $0x650] sm:$0xff] }
 0x9a8   : > { %4573 = vmatpush1.bf16.msra.mxu0 %v4572_v58  ;;  %v3255_v58 = vld [vmem:[#allocation14 + $0x5b0] sm:$0xff]  ;;  %v6100_v43 = vand.u32 2147483647, %v6089_v9  ;;  %v2736_v52 = vmul.f32 0.3275911, %v6093_v22  ;;  %vm2679_vm15 = vcmp.ge.f32.partialorder %v6075_v4, 0.0 }
 0x9a9   : > { %4575 = vmatprep.subr.bf16.mxu0 %v4574_v6  ;;  %v2925_v6 = vmul.f32 %v6034_v13, %v2909_v11  ;;  %v4588_v47 = vpack.c.bf16 %v3255_v58, %v3253_v24  ;;  %v3013_v13 = vsub.f32 1.0, %v2997_v59  ;;  %v2743_v35 = vadd.f32 1.0, %v2727_v25  ;;  %v3267_v59 = vld [vmem:[#allocation14 + $0x610] sm:$0xff]  ;;  %v3280_v25 = vld [vmem:[#allocation14 + $0x678] sm:$0xff] }
 0x9aa   : > { %v2735_v12 = vmul.f32 0.3275911, %v6100_v43  ;;  %v2752_v24 = vadd.f32 1.0, %v2736_v52  ;;  %v4600_v15 = vpack.c.bf16 %v3267_v59, %v3265_v40  ;;  %vm2687_vm1 = vcmp.ge.f32.partialorder %v6089_v9, 0.0 }
 0x9ab   : > { %v3029_v39 = vmul.f32 %v3013_v13, %v2693_v31  ;;  %4870 = vrcp.f32 %v2743_v35  ;;  %v3274_v13 = vld [vmem:[#allocation14 + $0x648] sm:$0xff]  ;;  %v3281_v35 = vld [vmem:[#allocation14 + $0x680] sm:$0xff]  ;;  %v2704_v4 = vsel %vm2688_vm0, 1.0, %v5178_v27  ;;  %v2703_v36 = vsel %vm2687_vm1, 1.0, %v5178_v27 }
 0x9ac   : > { %4577 = vmatpush1.bf16.msra.mxu0 %v4576_v19  ;;  %v3005_v19 = vmul.f32 %v4867_v32, %v2925_v6  ;;  %v2645_v6 = vmul.f32 0.5, %v5961_v18  ;;  %v2751_v60 = vadd.f32 1.0, %v2735_v12  ;;  %4872 = vrcp.f32 %v2752_v24  ;;  %v3278_v31 = vld [vmem:[#allocation14 + $0x668] sm:$0xff] }
 0x9ad   : > { %4579 = vmatprep.subr.bf16.mxu0 %v4578_v23  ;;  %v3000_v23 = vmul.f32 %v4869_v16, %v2920_v44  ;;  %v3045_v53 = vadd.f32 1.0, %v3029_v39  ;;  %v2654_v44 = vmul.f32 0.5, %v5969_v38  ;;  %v2648_v18 = vmul.f32 0.5, %v5981_v0  ;;  %v3279_v0 = vld [vmem:[#allocation14 + $0x670] sm:$0xff] }
 0x9ae   : > { %v3021_v42 = vsub.f32 1.0, %v3005_v19  ;;  %v3276_v19 = vld [vmem:[#allocation14 + $0x658] sm:$0xff]  ;;  %4874 = vrcp.f32 %v2751_v60  ;;  %v2647_v9 = vmul.f32 0.5, %v6066_v21 }
 0x9af   : > { %v3016_v11 = vsub.f32 1.0, %v3000_v23  ;;  %v3061_v7 = vmul.f32 %v3045_v53, %v2645_v6  ;;  %v3288_v53 = vld [vmem:[#allocation14 + $0x6b8] sm:$0xff] }
 0x9b0   : > { %4581 = vmatpush1.bf16.msra.mxu0 %v4580_v33  ;;  %v2702_v33 = vsel %vm2686_vm12, 1.0, %v5178_v27 }
 0x9b1   : > { %4583 = vmatprep.subr.bf16.mxu0 %v4582_v14  ;;  %v3268_v14 = vld [vmem:[#allocation14 + $0x618] sm:$0xff]  ;;  %v3038_v50 = vmul.f32 %v3022_v8, %v2702_v33  ;;  %v2653_v8 = vmul.f32 0.5, %v5976_v1  ;;  %v4610_v1 = vpack.c.bf16 %v3280_v25, %v3278_v31  ;;  %v3277_v33 = vld [vmem:[#allocation14 + $0x660] sm:$0xff] }
 0x9b2   : > { %v4598_v56 = vpack.c.bf16 %v3268_v14, %v3266_v30  ;;  %v3282_v30 = vld [vmem:[#allocation14 + $0x688] sm:$0xff]  ;;  %v3284_v14 = vld [vmem:[#allocation14 + $0x698] sm:$0xff] }
 0x9b3   : > { %v3054_v58 = vadd.f32 1.0, %v3038_v50  ;;  %v4612_v50 = vpack.c.bf16 %v3279_v0, %v3277_v33  ;;  %v3299_v33 = vld [vmem:[#allocation14 + $0x710] sm:$0xff] }
 0x9b4   : > { %4585 = vmatpush1.bf16.msra.mxu0 %v4584_v2  ;;  %v2696_v2 = vsel %vm2680_vm14, 1.0, %v5178_v27 }
 0x9b5   : > { %4587 = vmatprep.subr.bf16.mxu0 %v4586_v54  ;;  %v3037_v54 = vmul.f32 %v3021_v42, %v2701_v34  ;;  %v3032_v20 = vmul.f32 %v3016_v11, %v2696_v2  ;;  %v3070_v61 = vmul.f32 %v3054_v58, %v2654_v44  ;;  %v6112_v52 = vpop.eup %4870  ;;  %v3283_v34 = vld [vmem:[#allocation14 + $0x690] sm:$0xff] }
 0x9b6   : > { %v6114_v42 = vpop.eup %4872  ;;  %v2791_v11 = vmul.f32 1.0614054, %v6112_v52  ;;  %v4616_v24 = vpack.c.bf16 %v3283_v34, %v3281_v35  ;;  %v3287_v58 = vld [vmem:[#allocation14 + $0x6b0] sm:$0xff] }
 0x9b7   : > { %v3053_v32 = vadd.f32 1.0, %v3037_v54  ;;  %v3048_v16 = vadd.f32 1.0, %v3032_v20  ;;  %v2800_v2 = vmul.f32 1.0614054, %v6114_v42  ;;  %v3285_v54 = vld [vmem:[#allocation14 + $0x6a0] sm:$0xff]  ;;  %v3292_v20 = vld [vmem:[#allocation14 + $0x6d8] sm:$0xff] }
 0x9b8   : > { %4589 = vmatpush1.bf16.msra.mxu0 %v4588_v47  ;;  %v4602_v47 = vpack.c.bf16 %v3272_v5, %v3270_v17  ;;  %v6117_v12 = vpop.eup %4874  ;;  %v2807_v40 = vadd.f32 -1.4531521, %v2791_v11  ;;  %v3290_v5 = vld [vmem:[#allocation14 + $0x6c8] sm:$0xff]  ;;  %v4620_v60 = vpack.c.bf16 %v3287_v58, %v3285_v54  ;;  %v3304_v11 = vld [vmem:[#allocation14 + $0x738] sm:$0xff] }
 0x9b9   : > { %4591 = vmatprep.subr.bf16.mxu0 %v4590_v49  ;;  %v3269_v49 = vld [vmem:[#allocation14 + $0x620] sm:$0xff]  ;;  %v3069_v23 = vmul.f32 %v3053_v32, %v2653_v8  ;;  %v3064_v41 = vmul.f32 %v3048_v16, %v2648_v18  ;;  %v2799_v17 = vmul.f32 1.0614054, %v6117_v12  ;;  %v2816_v6 = vadd.f32 -1.4531521, %v2800_v2  ;;  %v3291_v32 = vld [vmem:[#allocation14 + $0x6d0] sm:$0xff] }
 0x9ba   : > { %v4604_v38 = vpack.c.bf16 %v3271_v10, %v3269_v49  ;;  %v2823_v44 = vmul.f32 %v6112_v52, %v2807_v40  ;;  %v3294_v49 = vld [vmem:[#allocation14 + $0x6e8] sm:$0xff]  ;;  %v3296_v10 = vld [vmem:[#allocation14 + $0x6f8] sm:$0xff]  ;;  %v3293_v8 = vld [vmem:[#allocation14 + $0x6e0] sm:$0xff] }
 0x9bb   : > { %v3295_v18 = vld [vmem:[#allocation14 + $0x6f0] sm:$0xff]  ;;  %v3301_v2 = vld [vmem:[#allocation14 + $0x720] sm:$0xff]  ;;  %v3306_v54 = vld [vmem:[#allocation14 + $0x748] sm:$0xff] }
 0x9bc   : > { %4593 = vmatpush1.bf16.msra.mxu0 %v4592_v26  ;;  %v4606_v26 = vpack.c.bf16 %v3276_v19, %v3274_v13  ;;  %v2839_v13 = vadd.f32 1.4214138, %v2823_v44  ;;  %v4626_v19 = vpack.c.bf16 %v3296_v10, %v3294_v49  ;;  %v4628_v31 = vpack.c.bf16 %v3295_v18, %v3293_v8  ;;  %v3308_v58 = vld [vmem:[#allocation14 + $0x758] sm:$0xff]  ;;  %v3307_v44 = vld [vmem:[#allocation14 + $0x750] sm:$0xff]  ;;  %v3314_v8 = vld [vmem:[#allocation14 + $0x788] sm:$0xff] }
 0x9bd   : > { %4595 = vmatprep.subr.bf16.mxu0 %v4594_v29  ;;  %v3273_v29 = vld [vmem:[#allocation14 + $0x640] sm:$0xff]  ;;  %v3316_v18 = vld [vmem:[#allocation14 + $0x798] sm:$0xff] }
 0x9be   : > { %v4608_v39 = vpack.c.bf16 %v3275_v62, %v3273_v29  ;;  %v3300_v29 = vld [vmem:[#allocation14 + $0x718] sm:$0xff]  ;;  %v2855_v25 = vmul.f32 %v6112_v52, %v2839_v13  ;;  %v3311_v13 = vld [vmem:[#allocation14 + $0x770] sm:$0xff] }
 0x9c0   : > { %4597 = vmatpush1.bf16.msra.mxu0 %v4596_v45  ;;  %v4614_v45 = vpack.c.bf16 %v3284_v14, %v3282_v30  ;;  %v2943_v14 = vsub.f32 0.0, %v6100_v43 }
 0x9c1   : > { %4599 = vmatprep.subr.bf16.mxu0 %v4598_v56  ;;  %v3286_v56 = vld [vmem:[#allocation14 + $0x6a8] sm:$0xff] }
 0x9c2   : > { %v4618_v59 = vpack.c.bf16 %v3288_v53, %v3286_v56  ;;  %v2871_v56 = vadd.f32 -0.28449672, %v2855_v25  ;;  %v3318_v25 = vld [vmem:[#allocation14 + $0x7a8] sm:$0xff] }
 0x9c3   : > { %3560 = vmatmul.mubr.f32.vlgmr.msra.gmra.mrb[16].mxu0 %v3061_v7  ;;  %v3289_v7 = vld [vmem:[#allocation14 + $0x6c0] sm:$0xff] }
 0x9c4   : > { %3565 = vmatprep.mubr.f32.mxu0 %v3070_v61  ;;  %4601 = vmatpush1.bf16.msra.mxu0 %v4600_v15  ;;  %v4622_v15 = vpack.c.bf16 %v3292_v20, %v3290_v5  ;;  %v2832_v61 = vmul.f32 %v6114_v42, %v2816_v6  ;;  %v4624_v16 = vpack.c.bf16 %v3291_v32, %v3289_v7  ;;  %v3310_v32 = vld [vmem:[#allocation14 + $0x768] sm:$0xff] }
 0x9c5   : > { %4603 = vmatprep.subr.bf16.mxu0 %v4602_v47  ;;  %v2815_v47 = vadd.f32 -1.4531521, %v2799_v17  ;;  %v4638_v6 = vpack.c.bf16 %v3308_v58, %v3306_v54  ;;  %v3326_v54 = vld [vmem:[#allocation14 + $0x7e8] sm:$0xff]  ;;  %v3328_v58 = vld [vmem:[#allocation14 + $0x7f8] sm:$0xff] }
 0x9c6   : > { %v2848_v62 = vadd.f32 1.4214138, %v2832_v61 }
 0x9c7   : > { %3566 = vmatmul.mubr.f32.gmra.mrb[18].mxu0 %v3069_v23  ;;  %v2935_v23 = vsub.f32 0.0, %v6086_v51 }
 0x9c8   : > { %4605 = vmatpush1.bf16.msra.mxu0 %v4604_v38  ;;  %3636 = vmatprep.mubr.f32.mxu0 %v3064_v41  ;;  %v2831_v38 = vmul.f32 %v6117_v12, %v2815_v47  ;;  %v2944_v41 = vsub.f32 0.0, %v6093_v22  ;;  %v3312_v47 = vld [vmem:[#allocation14 + $0x778] sm:$0xff] }
 0x9c9   : > { %4607 = vmatprep.subr.bf16.mxu0 %v4606_v26  ;;  %v3298_v26 = vld [vmem:[#allocation14 + $0x708] sm:$0xff]  ;;  %v2951_v30 = vmul.f32 %v2935_v23, %v6086_v51  ;;  %v2959_v51 = vmul.f32 %v2943_v14, %v6100_v43  ;;  %v4642_v61 = vpack.c.bf16 %v3312_v47, %v3310_v32 }
 0x9ca   : > { %v2847_v0 = vadd.f32 1.4214138, %v2831_v38  ;;  %v2960_v35 = vmul.f32 %v2944_v41, %v6093_v22  ;;  %v2887_v22 = vmul.f32 %v6112_v52, %v2871_v56  ;;  %v3315_v41 = vld [vmem:[#allocation14 + $0x790] sm:$0xff] }
 0x9cb   : > { %v2989_v7 = vmul.f32 1.442695, %v2959_v51 }
 0x9cc   : > { %4609 = vmatpush1.bf16.msra.mxu0 %v4608_v39  ;;  %v4630_v39 = vpack.c.bf16 %v3300_v29, %v3298_v26  ;;  %v2863_v40 = vmul.f32 %v6117_v12, %v2847_v0  ;;  %v2991_v5 = vmul.f32 1.442695, %v2960_v35  ;;  %v2903_v10 = vadd.f32 0.2548296, %v2887_v22  ;;  %v3322_v35 = vld [vmem:[#allocation14 + $0x7c8] sm:$0xff] }
 0x9cd   : > { %4611 = vmatprep.subr.bf16.mxu0 %v4610_v1  ;;  %v3297_v1 = vld [vmem:[#allocation14 + $0x700] sm:$0xff]  ;;  %v4646_v29 = vpack.c.bf16 %v3316_v18, %v3314_v8  ;;  %v4658_v22 = vpack.c.bf16 %v3328_v58, %v3326_v54 }
 0x9ce   : > { %v4632_v34 = vpack.c.bf16 %v3299_v33, %v3297_v1  ;;  %v2919_v26 = vmul.f32 %v6112_v52, %v2903_v10 }
 0x9d0   : > { %4613 = vmatpush1.bf16.msra.mxu0 %v4612_v50  ;;  %v3302_v50 = vld [vmem:[#allocation14 + $0x728] sm:$0xff] }
 0x9d1   : > { %4615 = vmatprep.subr.bf16.mxu0 %v4614_v45  ;;  %v2864_v45 = vmul.f32 %v6114_v42, %v2848_v62  ;;  %v4634_v53 = vpack.c.bf16 %v3304_v11, %v3302_v50  ;;  %v3313_v62 = vld [vmem:[#allocation14 + $0x780] sm:$0xff] }
 0x9d2   : > { %v4648_v0 = vpack.c.bf16 %v3315_v41, %v3313_v62  ;;  %v3317_v11 = vld [vmem:[#allocation14 + $0x7a0] sm:$0xff] }
 0x9d3   : > { %v2880_v17 = vadd.f32 -0.28449672, %v2864_v45  ;;  %v3319_v45 = vld [vmem:[#allocation14 + $0x7b0] sm:$0xff] }
 0x9d4   : > { %4617 = vmatpush1.bf16.msra.mxu0 %v4616_v24  ;;  %v3303_v24 = vld [vmem:[#allocation14 + $0x730] sm:$0xff] }
 0x9d5   : > { %4619 = vmatprep.subr.bf16.mxu0 %v4618_v59  ;;  %v2973_v59 = vmul.f32 1.442695, %v2951_v30  ;;  %v4636_v20 = vpack.c.bf16 %v3303_v24, %v3301_v2  ;;  %v2896_v49 = vmul.f32 %v6114_v42, %v2880_v17  ;;  %v4652_v2 = vpack.c.bf16 %v3319_v45, %v3317_v11 }
 0x9d7   : > { %4876 = vpow2.f32 %v2973_v59  ;;  %v2912_v38 = vadd.f32 0.2548296, %v2896_v49  ;;  %v3323_v59 = vld [vmem:[#allocation14 + $0x7d0] sm:$0xff] }
 0x9d8   : > { %4621 = vmatpush1.bf16.msra.mxu0 %v4620_v60  ;;  %v3305_v60 = vld [vmem:[#allocation14 + $0x740] sm:$0xff]  ;;  %4878 = vpow2.f32 %v2991_v5 }
 0x9d9   : > { %4623 = vmatprep.subr.bf16.mxu0 %v4622_v15  ;;  %v2879_v15 = vadd.f32 -0.28449672, %v2863_v40  ;;  %v4640_v43 = vpack.c.bf16 %v3307_v44, %v3305_v60  ;;  %4880 = vpow2.f32 %v2989_v7  ;;  %v2928_v1 = vmul.f32 %v6114_v42, %v2912_v38  ;;  %v3321_v40 = vld [vmem:[#allocation14 + $0x7c0] sm:$0xff]  ;;  %v3327_v60 = vld [vmem:[#allocation14 + $0x7f0] sm:$0xff] }
 0x9da   : > { %v4656_v5 = vpack.c.bf16 %v3323_v59, %v3321_v40 }
 0x9dc   : > { %4625 = vmatpush1.bf16.msra.mxu0 %v4624_v16  ;;  %v3309_v16 = vld [vmem:[#allocation14 + $0x760] sm:$0xff] }
 0x9dd   : > { %4627 = vmatprep.subr.bf16.mxu0 %v4626_v19  ;;  %v2895_v19 = vmul.f32 %v6117_v12, %v2879_v15  ;;  %v4644_v23 = vpack.c.bf16 %v3311_v13, %v3309_v16  ;;  %v2655_v13 = vmul.f32 0.5, %v6078_v28 }
 0x9e0   : > { %4629 = vmatpush1.bf16.msra.mxu0 %v4628_v31  ;;  %v2911_v31 = vadd.f32 0.2548296, %v2895_v19  ;;  %v3329_v19 = vld [vmem:[%s6277_s19] sm:$0x3] }
 0x9e1   : > { %4631 = vmatprep.subr.bf16.mxu0 %v4630_v39  ;;  %v3320_v39 = vld [vmem:[#allocation14 + $0x7b8] sm:$0xff]  ;;  %v4877_v33 = vpop.eup %4876  ;;  %v3334_v21 = vrot.slane %v3329_v19, %v5611_v3 }
 0x9e2   : > { %v4879_v30 = vpop.eup %4878  ;;  %v2999_v14 = vmul.f32 %v4877_v33, %v2919_v26  ;;  %v4650_v50 = vpack.c.bf16 %v3320_v39, %v3318_v25  ;;  %v2927_v52 = vmul.f32 %v6117_v12, %v2911_v31  ;;  %v2695_v12 = vsel %vm2679_vm15, 1.0, %v5178_v27 }
 0x9e3   : > { %v3008_v56 = vmul.f32 %v4879_v30, %v2928_v1 }
 0x9e4   : > { %4633 = vmatpush1.bf16.msra.mxu0 %v4632_v34  ;;  %v3324_v34 = vld [vmem:[#allocation14 + $0x7d8] sm:$0xff]  ;;  %v3015_v42 = vsub.f32 1.0, %v2999_v14 }
 0x9e5   : > { %4635 = vmatprep.subr.bf16.mxu0 %v4634_v53  ;;  %v4881_v53 = vpop.eup %4880  ;;  %v4654_v24 = vpack.c.bf16 %v3324_v34, %v3322_v35  ;;  %v3024_v17 = vsub.f32 1.0, %v3008_v56 }
 0x9e6   : > { %v3007_v51 = vmul.f32 %v4881_v53, %v2927_v52 }
 0x9e7   : > { %v3040_v15 = vmul.f32 %v3024_v17, %v2704_v4 }
 0x9e8   : > { %4637 = vmatpush1.bf16.msra.mxu0 %v4636_v20  ;;  %v3031_v20 = vmul.f32 %v3015_v42, %v2695_v12  ;;  %v3023_v44 = vsub.f32 1.0, %v3007_v51 }
 0x9e9   : > { %4639 = vmatprep.subr.bf16.mxu0 %v4638_v6  ;;  %v3325_v6 = vld [vmem:[#allocation14 + $0x7e0] sm:$0xff]  ;;  %v3056_v49 = vadd.f32 1.0, %v3040_v15 }
 0x9ea   : > { %v4660_v7 = vpack.c.bf16 %v3327_v60, %v3325_v6  ;;  %v3047_v32 = vadd.f32 1.0, %v3031_v20  ;;  %v3039_v47 = vmul.f32 %v3023_v44, %v2703_v36 }
 0x9ec   : > { %4641 = vmatpush1.bf16.msra.mxu0 %v4640_v43  ;;  %v2656_v43 = vmul.f32 0.5, %v6071_v37  ;;  %v3063_v10 = vmul.f32 %v3047_v32, %v2647_v9  ;;  %v3338_v37 = vrot.slane %v3329_v19, %v5608_v63 }
 0x9ed   : > { %4643 = vmatprep.subr.bf16.mxu0 %v4642_v61  ;;  %v3055_v61 = vadd.f32 1.0, %v3039_v47 }
 0x9ee   : > { %v3072_v16 = vmul.f32 %v3056_v49, %v2656_v43 }
 0x9ef   : > { %v3071_v27 = vmul.f32 %v3055_v61, %v2655_v13 }
 0x9f0   : > { %4645 = vmatpush1.bf16.msra.mxu0 %v4644_v23 }
 0x9f1   : > { %4647 = vmatprep.subr.bf16.mxu0 %v4646_v29 }
 0x9f4   : > { %4649 = vmatpush1.bf16.msra.mxu0 %v4648_v0 }
 0x9f5   : > { %4651 = vmatprep.subr.bf16.mxu0 %v4650_v50 }
 0x9f8   : > { %4653 = vmatpush1.bf16.msra.mxu0 %v4652_v2 }
 0x9f9   : > { %4655 = vmatprep.subr.bf16.mxu0 %v4654_v24 }
 0x9fc   : > { %4657 = vmatpush1.bf16.msra.mxu0 %v4656_v5 }
 0x9fd   : > { %4659 = vmatprep.subr.bf16.mxu0 %v4658_v22 }
 0xa00   : > { %4661 = vmatpush1.bf16.msra.mxu0 %v4660_v7 }
 0xa03   : > { %3637 = vmatmul.mubr.f32.vlgmr.msra.gmra.mrb[16].mxu0 %v3063_v10 }
 0xa04   : > { %3642 = vmatprep.mubr.f32.mxu0 %v3072_v16 }
 0xa07   : > { %3643 = vmatmul.mubr.f32.gmra.mrb[18].mxu0 %v3071_v27 }
 0xad6   : > { %v3638_v8 = vpop.f32.mrb[16].mxu0 }
 0xad7   : > { %v4662_v18 = vadd.f32 %v3638_v8, %v3334_v21  ;;  %v3640_v38 = vpop.f32.mrb[17].mxu0 }
 0xad8   : > { %v4663_v23 = vadd.f32 %v3640_v38, %v3338_v37 }
 0xad9   : > { %v3649_v26 = vadd.f32 %v4662_v18, %v5710_v46 }
 0xada   : > { %v3650_v28 = vadd.f32 %v4663_v23, %v5713_v48  ;;  %v3644_v29 = vpop.f32.mrb[18].mxu0 }
 0xadb   : > { %3653 = vst [vmem:[%s654_s14] sm:$0xff] %v3649_v26  ;;  %v4664_v62 = vadd.f32 %v3644_v29, %v3334_v21  ;;  %v3646_v3 = vpop.f32.mrb[19].mxu0 }
 0xadc   : > { %3654 = vst [vmem:[%s654_s14 + $0x8] sm:$0xff] %v3650_v28  ;;  %v4665_v63 = vadd.f32 %v3646_v3, %v3338_v37 }
 0xadd   : > { %v3651_v46 = vadd.f32 %v4664_v62, %v5718_v55 }
 0xade   : > { %v3652_v48 = vadd.f32 %v4665_v63, %v5721_v57 }
 0xadf   : > { %3655 = vst [vmem:[%s654_s14 + $0x10] sm:$0xff] %v3651_v46 }
 0xae0   : > { %3656 = vst [vmem:[%s654_s14 + $0x18] sm:$0xff] %v3652_v48 }
 0xae1   : > { %5098 = shalt.err (!%p5095_p8)
}
 0xae2   : > { %s5099_s17 = scalar_lea.hbm %s6164_s11, 512  ;;  %s5103_s16 = scalar_lea.hbm %s6278_s29, 1024 }
 0xae3   : > { %p5100_p4 = scmp.ne.s32.totalorder %s6164_s11, %s5099_s17  ;;  %p5104_p3 = scmp.lt.u32.totalorder %s6164_s11, %s6278_s29 }
 0xae4   : > { %p5105_p5 = scmp.lt.u32.totalorder %s5103_s16, %s5099_s17  ;;  %p5107_p6 = scmp.lt.u32.totalorder %s5099_s17, %s6164_s11 }
 0xae5   : > { %p5101_p10 = pnand %p5100_p4, %p6279_p9 }
 0xae6   : > { %p5106_p7 = por %p5105_p5, %p5104_p3 }
 0xae7   : > { %p5102_p11 = pneg %p5101_p10 }
 0xae8   : > { %p5108_p12 = por %p5107_p6, %p5106_p7 }
 0xaea   : > { %p5109_p1 = pnand %p5108_p12, %p5102_p11 }
 0xaec   : > { %5112 = shalt.err (!%p5109_p1)
}
 0xaed   : > { %s5180_s12 = smov 256   ;;  %s5181_s1 = smov 16  }
 0xaee   : > { %4704 = dma.vmem_to_hbm [thread:$0]  (%p6279_p9), %s6158_s3, 512, %s6164_s11, %s3658_s0, %s5180_s12, %s5180_s12, %s5181_s1  }
 0xaef PF: > { %s3687_s5 = sand.u32 1, %s5151_s24   ;;  %p6280_p13 = scmp.ne.s32.totalorder %s6261_s10, 0 }
 0xaf0   : > { %p6281_p0 = scmp.ge.s32.totalorder %s5163_s27, 2  ;;  %s3688_s30 = scalar_lea.sflag [#allocation5], %s3687_s5 }
 0xaf2   : > { %p4730_p2 = pnand %p6281_p0, %p6280_p13 }
 0xaf4   : > { %5146 = dma.done.wait (!%p4730_p2), %s3688_s30, 512  }
 0xaf5   : > { %5148 = vsyncadd (!%p4730_p2), %s3688_s30, 4294966784  ;;  %p33_p8 = scmp.ge.s32.totalorder %s5463_s18, 4   ;;  %s6282_s24 = smov %s5155_s25 }
 0xaf6   : > { %s6283_s25 = smov %s5159_s26  ;;  %s6284_s26 = smov %s5474_s21 }
 0xaf7   : > { %s6285_s27 = smov %s5463_s18  ;;  %35 = sbr.rel (!%p33_p8) target bundleno = 21 (0x15), region = 157 }
 0xafe   :  { %3693 = vsyncpa [#allocation4], 1 }
 0xaff   :  { %3695 = vsyncpa [#allocation4 + $0x1], 1 }
 0xb00   :  { %3696 = vsyncpa [#allocation7], 1 }
 0xb01   :  { %3697 = vsyncpa [#allocation10], 1 }
 0xb02   :  { %3698 = vsyncpa [#allocation13], 1 }
 0xb03   :  { %3699 = vsyncpa [#allocation5], 1 }
 0xb04   :  { %3701 = vsyncpa [#allocation5 + $0x1], 1 }

</bundles_post_ra>
